<compile_context>
chip_gen: v6e
topology: v6e:2x2x1
jax: 0.10.0
libtpu: 0.0.40
codegen_flags: <defaults>
</compile_context>

<pallas_src>
import functools

import jax
import jax.numpy as jnp
from jax.experimental import pallas as pl
from jax.experimental.pallas import tpu as pltpu

_IN_FEATURES = 32 * 32 * 3
_HIDDEN = (256, 512, 1024, 512)
_LANE = 128
_BF16_SUBLANE = 16   # a bf16 vreg holds [16, 128]
_TM_MAX = 256        # batch-tile rows; fits v5e scoped VMEM with headroom


def _round_up(x, m):
    return ((x + m - 1) // m) * m


def _fused_mlp_kernel(x_ref, w1_ref, b1_ref, w2_ref, b2_ref, w3_ref, b3_ref,
                      w4_ref, b4_ref, w5_ref, b5_ref, o_ref):
    """One batch tile through all 5 Linear+ReLU layers; weights resident in VMEM."""

    def layer(h_bf16, w_ref, b_ref):
        # bf16 x bf16 MXU matmul, f32 accumulation, f32 bias + ReLU.
        acc = jnp.dot(h_bf16, w_ref[...], preferred_element_type=jnp.float32)
        return jnp.maximum(acc + b_ref[...], 0.0)

    # Cast the f32 input tile to bf16 in-kernel (VPU) instead of in the wrapper.
    h = x_ref[...].astype(jnp.bfloat16)
    h = layer(h, w1_ref, b1_ref).astype(jnp.bfloat16)
    h = layer(h, w2_ref, b2_ref).astype(jnp.bfloat16)
    h = layer(h, w3_ref, b3_ref).astype(jnp.bfloat16)
    h = layer(h, w4_ref, b4_ref).astype(jnp.bfloat16)
    # fc5 = Linear + ReLU per the PyTorch spec; f32, lane-padded to 128 (dense store).
    o_ref[...] = layer(h, w5_ref, b5_ref)


def init_params(key, num_classes=10):
    """Deterministic PyTorch-style init. Weights (in, out) bf16; biases (1, out) f32.

    The last layer is zero-padded along the output dim up to a multiple of 128 so
    the kernel's final store is lane-dense; padding is sliced off after the call.
    """
    dims = [_IN_FEATURES, *_HIDDEN, num_classes]
    n_last_padded = _round_up(num_classes, _LANE)
    params = []
    for i in range(len(dims) - 1):
        key, kw, kb = jax.random.split(key, 3)
        fan_in = dims[i]
        out_f = dims[i + 1]
        bound = 1.0 / float(fan_in) ** 0.5
        w = jax.random.uniform(kw, (fan_in, out_f), jnp.float32,
                               minval=-bound, maxval=bound)
        b = jax.random.uniform(kb, (out_f,), jnp.float32,
                               minval=-bound, maxval=bound)
        if i == len(dims) - 2 and out_f != n_last_padded:
            w = jnp.pad(w, ((0, 0), (0, n_last_padded - out_f)))
            b = jnp.pad(b, (0, n_last_padded - out_f))
        params.append((w.astype(jnp.bfloat16), b.reshape(1, -1)))
    return params


@functools.partial(jax.jit, static_argnums=(2,))
def simple_neural_network(x_nchw, params_flat, num_classes=10):
    B = x_nchw.shape[0]
    # glue: flatten NCHW -> (B, C*H*W), identical ordering to torch nn.Flatten
    x = x_nchw.reshape(B, -1).astype(jnp.float32)

    # Batch tiling: pad to a multiple of 16 (bf16 sublane packing), tile at <=256 rows.
    b16 = _round_up(B, _BF16_SUBLANE)
    tm = min(_TM_MAX, b16)
    bp = _round_up(B, tm)
    if bp != B:
        x = jnp.pad(x, ((0, bp - B), (0, 0)))

    n_pad = params_flat[-1].shape[-1]  # lane-padded final width (>=128)
    grid = (bp // tm,)

    in_specs = [pl.BlockSpec((tm, _IN_FEATURES), lambda i: (i, 0))]
    # Weights/biases: constant index_map -> fetched once, VMEM-resident across tiles.
    for p in params_flat:
        in_specs.append(pl.BlockSpec(p.shape, lambda i: (0, 0)))
    out_specs = pl.BlockSpec((tm, n_pad), lambda i: (i, 0))

    dims = [_IN_FEATURES, *_HIDDEN, n_pad]
    flops = 2 * bp * sum(dims[j] * dims[j + 1] for j in range(len(dims) - 1))
    bytes_accessed = (bp * _IN_FEATURES * 4
                      + sum(int(p.size) * p.dtype.itemsize for p in params_flat)
                      + bp * n_pad * 4)

    out_padded = pl.pallas_call(
        _fused_mlp_kernel,
        out_shape=jax.ShapeDtypeStruct((bp, n_pad), jnp.float32),
        grid=grid,
        in_specs=in_specs,
        out_specs=out_specs,
        compiler_params=pltpu.CompilerParams(
            dimension_semantics=("parallel",),     # megacore-shard batch tiles (v7x)
            vmem_limit_bytes=32 * 1024 * 1024),    # headroom above v5e's 16 MiB default
        cost_estimate=pl.CostEstimate(flops=flops, transcendentals=0,
                                      bytes_accessed=bytes_accessed),
    )(x, *params_flat)
    return out_padded[:B, :num_classes]


def _reference(x_nchw, params_flat, num_classes):
    """Pure-JAX reference mirroring the kernel arithmetic (bf16 matmul, f32 acc,
    ReLU on every layer including fc5 — exactly as the PyTorch spec)."""
    h = x_nchw.reshape(x_nchw.shape[0], -1).astype(jnp.bfloat16)
    n_layers = len(params_flat) // 2
    for i in range(n_layers):
        w, b = params_flat[2 * i], params_flat[2 * i + 1]
        acc = jnp.dot(h, w, preferred_element_type=jnp.float32) + b
        h = jnp.maximum(acc, 0.0)
        if i + 1 < n_layers:
            h = h.astype(jnp.bfloat16)
    return h[:, :num_classes]


if __name__ == "__main__":
    key = jax.random.PRNGKey(0)
    key, kx = jax.random.split(key)

    batch = 2
    num_classes = 10
    x = jax.random.normal(kx, (batch, 3, 32, 32), jnp.float32)  # NCHW like PyTorch

    params = init_params(key, num_classes=num_classes)
    params_flat = [t for pair in params for t in pair]

    out = simple_neural_network(x, params_flat, num_classes)
    out = jax.block_until_ready(out)

    assert out.shape == (batch, num_classes), out.shape
    ref = _reference(x, params_flat, num_classes)
    assert jnp.allclose(out, ref, atol=1e-3, rtol=1e-3), "mismatch vs reference"

    print("KERNEL_OK")
</pallas_src>

<mosaic_0001>
module attributes {stable_mosaic.version = 11 : i64} {
  func.func @_fused_mlp_kernel(%arg0: i32, %arg1: memref<16x3072xf32, #tpu.memory_space<vmem>>, %arg2: memref<3072x256xbf16, #tpu.memory_space<vmem>>, %arg3: memref<1x256xf32, #tpu.memory_space<vmem>>, %arg4: memref<256x512xbf16, #tpu.memory_space<vmem>>, %arg5: memref<1x512xf32, #tpu.memory_space<vmem>>, %arg6: memref<512x1024xbf16, #tpu.memory_space<vmem>>, %arg7: memref<1x1024xf32, #tpu.memory_space<vmem>>, %arg8: memref<1024x512xbf16, #tpu.memory_space<vmem>>, %arg9: memref<1x512xf32, #tpu.memory_space<vmem>>, %arg10: memref<512x128xbf16, #tpu.memory_space<vmem>>, %arg11: memref<1x128xf32, #tpu.memory_space<vmem>>, %arg12: memref<16x128xf32, #tpu.memory_space<vmem>>) attributes {dimension_semantics = [#tpu.dimension_semantics<parallel>], iteration_bounds = array<i64: 1>, scalar_prefetch = 0 : i64, scratch_operands = 0 : i64, tpu.core_type = #tpu.core_type<tc>, window_params = [{transform_indices = @transform_0, window_bounds = array<i64: 16, 3072>}, {pipeline_mode = #tpu.pipeline_mode<synchronous>, transform_indices = @transform_1, window_bounds = array<i64: 3072, 256>}, {pipeline_mode = #tpu.pipeline_mode<synchronous>, transform_indices = @transform_2, window_bounds = array<i64: 1, 256>}, {pipeline_mode = #tpu.pipeline_mode<synchronous>, transform_indices = @transform_3, window_bounds = array<i64: 256, 512>}, {pipeline_mode = #tpu.pipeline_mode<synchronous>, transform_indices = @transform_4, window_bounds = array<i64: 1, 512>}, {pipeline_mode = #tpu.pipeline_mode<synchronous>, transform_indices = @transform_5, window_bounds = array<i64: 512, 1024>}, {pipeline_mode = #tpu.pipeline_mode<synchronous>, transform_indices = @transform_6, window_bounds = array<i64: 1, 1024>}, {pipeline_mode = #tpu.pipeline_mode<synchronous>, transform_indices = @transform_7, window_bounds = array<i64: 1024, 512>}, {pipeline_mode = #tpu.pipeline_mode<synchronous>, transform_indices = @transform_8, window_bounds = array<i64: 1, 512>}, {pipeline_mode = #tpu.pipeline_mode<synchronous>, transform_indices = @transform_9, window_bounds = array<i64: 512, 128>}, {pipeline_mode = #tpu.pipeline_mode<synchronous>, transform_indices = @transform_10, window_bounds = array<i64: 1, 128>}, {transform_indices = @transform_11, window_bounds = array<i64: 16, 128>}]} {
    %c0 = arith.constant 0 : index
    %c0_0 = arith.constant 0 : index
    %0 = vector.load %arg1[%c0, %c0_0] : memref<16x3072xf32, #tpu.memory_space<vmem>>, vector<16x3072xf32>
    %1 = arith.truncf %0 : vector<16x3072xf32> to vector<16x3072xbf16>
    %c0_1 = arith.constant 0 : index
    %c0_2 = arith.constant 0 : index
    %2 = vector.load %arg2[%c0_1, %c0_2] : memref<3072x256xbf16, #tpu.memory_space<vmem>>, vector<3072x256xbf16>
    %cst = arith.constant dense<0.000000e+00> : vector<16x256xf32>
    %3 = tpu.matmul %1, %2, %cst {dimension_numbers = #tpu.dot_dimension_numbers<[1], [0], [0], [1], [0, 0, 1, 1], [], []>} : vector<16x3072xbf16>, vector<3072x256xbf16>, vector<16x256xf32> -> vector<16x256xf32>
    %c0_3 = arith.constant 0 : index
    %c0_4 = arith.constant 0 : index
    %4 = vector.load %arg3[%c0_3, %c0_4] : memref<1x256xf32, #tpu.memory_space<vmem>>, vector<1x256xf32>
    %5 = vector.broadcast %4 : vector<1x256xf32> to vector<16x256xf32>
    %6 = arith.addf %3, %5 : vector<16x256xf32>
    %cst_5 = arith.constant 0.000000e+00 : f32
    %7 = vector.broadcast %cst_5 : f32 to vector<16x256xf32>
    %8 = arith.maximumf %6, %7 : vector<16x256xf32>
    %9 = arith.truncf %8 : vector<16x256xf32> to vector<16x256xbf16>
    %c0_6 = arith.constant 0 : index
    %c0_7 = arith.constant 0 : index
    %10 = vector.load %arg4[%c0_6, %c0_7] : memref<256x512xbf16, #tpu.memory_space<vmem>>, vector<256x512xbf16>
    %cst_8 = arith.constant dense<0.000000e+00> : vector<16x512xf32>
    %11 = tpu.matmul %9, %10, %cst_8 {dimension_numbers = #tpu.dot_dimension_numbers<[1], [0], [0], [1], [0, 0, 1, 1], [], []>} : vector<16x256xbf16>, vector<256x512xbf16>, vector<16x512xf32> -> vector<16x512xf32>
    %c0_9 = arith.constant 0 : index
    %c0_10 = arith.constant 0 : index
    %12 = vector.load %arg5[%c0_9, %c0_10] : memref<1x512xf32, #tpu.memory_space<vmem>>, vector<1x512xf32>
    %13 = vector.broadcast %12 : vector<1x512xf32> to vector<16x512xf32>
    %14 = arith.addf %11, %13 : vector<16x512xf32>
    %cst_11 = arith.constant 0.000000e+00 : f32
    %15 = vector.broadcast %cst_11 : f32 to vector<16x512xf32>
    %16 = arith.maximumf %14, %15 : vector<16x512xf32>
    %17 = arith.truncf %16 : vector<16x512xf32> to vector<16x512xbf16>
    %c0_12 = arith.constant 0 : index
    %c0_13 = arith.constant 0 : index
    %18 = vector.load %arg6[%c0_12, %c0_13] : memref<512x1024xbf16, #tpu.memory_space<vmem>>, vector<512x1024xbf16>
    %cst_14 = arith.constant dense<0.000000e+00> : vector<16x1024xf32>
    %19 = tpu.matmul %17, %18, %cst_14 {dimension_numbers = #tpu.dot_dimension_numbers<[1], [0], [0], [1], [0, 0, 1, 1], [], []>} : vector<16x512xbf16>, vector<512x1024xbf16>, vector<16x1024xf32> -> vector<16x1024xf32>
    %c0_15 = arith.constant 0 : index
    %c0_16 = arith.constant 0 : index
    %20 = vector.load %arg7[%c0_15, %c0_16] : memref<1x1024xf32, #tpu.memory_space<vmem>>, vector<1x1024xf32>
    %21 = vector.broadcast %20 : vector<1x1024xf32> to vector<16x1024xf32>
    %22 = arith.addf %19, %21 : vector<16x1024xf32>
    %cst_17 = arith.constant 0.000000e+00 : f32
    %23 = vector.broadcast %cst_17 : f32 to vector<16x1024xf32>
    %24 = arith.maximumf %22, %23 : vector<16x1024xf32>
    %25 = arith.truncf %24 : vector<16x1024xf32> to vector<16x1024xbf16>
    %c0_18 = arith.constant 0 : index
    %c0_19 = arith.constant 0 : index
    %26 = vector.load %arg8[%c0_18, %c0_19] : memref<1024x512xbf16, #tpu.memory_space<vmem>>, vector<1024x512xbf16>
    %cst_20 = arith.constant dense<0.000000e+00> : vector<16x512xf32>
    %27 = tpu.matmul %25, %26, %cst_20 {dimension_numbers = #tpu.dot_dimension_numbers<[1], [0], [0], [1], [0, 0, 1, 1], [], []>} : vector<16x1024xbf16>, vector<1024x512xbf16>, vector<16x512xf32> -> vector<16x512xf32>
    %c0_21 = arith.constant 0 : index
    %c0_22 = arith.constant 0 : index
    %28 = vector.load %arg9[%c0_21, %c0_22] : memref<1x512xf32, #tpu.memory_space<vmem>>, vector<1x512xf32>
    %29 = vector.broadcast %28 : vector<1x512xf32> to vector<16x512xf32>
    %30 = arith.addf %27, %29 : vector<16x512xf32>
    %cst_23 = arith.constant 0.000000e+00 : f32
    %31 = vector.broadcast %cst_23 : f32 to vector<16x512xf32>
    %32 = arith.maximumf %30, %31 : vector<16x512xf32>
    %33 = arith.truncf %32 : vector<16x512xf32> to vector<16x512xbf16>
    %c0_24 = arith.constant 0 : index
    %c0_25 = arith.constant 0 : index
    %34 = vector.load %arg10[%c0_24, %c0_25] : memref<512x128xbf16, #tpu.memory_space<vmem>>, vector<512x128xbf16>
    %cst_26 = arith.constant dense<0.000000e+00> : vector<16x128xf32>
    %35 = tpu.matmul %33, %34, %cst_26 {dimension_numbers = #tpu.dot_dimension_numbers<[1], [0], [0], [1], [0, 0, 1, 1], [], []>} : vector<16x512xbf16>, vector<512x128xbf16>, vector<16x128xf32> -> vector<16x128xf32>
    %c0_27 = arith.constant 0 : index
    %c0_28 = arith.constant 0 : index
    %36 = vector.load %arg11[%c0_27, %c0_28] : memref<1x128xf32, #tpu.memory_space<vmem>>, vector<1x128xf32>
    %37 = vector.broadcast %36 : vector<1x128xf32> to vector<16x128xf32>
    %38 = arith.addf %35, %37 : vector<16x128xf32>
    %cst_29 = arith.constant 0.000000e+00 : f32
    %39 = vector.broadcast %cst_29 : f32 to vector<16x128xf32>
    %40 = arith.maximumf %38, %39 : vector<16x128xf32>
    %c0_30 = arith.constant 0 : index
    %c0_31 = arith.constant 0 : index
    %41 = vector.load %arg12[%c0_30, %c0_31] : memref<16x128xf32, #tpu.memory_space<vmem>>, vector<16x128xf32>
    tpu.vector_store %arg12[%c0_30, %c0_31], %40 {strides = array<i32>} : memref<16x128xf32, #tpu.memory_space<vmem>>, vector<16x128xf32>,
    return
  }
  func.func @transform_0(%arg0: i32) -> (i32, i32) {
    %c0_i32 = arith.constant 0 : i32
    %c0_i32_0 = arith.constant 0 : i32
    return %arg0, %c0_i32 : i32, i32
  }
  func.func @transform_1(%arg0: i32) -> (i32, i32) {
    %c0_i32 = arith.constant 0 : i32
    %c0_i32_0 = arith.constant 0 : i32
    %c0_i32_1 = arith.constant 0 : i32
    return %c0_i32, %c0_i32_0 : i32, i32
  }
  func.func @transform_2(%arg0: i32) -> (i32, i32) {
    %c0_i32 = arith.constant 0 : i32
    %c0_i32_0 = arith.constant 0 : i32
    %c0_i32_1 = arith.constant 0 : i32
    return %c0_i32, %c0_i32_0 : i32, i32
  }
  func.func @transform_3(%arg0: i32) -> (i32, i32) {
    %c0_i32 = arith.constant 0 : i32
    %c0_i32_0 = arith.constant 0 : i32
    %c0_i32_1 = arith.constant 0 : i32
    return %c0_i32, %c0_i32_0 : i32, i32
  }
  func.func @transform_4(%arg0: i32) -> (i32, i32) {
    %c0_i32 = arith.constant 0 : i32
    %c0_i32_0 = arith.constant 0 : i32
    %c0_i32_1 = arith.constant 0 : i32
    return %c0_i32, %c0_i32_0 : i32, i32
  }
  func.func @transform_5(%arg0: i32) -> (i32, i32) {
    %c0_i32 = arith.constant 0 : i32
    %c0_i32_0 = arith.constant 0 : i32
    %c0_i32_1 = arith.constant 0 : i32
    return %c0_i32, %c0_i32_0 : i32, i32
  }
  func.func @transform_6(%arg0: i32) -> (i32, i32) {
    %c0_i32 = arith.constant 0 : i32
    %c0_i32_0 = arith.constant 0 : i32
    %c0_i32_1 = arith.constant 0 : i32
    return %c0_i32, %c0_i32_0 : i32, i32
  }
  func.func @transform_7(%arg0: i32) -> (i32, i32) {
    %c0_i32 = arith.constant 0 : i32
    %c0_i32_0 = arith.constant 0 : i32
    %c0_i32_1 = arith.constant 0 : i32
    return %c0_i32, %c0_i32_0 : i32, i32
  }
  func.func @transform_8(%arg0: i32) -> (i32, i32) {
    %c0_i32 = arith.constant 0 : i32
    %c0_i32_0 = arith.constant 0 : i32
    %c0_i32_1 = arith.constant 0 : i32
    return %c0_i32, %c0_i32_0 : i32, i32
  }
  func.func @transform_9(%arg0: i32) -> (i32, i32) {
    %c0_i32 = arith.constant 0 : i32
    %c0_i32_0 = arith.constant 0 : i32
    %c0_i32_1 = arith.constant 0 : i32
    return %c0_i32, %c0_i32_0 : i32, i32
  }
  func.func @transform_10(%arg0: i32) -> (i32, i32) {
    %c0_i32 = arith.constant 0 : i32
    %c0_i32_0 = arith.constant 0 : i32
    %c0_i32_1 = arith.constant 0 : i32
    return %c0_i32, %c0_i32_0 : i32, i32
  }
  func.func @transform_11(%arg0: i32) -> (i32, i32) {
    %c0_i32 = arith.constant 0 : i32
    %c0_i32_0 = arith.constant 0 : i32
    return %arg0, %c0_i32 : i32, i32
  }
}

</mosaic_0001>

<bundles_post_ra>
// kernel: simple_neural_network.1
= control target key start
LH: loop header
LB: loop body
LE: loop exit
PB: predicated region body
PF: predicated region fallthrough
CT: control target
= control target key end

     0   :  { %16 = vsyncpa [#allocation3], 0  ;;  %s10549_s0 = inlined_call_operand.vmem [shape: f32[16,3072], index: 0, kind: input, shape index: {}]   ;;  %s10550_s1 = inlined_call_operand.hbm [shape: bf16[3072,256], index: 1, kind: input, shape index: {}]   ;;  %s10551_s2 = inlined_call_operand.hbm [shape: f32[1,256], index: 2, kind: input, shape index: {}]   ;;  %s10552_s3 = inlined_call_operand.hbm [shape: bf16[256,512], index: 3, kind: input, shape index: {}]   ;;  %s10553_s4 = inlined_call_operand.hbm [shape: f32[1,512], index: 4, kind: input, shape index: {}]   ;;  %s10554_s5 = inlined_call_operand.hbm [shape: bf16[512,1024], index: 5, kind: input, shape index: {}]   ;;  %s10555_s6 = inlined_call_operand.hbm [shape: f32[1,1024], index: 6, kind: input, shape index: {}]   ;;  %s10556_s7 = inlined_call_operand.hbm [shape: bf16[1024,512], index: 7, kind: input, shape index: {}]   ;;  %s10557_s8 = inlined_call_operand.hbm [shape: f32[1,512], index: 8, kind: input, shape index: {}]   ;;  %s10558_s9 = inlined_call_operand.hbm [shape: bf16[512,128], index: 9, kind: input, shape index: {}]   ;;  %s10559_s10 = inlined_call_operand.hbm [shape: f32[1,128], index: 10, kind: input, shape index: {}]   ;;  %s10560_s11 = inlined_call_operand.vmem [shape: f32[16,128], index: 11, kind: output, shape index: {}]  }
   0x1   :  { %17 = vsyncpa [#allocation5], 0 }
   0x2   :  { %18 = vsyncpa [#allocation8], 0 }
   0x3   :  { %19 = vsyncpa [#allocation11], 0 }
   0x4   :  { %20 = vsyncpa [#allocation14], 0 }
   0x5   :  { %21 = vsyncpa [#allocation17], 0  ;;  %s10153_s17 = smov [#allocation4]   ;;  %s10154_s19 = smov [#allocation7]  }
   0x6   :  { %s42_s18 = sshll.u32 %s10153_s17, 4  ;;  %s64_s20 = sshll.u32 %s10154_s19, 4  ;;  %s43_s18 = int_to_ptr.vmem [resolvable:$true] %s42_s18  ;;  %s65_s20 = int_to_ptr.vmem [resolvable:$true] %s64_s20 }
   0x7   :  { %s9949_s21 = scalar_lea.vmem %s43_s18, 32  ;;  %p9954_p1 = scmp.lt.s32.totalorder %s43_s18, %s43_s18 }
   0x8   :  { %p9950_p0 = scmp.ne.s32.totalorder %s43_s18, %s9949_s21  ;;  %p9955_p2 = scmp.lt.s32.totalorder %s9949_s21, %s9949_s21 }
   0xa   :  { %p9956_p3 = por %p9955_p2, %p9954_p1 }
   0xc   :  { %p9957_p4 = pnand %p9956_p3, %p9950_p0 }
   0xe   :  { %9960 = shalt.err (!%p9957_p4)
}
   0xf   :  { %45 = dma.hbm_to_vmem [thread:$0]  %s10551_s2, 32, %s43_s18, [#allocation5]  }
  0x10   :  { %s9969_s24 = scalar_lea.vmem %s65_s20, 64  ;;  %p9974_p6 = scmp.lt.s32.totalorder %s65_s20, %s65_s20 }
  0x11   :  { %p9970_p5 = scmp.ne.s32.totalorder %s65_s20, %s9969_s24  ;;  %p9975_p7 = scmp.lt.s32.totalorder %s9969_s24, %s9969_s24 }
  0x13   :  { %p9976_p8 = por %p9975_p7, %p9974_p6 }
  0x15   :  { %p9977_p9 = pnand %p9976_p8, %p9970_p5 }
  0x17   :  { %9980 = shalt.err (!%p9977_p9)
}
  0x18   :  { %67 = dma.hbm_to_vmem [thread:$0]  %s10553_s4, 64, %s65_s20, [#allocation8]  }
  0x19   :  { %s10155_s27 = smov [#allocation10]   ;;  %s10156_s29 = smov [#allocation13]  }
  0x1a   :  { %s86_s28 = sshll.u32 %s10155_s27, 4  ;;  %s108_s30 = sshll.u32 %s10156_s29, 4  ;;  %s87_s28 = int_to_ptr.vmem [resolvable:$true] %s86_s28  ;;  %s109_s30 = int_to_ptr.vmem [resolvable:$true] %s108_s30 }
  0x1b   :  { %s9989_s12 = scalar_lea.vmem %s87_s28, 128  ;;  %p9994_p11 = scmp.lt.s32.totalorder %s87_s28, %s87_s28 }
  0x1c   :  { %p9990_p10 = scmp.ne.s32.totalorder %s87_s28, %s9989_s12  ;;  %p9995_p12 = scmp.lt.s32.totalorder %s9989_s12, %s9989_s12 }
  0x1e   :  { %p9996_p13 = por %p9995_p12, %p9994_p11 }
  0x20   :  { %p9997_p0 = pnand %p9996_p13, %p9990_p10 }
  0x22   :  { %10000 = shalt.err (!%p9997_p0)
}
  0x23   :  { %89 = dma.hbm_to_vmem [thread:$0]  %s10555_s6, 128, %s87_s28, [#allocation11]  }
  0x24   :  { %s10009_s14 = scalar_lea.vmem %s109_s30, 64  ;;  %p10014_p2 = scmp.lt.s32.totalorder %s109_s30, %s109_s30 }
  0x25   :  { %p10010_p1 = scmp.ne.s32.totalorder %s109_s30, %s10009_s14  ;;  %p10015_p3 = scmp.lt.s32.totalorder %s10009_s14, %s10009_s14 }
  0x27   :  { %p10016_p4 = por %p10015_p3, %p10014_p2 }
  0x29   :  { %p10017_p5 = pnand %p10016_p4, %p10010_p1 }
  0x2b   :  { %10020 = shalt.err (!%p10017_p5)
}
  0x2c   :  { %111 = dma.hbm_to_vmem [thread:$0]  %s10557_s8, 64, %s109_s30, [#allocation14]  }
  0x2d   :  { %s10157_s16 = smov [#allocation2]  }
  0x2e   :  { %s29_s17 = sshll.u32 %s10157_s16, 4  ;;  %s30_s17 = int_to_ptr.vmem [resolvable:$true] %s29_s17 }
  0x2f   :  { %s10029_s18 = scalar_lea.vmem %s30_s17, 49152  ;;  %p10034_p7 = scmp.lt.s32.totalorder %s30_s17, %s30_s17 }
  0x30   :  { %p10030_p6 = scmp.ne.s32.totalorder %s30_s17, %s10029_s18  ;;  %p10035_p8 = scmp.lt.s32.totalorder %s10029_s18, %s10029_s18 }
  0x32   :  { %p10036_p9 = por %p10035_p8, %p10034_p7 }
  0x34   :  { %p10037_p10 = pnand %p10036_p9, %p10030_p6 }
  0x36   :  { %10040 = shalt.err (!%p10037_p10)
}
  0x37   :  { %s10158_s6 = smov 128   ;;  %s10159_s19 = smov 8  }
  0x38   :  { %35 = dma.hbm_to_vmem [thread:$0]  %s10550_s1, 49152, %s30_s17, [#allocation3], %s10158_s6, %s10158_s6, %s10159_s19  }
  0x39   :  { %s10160_s22 = smov [#allocation6]  }
  0x3a   :  { %s51_s23 = sshll.u32 %s10160_s22, 4  ;;  %s52_s23 = int_to_ptr.vmem [resolvable:$true] %s51_s23 }
  0x3b   :  { %s10049_s8 = scalar_lea.vmem %s52_s23, 8192  ;;  %p10054_p12 = scmp.lt.s32.totalorder %s52_s23, %s52_s23 }
  0x3c   :  { %p10050_p11 = scmp.ne.s32.totalorder %s52_s23, %s10049_s8  ;;  %p10055_p13 = scmp.lt.s32.totalorder %s10049_s8, %s10049_s8 }
  0x3e   :  { %p10056_p0 = por %p10055_p13, %p10054_p12 }
  0x40   :  { %p10057_p1 = pnand %p10056_p0, %p10050_p11 }
  0x42   :  { %10060 = shalt.err (!%p10057_p1)
}
  0x43   :  { %s10161_s24 = smov 256   ;;  %s10162_s25 = smov 16  }
  0x44   :  { %57 = dma.hbm_to_vmem [thread:$0]  %s10552_s3, 8192, %s52_s23, [#allocation5], %s10161_s24, %s10161_s24, %s10162_s25  }
  0x45   :  { %s10163_s1 = smov [#allocation9]  }
  0x46   :  { %s73_s28 = sshll.u32 %s10163_s1, 4  ;;  %s74_s28 = int_to_ptr.vmem [resolvable:$true] %s73_s28 }
  0x47   :  { %s10069_s29 = scalar_lea.vmem %s74_s28, 32768  ;;  %p10074_p3 = scmp.lt.s32.totalorder %s74_s28, %s74_s28 }
  0x48   :  { %p10070_p2 = scmp.ne.s32.totalorder %s74_s28, %s10069_s29  ;;  %p10075_p4 = scmp.lt.s32.totalorder %s10069_s29, %s10069_s29 }
  0x4a   :  { %p10076_p5 = por %p10075_p4, %p10074_p3 }
  0x4c   :  { %p10077_p6 = pnand %p10076_p5, %p10070_p2 }
  0x4e   :  { %10080 = shalt.err (!%p10077_p6)
}
  0x4f   :  { %s10164_s30 = smov 512   ;;  %s10165_s12 = smov 32  }
  0x50   :  { %79 = dma.hbm_to_vmem [thread:$0]  %s10554_s5, 32768, %s74_s28, [#allocation8], %s10164_s30, %s10164_s30, %s10165_s12  }
  0x51   :  { %s10166_s14 = smov [#allocation12]   ;;  %s10167_s3 = smov [#allocation15]  }
  0x52   :  { %s95_s4 = sshll.u32 %s10166_s14, 4  ;;  %s117_s15 = sshll.u32 %s10167_s3, 4  ;;  %s96_s4 = int_to_ptr.vmem [resolvable:$true] %s95_s4  ;;  %s118_s15 = int_to_ptr.vmem [resolvable:$true] %s117_s15 }
  0x53   :  { %s10089_s16 = scalar_lea.vmem %s96_s4, 32768  ;;  %p10094_p8 = scmp.lt.s32.totalorder %s96_s4, %s96_s4 }
  0x54   :  { %p10090_p7 = scmp.ne.s32.totalorder %s96_s4, %s10089_s16  ;;  %p10095_p9 = scmp.lt.s32.totalorder %s10089_s16, %s10089_s16 }
  0x56   :  { %p10096_p10 = por %p10095_p9, %p10094_p8 }
  0x58   :  { %p10097_p11 = pnand %p10096_p10, %p10090_p7 }
  0x5a   :  { %10100 = shalt.err (!%p10097_p11)
}
  0x5b   :  { %101 = dma.hbm_to_vmem [thread:$0]  %s10556_s7, 32768, %s96_s4, [#allocation11], %s10161_s24, %s10161_s24, %s10162_s25  }
  0x5c   :  { %s10109_s5 = scalar_lea.vmem %s118_s15, 4096  ;;  %p10114_p13 = scmp.lt.s32.totalorder %s118_s15, %s118_s15 }
  0x5d   :  { %p10110_p12 = scmp.ne.s32.totalorder %s118_s15, %s10109_s5  ;;  %p10115_p0 = scmp.lt.s32.totalorder %s10109_s5, %s10109_s5 }
  0x5f   :  { %p10116_p1 = por %p10115_p0, %p10114_p13 }
  0x61   :  { %p10117_p2 = pnand %p10116_p1, %p10110_p12 }
  0x63   :  { %10120 = shalt.err (!%p10117_p2)
}
  0x64   :  { %s10168_s6 = smov 64   ;;  %s10169_s19 = smov 4  }
  0x65   :  { %123 = dma.hbm_to_vmem [thread:$0]  %s10558_s9, 4096, %s118_s15, [#allocation14], %s10168_s6, %s10168_s6, %s10169_s19  }
  0x66   :  { %s10170_s22 = smov [#allocation16]  }
  0x67   :  { %s130_s23 = sshll.u32 %s10170_s22, 4  ;;  %s131_s23 = int_to_ptr.vmem [resolvable:$true] %s130_s23 }
  0x68   :  { %s10129_s8 = scalar_lea.vmem %s131_s23, 16  ;;  %s10133_s7 = scalar_lea.vmem %s131_s23, 32 }
  0x69   :  { %p10130_p3 = scmp.ne.s32.totalorder %s131_s23, %s10129_s8  ;;  %p10134_p4 = scmp.lt.s32.totalorder %s131_s23, %s131_s23 }
  0x6a   :  { %p10135_p5 = scmp.lt.s32.totalorder %s10133_s7, %s10129_s8 }
  0x6c   :  { %p10136_p6 = por %p10135_p5, %p10134_p4 }
  0x6e   :  { %p10137_p7 = pnand %p10136_p6, %p10130_p3 }
  0x70   :  { %10140 = shalt.err (!%p10137_p7)
}
  0x71   :  { %133 = dma.hbm_to_vmem [thread:$0]  %s10559_s10, 16, %s131_s23, [#allocation17]  }
  0x72   :  { %10141 = dma.done.wait [#allocation3], 49152  }
  0x73   :  { %10142 = vsyncadd [#allocation3], 4294918144 }
  0x74   :  { %10143 = dma.done.wait [#allocation5], 8224  }
  0x75   :  { %10144 = vsyncadd [#allocation5], 4294959072 }
  0x76   :  { %10145 = dma.done.wait [#allocation8], 32832  }
  0x77   :  { %10146 = vsyncadd [#allocation8], 4294934464 }
  0x78   :  { %10147 = dma.done.wait [#allocation11], 32896  }
  0x79   :  { %10148 = vsyncadd [#allocation11], 4294934400 }
  0x7a   :  { %10149 = dma.done.wait [#allocation14], 4160  }
  0x7b   :  { %10150 = vsyncadd [#allocation14], 4294963136 }
  0x7c   :  { %10151 = dma.done.wait [#allocation17], 16  }
  0x7d   :  { %10152 = vsyncadd [#allocation17], 4294967280  ;;  %v8853_v0 = vld [vmem:[#allocation2 + $0x74] ss:$8 sps:$4 sm:$0xff]   ;;  %v8857_v2 = vld [vmem:[#allocation2 + $0x70] ss:$8 sps:$4 sm:$0xff]  }
  0x7e   :  { %v8855_v1 = vld [vmem:[#allocation2 + $0x174] ss:$8 sps:$4 sm:$0xff]   ;;  %2553 = vmatprep.subr.bf16.mxu0 %v8853_v0  ;;  %v8858_v3 = vld [vmem:[#allocation2 + $0x170] ss:$8 sps:$4 sm:$0xff]   ;;  %v8859_v4 = vld [vmem:[#allocation2 + $0x64] ss:$8 sps:$4 sm:$0xff]  }
  0x7f   :  { %2596 = vmatprep.subr.bf16.mxu1 %v8855_v1  ;;  %2554 = vmatpush1.bf16.msra.mxu0 %v8857_v2  ;;  %v8861_v5 = vld [vmem:[#allocation2 + $0x164] ss:$8 sps:$4 sm:$0xff]   ;;  %v8863_v6 = vld [vmem:[#allocation2 + $0x60] ss:$8 sps:$4 sm:$0xff]   ;;  %v8865_v8 = vld [vmem:[#allocation2 + $0x54] ss:$8 sps:$4 sm:$0xff]  }
  0x80   :  { %2597 = vmatpush1.bf16.msra.mxu1 %v8858_v3  ;;  %2555 = vmatprep.subr.bf16.mxu0 %v8859_v4  ;;  %v8864_v7 = vld [vmem:[#allocation2 + $0x160] ss:$8 sps:$4 sm:$0xff]   ;;  %v8867_v9 = vld [vmem:[#allocation2 + $0x154] ss:$8 sps:$4 sm:$0xff]   ;;  %v8869_v10 = vld [vmem:[#allocation2 + $0x50] ss:$8 sps:$4 sm:$0xff]  }
  0x81   :  { %2598 = vmatprep.subr.bf16.mxu1 %v8861_v5  ;;  %v8870_v11 = vld [vmem:[#allocation2 + $0x150] ss:$8 sps:$4 sm:$0xff]   ;;  %v8871_v12 = vld [vmem:[#allocation2 + $0x44] ss:$8 sps:$4 sm:$0xff]   ;;  %v8875_v14 = vld [vmem:[#allocation2 + $0x40] ss:$8 sps:$4 sm:$0xff]  }
  0x82   :  { %v8873_v13 = vld [vmem:[#allocation2 + $0x144] ss:$8 sps:$4 sm:$0xff]   ;;  %v8876_v15 = vld [vmem:[#allocation2 + $0x140] ss:$8 sps:$4 sm:$0xff]   ;;  %v8877_v16 = vld [vmem:[#allocation2 + $0x34] ss:$8 sps:$4 sm:$0xff]  }
  0x83   :  { %2556 = vmatpush1.bf16.msra.mxu0 %v8863_v6  ;;  %v8879_v17 = vld [vmem:[#allocation2 + $0x134] ss:$8 sps:$4 sm:$0xff]   ;;  %v8881_v18 = vld [vmem:[#allocation2 + $0x30] ss:$8 sps:$4 sm:$0xff]   ;;  %v8883_v20 = vld [vmem:[#allocation2 + $0x24] ss:$8 sps:$4 sm:$0xff]  }
  0x84   :  { %2599 = vmatpush1.bf16.msra.mxu1 %v8864_v7  ;;  %2557 = vmatprep.subr.bf16.mxu0 %v8865_v8  ;;  %v8882_v19 = vld [vmem:[#allocation2 + $0x130] ss:$8 sps:$4 sm:$0xff]   ;;  %v8885_v21 = vld [vmem:[#allocation2 + $0x124] ss:$8 sps:$4 sm:$0xff]   ;;  %v8887_v22 = vld [vmem:[#allocation2 + $0x20] ss:$8 sps:$4 sm:$0xff]  }
  0x85   :  { %2600 = vmatprep.subr.bf16.mxu1 %v8867_v9  ;;  %v8888_v23 = vld [vmem:[#allocation2 + $0x120] ss:$8 sps:$4 sm:$0xff]   ;;  %v8889_v24 = vld [vmem:[#allocation2 + $0x14] ss:$8 sps:$4 sm:$0xff]   ;;  %v8893_v26 = vld [vmem:[#allocation2 + $0x10] ss:$8 sps:$4 sm:$0xff]  }
  0x86   :  { %v8891_v25 = vld [vmem:[#allocation2 + $0x114] ss:$8 sps:$4 sm:$0xff]   ;;  %v8894_v27 = vld [vmem:[#allocation2 + $0x110] ss:$8 sps:$4 sm:$0xff]   ;;  %v8895_v28 = vld [vmem:[#allocation2 + $0x4] ss:$8 sps:$4 sm:$0xff]  }
  0x87   :  { %2558 = vmatpush1.bf16.msra.mxu0 %v8869_v10  ;;  %v8897_v29 = vld [vmem:[#allocation2 + $0x104] ss:$8 sps:$4 sm:$0xff]   ;;  %v8899_v30 = vld [vmem:[#allocation2] ss:$8 sps:$4 sm:$0xff]   ;;  %v8901_v32 = vld [vmem:[#allocation2 + $0xf4] ss:$8 sps:$4 sm:$0xff]  }
  0x88   :  { %2601 = vmatpush1.bf16.msra.mxu1 %v8870_v11  ;;  %2559 = vmatprep.subr.bf16.mxu0 %v8871_v12  ;;  %v8900_v31 = vld [vmem:[#allocation2 + $0x100] ss:$8 sps:$4 sm:$0xff]   ;;  %v8903_v33 = vld [vmem:[#allocation2 + $0x1f4] ss:$8 sps:$4 sm:$0xff]   ;;  %v8905_v34 = vld [vmem:[#allocation2 + $0xf0] ss:$8 sps:$4 sm:$0xff]  }
  0x89   :  { %2602 = vmatprep.subr.bf16.mxu1 %v8873_v13  ;;  %v8906_v35 = vld [vmem:[#allocation2 + $0x1f0] ss:$8 sps:$4 sm:$0xff]   ;;  %v8907_v36 = vld [vmem:[#allocation2 + $0xe4] ss:$8 sps:$4 sm:$0xff]   ;;  %v8911_v38 = vld [vmem:[#allocation2 + $0xe0] ss:$8 sps:$4 sm:$0xff]  }
  0x8a   :  { %v8909_v37 = vld [vmem:[#allocation2 + $0x1e4] ss:$8 sps:$4 sm:$0xff]   ;;  %v8912_v39 = vld [vmem:[#allocation2 + $0x1e0] ss:$8 sps:$4 sm:$0xff]   ;;  %v8913_v40 = vld [vmem:[#allocation2 + $0xd4] ss:$8 sps:$4 sm:$0xff]  }
  0x8b   :  { %2560 = vmatpush1.bf16.msra.mxu0 %v8875_v14  ;;  %v8915_v41 = vld [vmem:[#allocation2 + $0x1d4] ss:$8 sps:$4 sm:$0xff]   ;;  %v8917_v42 = vld [vmem:[#allocation2 + $0xd0] ss:$8 sps:$4 sm:$0xff]   ;;  %v8919_v44 = vld [vmem:[#allocation2 + $0xc4] ss:$8 sps:$4 sm:$0xff]  }
  0x8c   :  { %2603 = vmatpush1.bf16.msra.mxu1 %v8876_v15  ;;  %2561 = vmatprep.subr.bf16.mxu0 %v8877_v16  ;;  %v8918_v43 = vld [vmem:[#allocation2 + $0x1d0] ss:$8 sps:$4 sm:$0xff]   ;;  %v8921_v45 = vld [vmem:[#allocation2 + $0x1c4] ss:$8 sps:$4 sm:$0xff]   ;;  %v8923_v50 = vld [vmem:[#allocation2 + $0xc0] ss:$8 sps:$4 sm:$0xff]  }
  0x8d   :  { %2604 = vmatprep.subr.bf16.mxu1 %v8879_v17  ;;  %v166_v46 = vld [vmem:[%s10549_s0 + $0x8] sm:$0xff]  ;;  %v168_v48 = vld [vmem:[%s10549_s0 + $0x18] sm:$0xff]  ;;  %v165_v6 = vld [vmem:[%s10549_s0] sm:$0xff] }
  0x8e   :  { %v190_v47 = vld [vmem:[%s10549_s0 + $0xc8] sm:$0xff]  ;;  %v192_v49 = vld [vmem:[%s10549_s0 + $0xd8] sm:$0xff]  ;;  %v189_v7 = vld [vmem:[%s10549_s0 + $0xc0] sm:$0xff] }
  0x8f   :  { %2562 = vmatpush1.bf16.msra.mxu0 %v8881_v18  ;;  %v8924_v51 = vld [vmem:[#allocation2 + $0x1c0] ss:$8 sps:$4 sm:$0xff]   ;;  %v8925_v52 = vld [vmem:[#allocation2 + $0xb4] ss:$8 sps:$4 sm:$0xff]   ;;  %v214_v53 = vpack.c.bf16 %v190_v47, %v166_v46  ;;  %v216_v54 = vpack.c.bf16 %v192_v49, %v168_v48  ;;  %v8929_v56 = vld [vmem:[#allocation2 + $0xb0] ss:$8 sps:$4 sm:$0xff]   ;;  %v213_v12 = vpack.c.bf16 %v189_v7, %v165_v6 }
  0x90   :  { %2605 = vmatpush1.bf16.msra.mxu1 %v8882_v19  ;;  %2563 = vmatprep.subr.bf16.mxu0 %v8883_v20  ;;  %v8927_v55 = vld [vmem:[#allocation2 + $0x1b4] ss:$8 sps:$4 sm:$0xff]   ;;  %v8930_v57 = vld [vmem:[#allocation2 + $0x1b0] ss:$8 sps:$4 sm:$0xff]   ;;  %v8931_v58 = vld [vmem:[#allocation2 + $0xa4] ss:$8 sps:$4 sm:$0xff]  }
  0x91   :  { %2606 = vmatprep.subr.bf16.mxu1 %v8885_v21  ;;  %2585 = vmatprep.mubr.bf16.mxu0 %v214_v53  ;;  %v8933_v59 = vld [vmem:[#allocation2 + $0x1a4] ss:$8 sps:$4 sm:$0xff]   ;;  %v8935_v60 = vld [vmem:[#allocation2 + $0xa0] ss:$8 sps:$4 sm:$0xff]   ;;  %v8937_v62 = vld [vmem:[#allocation2 + $0x94] ss:$8 sps:$4 sm:$0xff]  }
  0x92   :  { %2628 = vmatprep.mubr.bf16.mxu1 %v216_v54  ;;  %v8936_v61 = vld [vmem:[#allocation2 + $0x1a0] ss:$8 sps:$4 sm:$0xff]   ;;  %v8939_v63 = vld [vmem:[#allocation2 + $0x194] ss:$8 sps:$4 sm:$0xff]   ;;  %v8941_v0 = vld [vmem:[#allocation2 + $0x90] ss:$8 sps:$4 sm:$0xff]  }
  0x93   :  { %2564 = vmatpush1.bf16.msra.mxu0 %v8887_v22  ;;  %v8942_v1 = vld [vmem:[#allocation2 + $0x190] ss:$8 sps:$4 sm:$0xff]   ;;  %v8943_v2 = vld [vmem:[#allocation2 + $0x84] ss:$8 sps:$4 sm:$0xff]   ;;  %v8947_v4 = vld [vmem:[#allocation2 + $0x80] ss:$8 sps:$4 sm:$0xff]  }
  0x94   :  { %2607 = vmatpush1.bf16.msra.mxu1 %v8888_v23  ;;  %2565 = vmatprep.subr.bf16.mxu0 %v8889_v24  ;;  %v8945_v3 = vld [vmem:[#allocation2 + $0x184] ss:$8 sps:$4 sm:$0xff]   ;;  %v8948_v5 = vld [vmem:[#allocation2 + $0x180] ss:$8 sps:$4 sm:$0xff]   ;;  %v167_v8 = vld [vmem:[%s10549_s0 + $0x10] sm:$0xff] }
  0x95   :  { %2608 = vmatprep.subr.bf16.mxu1 %v8891_v25  ;;  %v191_v9 = vld [vmem:[%s10549_s0 + $0xd0] sm:$0xff]  ;;  %v8957_v16 = vld [vmem:[#allocation2 + $0x264] ss:$8 sps:$4 sm:$0xff]   ;;  %v8955_v18 = vld [vmem:[#allocation2 + $0x260] ss:$8 sps:$4 sm:$0xff]  }
  0x96   :  { %v8951_v10 = vld [vmem:[#allocation2 + $0x274] ss:$8 sps:$4 sm:$0xff]   ;;  %v215_v13 = vpack.c.bf16 %v191_v9, %v167_v8  ;;  %v8949_v14 = vld [vmem:[#allocation2 + $0x270] ss:$8 sps:$4 sm:$0xff]   ;;  %v8960_v17 = vld [vmem:[#allocation2 + $0x364] ss:$8 sps:$4 sm:$0xff]  }
  0x97   :  { %2566 = vmatpush1.bf16.msra.mxu0 %v8893_v26  ;;  %v8954_v11 = vld [vmem:[#allocation2 + $0x374] ss:$8 sps:$4 sm:$0xff]   ;;  %v8952_v15 = vld [vmem:[#allocation2 + $0x370] ss:$8 sps:$4 sm:$0xff]   ;;  %v8958_v19 = vld [vmem:[#allocation2 + $0x360] ss:$8 sps:$4 sm:$0xff]  }
  0x98   :  { %2609 = vmatpush1.bf16.msra.mxu1 %v8894_v27  ;;  %2567 = vmatprep.subr.bf16.mxu0 %v8895_v28  ;;  %v8963_v20 = vld [vmem:[#allocation2 + $0x254] ss:$8 sps:$4 sm:$0xff]   ;;  %v8961_v22 = vld [vmem:[#allocation2 + $0x250] ss:$8 sps:$4 sm:$0xff]   ;;  %v8969_v24 = vld [vmem:[#allocation2 + $0x244] ss:$8 sps:$4 sm:$0xff]  }
  0x99   :  { %2610 = vmatprep.subr.bf16.mxu1 %v8897_v29  ;;  %v8966_v21 = vld [vmem:[#allocation2 + $0x354] ss:$8 sps:$4 sm:$0xff]   ;;  %v8964_v23 = vld [vmem:[#allocation2 + $0x350] ss:$8 sps:$4 sm:$0xff]   ;;  %v8972_v25 = vld [vmem:[#allocation2 + $0x344] ss:$8 sps:$4 sm:$0xff]  }
  0x9a   :  { %v8967_v26 = vld [vmem:[#allocation2 + $0x240] ss:$8 sps:$4 sm:$0xff]   ;;  %v8975_v28 = vld [vmem:[#allocation2 + $0x234] ss:$8 sps:$4 sm:$0xff]   ;;  %v9000_v53 = vld [vmem:[#allocation2 + $0x3f0] ss:$8 sps:$4 sm:$0xff]  }
  0x9b   :  { %2568 = vmatpush1.bf16.msra.mxu0 %v8899_v30  ;;  %v8970_v27 = vld [vmem:[#allocation2 + $0x340] ss:$8 sps:$4 sm:$0xff]   ;;  %v8978_v29 = vld [vmem:[#allocation2 + $0x334] ss:$8 sps:$4 sm:$0xff]   ;;  %v8973_v30 = vld [vmem:[#allocation2 + $0x230] ss:$8 sps:$4 sm:$0xff]  }
  0x9c   :  { %2611 = vmatpush1.bf16.msra.mxu1 %v8900_v31  ;;  %2569 = vmatprep.subr.bf16.mxu0 %v8901_v32  ;;  %v8976_v31 = vld [vmem:[#allocation2 + $0x330] ss:$8 sps:$4 sm:$0xff]   ;;  %v8981_v32 = vld [vmem:[#allocation2 + $0x224] ss:$8 sps:$4 sm:$0xff]   ;;  %v8991_v48 = vld [vmem:[#allocation2 + $0x200] ss:$8 sps:$4 sm:$0xff]  }
  0x9d   :  { %2612 = vmatprep.subr.bf16.mxu1 %v8903_v33  ;;  %v8984_v33 = vld [vmem:[#allocation2 + $0x324] ss:$8 sps:$4 sm:$0xff]   ;;  %v196_v46 = vld [vmem:[%s10549_s0 + $0xf8] sm:$0xff]  ;;  %v8994_v49 = vld [vmem:[#allocation2 + $0x300] ss:$8 sps:$4 sm:$0xff]  }
  0x9e   :  { %v9005_v54 = vld [vmem:[#allocation2 + $0x2e4] ss:$8 sps:$4 sm:$0xff]   ;;  %v9027_v8 = vld [vmem:[#allocation2 + $0x2a0] ss:$8 sps:$4 sm:$0xff]  }
  0x9f   :  { %2570 = vmatpush2.bf16.msra.mxu0 %v8905_v34  ;;  %v8979_v34 = vld [vmem:[#allocation2 + $0x220] ss:$8 sps:$4 sm:$0xff]   ;;  %v9029_v6 = vld [vmem:[#allocation2 + $0x2a4] ss:$8 sps:$4 sm:$0xff]  }
  0xa0   :  { %2613 = vmatpush2.bf16.msra.mxu1 %v8906_v35  ;;  %2571 = vmatprep.subr.bf16.mxu0 %v8907_v36  ;;  %v8982_v35 = vld [vmem:[#allocation2 + $0x320] ss:$8 sps:$4 sm:$0xff]   ;;  %v8987_v36 = vld [vmem:[#allocation2 + $0x214] ss:$8 sps:$4 sm:$0xff]   ;;  %v9032_v7 = vld [vmem:[#allocation2 + $0x3a4] ss:$8 sps:$4 sm:$0xff]  }
  0xa1   :  { %2614 = vmatprep.subr.bf16.mxu1 %v8909_v37  ;;  %v8990_v37 = vld [vmem:[#allocation2 + $0x314] ss:$8 sps:$4 sm:$0xff]   ;;  %v9030_v9 = vld [vmem:[#allocation2 + $0x3a0] ss:$8 sps:$4 sm:$0xff]  }
  0xa3   :  { %2572 = vmatpush2.bf16.msra.mxu0 %v8911_v38  ;;  %v8985_v38 = vld [vmem:[#allocation2 + $0x210] ss:$8 sps:$4 sm:$0xff]  }
  0xa4   :  { %2615 = vmatpush2.bf16.msra.mxu1 %v8912_v39  ;;  %2573 = vmatprep.subr.bf16.mxu0 %v8913_v40  ;;  %v8988_v39 = vld [vmem:[#allocation2 + $0x310] ss:$8 sps:$4 sm:$0xff]   ;;  %v170_v40 = vld [vmem:[%s10549_s0 + $0x28] sm:$0xff] }
  0xa5   :  { %2616 = vmatprep.subr.bf16.mxu1 %v8915_v41  ;;  %v194_v41 = vld [vmem:[%s10549_s0 + $0xe8] sm:$0xff] }
  0xa7   :  { %2574 = vmatpush2.bf16.msra.mxu0 %v8917_v42  ;;  %v172_v42 = vld [vmem:[%s10549_s0 + $0x38] sm:$0xff] }
  0xa8   :  { %2617 = vmatpush2.bf16.msra.mxu1 %v8918_v43  ;;  %2575 = vmatprep.subr.bf16.mxu0 %v8919_v44  ;;  %v8993_v43 = vld [vmem:[#allocation2 + $0x204] ss:$8 sps:$4 sm:$0xff]   ;;  %v220_v47 = vpack.c.bf16 %v196_v46, %v172_v42  ;;  %v9071_v46 = vld [vmem:[#allocation2 + $0x434] ss:$8 sps:$4 sm:$0xff]  }
  0xa9   :  { %2618 = vmatprep.subr.bf16.mxu1 %v8921_v45  ;;  %v8996_v44 = vld [vmem:[#allocation2 + $0x304] ss:$8 sps:$4 sm:$0xff]   ;;  %v218_v45 = vpack.c.bf16 %v194_v41, %v170_v40  ;;  %v9060_v40 = vld [vmem:[#allocation2 + $0x550] ss:$8 sps:$4 sm:$0xff]  }
  0xaa   :  { %v9065_v42 = vld [vmem:[#allocation2 + $0x444] ss:$8 sps:$4 sm:$0xff]  }
  0xab   :  { %2576 = vmatpush2.bf16.msra.mxu0 %v8923_v50  ;;  %v8999_v50 = vld [vmem:[#allocation2 + $0x2f4] ss:$8 sps:$4 sm:$0xff]  }
  0xac   :  { %2619 = vmatpush2.bf16.msra.mxu1 %v8924_v51  ;;  %2577 = vmatprep.subr.bf16.mxu0 %v8925_v52  ;;  %v9002_v51 = vld [vmem:[#allocation2 + $0x3f4] ss:$8 sps:$4 sm:$0xff]   ;;  %v8997_v52 = vld [vmem:[#allocation2 + $0x2f0] ss:$8 sps:$4 sm:$0xff]  }
  0xad   :  { %2620 = vmatprep.subr.bf16.mxu1 %v8927_v55  ;;  %v9008_v55 = vld [vmem:[#allocation2 + $0x3e4] ss:$8 sps:$4 sm:$0xff]  }
  0xaf   :  { %2578 = vmatpush2.bf16.msra.mxu0 %v8929_v56  ;;  %v9003_v56 = vld [vmem:[#allocation2 + $0x2e0] ss:$8 sps:$4 sm:$0xff]  }
  0xb0   :  { %2621 = vmatpush2.bf16.msra.mxu1 %v8930_v57  ;;  %2579 = vmatprep.subr.bf16.mxu0 %v8931_v58  ;;  %v9006_v57 = vld [vmem:[#allocation2 + $0x3e0] ss:$8 sps:$4 sm:$0xff]   ;;  %v9011_v58 = vld [vmem:[#allocation2 + $0x2d4] ss:$8 sps:$4 sm:$0xff]  }
  0xb1   :  { %2622 = vmatprep.subr.bf16.mxu1 %v8933_v59  ;;  %v9014_v59 = vld [vmem:[#allocation2 + $0x3d4] ss:$8 sps:$4 sm:$0xff]  }
  0xb3   :  { %2580 = vmatpush2.bf16.msra.mxu0 %v8935_v60  ;;  %v9009_v60 = vld [vmem:[#allocation2 + $0x2d0] ss:$8 sps:$4 sm:$0xff]  }
  0xb4   :  { %2623 = vmatpush2.bf16.msra.mxu1 %v8936_v61  ;;  %2581 = vmatprep.subr.bf16.mxu0 %v8937_v62  ;;  %v9012_v61 = vld [vmem:[#allocation2 + $0x3d0] ss:$8 sps:$4 sm:$0xff]   ;;  %v9017_v62 = vld [vmem:[#allocation2 + $0x2c4] ss:$8 sps:$4 sm:$0xff]  }
  0xb5   :  { %2624 = vmatprep.subr.bf16.mxu1 %v8939_v63  ;;  %v9020_v63 = vld [vmem:[#allocation2 + $0x3c4] ss:$8 sps:$4 sm:$0xff]  }
  0xb7   :  { %2582 = vmatpush2.bf16.msra.mxu0 %v8941_v0  ;;  %v9015_v0 = vld [vmem:[#allocation2 + $0x2c0] ss:$8 sps:$4 sm:$0xff]  }
  0xb8   :  { %2625 = vmatpush2.bf16.msra.mxu1 %v8942_v1  ;;  %2583 = vmatprep.subr.bf16.mxu0 %v8943_v2  ;;  %v9018_v1 = vld [vmem:[#allocation2 + $0x3c0] ss:$8 sps:$4 sm:$0xff]   ;;  %v9023_v2 = vld [vmem:[#allocation2 + $0x2b4] ss:$8 sps:$4 sm:$0xff]  }
  0xb9   :  { %2626 = vmatprep.subr.bf16.mxu1 %v8945_v3  ;;  %v9026_v3 = vld [vmem:[#allocation2 + $0x3b4] ss:$8 sps:$4 sm:$0xff]  }
  0xbb   :  { %2584 = vmatpush2.bf16.msra.mxu0 %v8947_v4  ;;  %v9021_v4 = vld [vmem:[#allocation2 + $0x2b0] ss:$8 sps:$4 sm:$0xff]  }
  0xbc   :  { %2627 = vmatpush2.bf16.msra.mxu1 %v8948_v5  ;;  %2639 = vmatprep.subr.bf16.mxu0 %v8951_v10  ;;  %v9024_v5 = vld [vmem:[#allocation2 + $0x3b0] ss:$8 sps:$4 sm:$0xff]   ;;  %v9035_v10 = vld [vmem:[#allocation2 + $0x294] ss:$8 sps:$4 sm:$0xff]  }
  0xbd   :  { %2682 = vmatprep.subr.bf16.mxu1 %v8954_v11  ;;  %v9038_v11 = vld [vmem:[#allocation2 + $0x394] ss:$8 sps:$4 sm:$0xff]  }
  0xbe   :  { %2586 = vmatmul.mubr.bf16.vlgmr.msra.gmra.mxu0 %v213_v12  ;;  %v9033_v12 = vld [vmem:[#allocation2 + $0x290] ss:$8 sps:$4 sm:$0xff]  }
  0xbf   :  { %2629 = vmatmul.mubr.bf16.vlgmr.msra.gmra.mxu1 %v215_v13  ;;  %2640 = vmatpush1.bf16.msra.mxu0 %v8949_v14  ;;  %v9036_v13 = vld [vmem:[#allocation2 + $0x390] ss:$8 sps:$4 sm:$0xff]   ;;  %v9041_v14 = vld [vmem:[#allocation2 + $0x284] ss:$8 sps:$4 sm:$0xff]  }
  0xc0   :  { %2683 = vmatpush1.bf16.msra.mxu1 %v8952_v15  ;;  %2641 = vmatprep.subr.bf16.mxu0 %v8957_v16  ;;  %v9044_v15 = vld [vmem:[#allocation2 + $0x384] ss:$8 sps:$4 sm:$0xff]   ;;  %v9039_v16 = vld [vmem:[#allocation2 + $0x280] ss:$8 sps:$4 sm:$0xff]  }
  0xc1   :  { %2684 = vmatprep.subr.bf16.mxu1 %v8960_v17  ;;  %2671 = vmatprep.mubr.bf16.mxu0 %v218_v45  ;;  %v9042_v17 = vld [vmem:[#allocation2 + $0x380] ss:$8 sps:$4 sm:$0xff]  }
  0xc2   :  { %2714 = vmatprep.mubr.bf16.mxu1 %v220_v47  ;;  %v9066_v45 = vld [vmem:[#allocation2 + $0x540] ss:$8 sps:$4 sm:$0xff]   ;;  %v9074_v47 = vld [vmem:[#allocation2 + $0x534] ss:$8 sps:$4 sm:$0xff]  }
  0xc3   :  { %2642 = vmatpush1.bf16.msra.mxu0 %v8955_v18  ;;  %v169_v18 = vld [vmem:[%s10549_s0 + $0x20] sm:$0xff] }
  0xc4   :  { %2685 = vmatpush1.bf16.msra.mxu1 %v8958_v19  ;;  %2643 = vmatprep.subr.bf16.mxu0 %v8963_v20  ;;  %v193_v19 = vld [vmem:[%s10549_s0 + $0xe0] sm:$0xff]  ;;  %v171_v20 = vld [vmem:[%s10549_s0 + $0x30] sm:$0xff] }
  0xc5   :  { %2686 = vmatprep.subr.bf16.mxu1 %v8966_v21  ;;  %v195_v21 = vld [vmem:[%s10549_s0 + $0xf0] sm:$0xff] }
  0xc7   :  { %2644 = vmatpush1.bf16.msra.mxu0 %v8961_v22  ;;  %v9047_v22 = vld [vmem:[#allocation2 + $0x474] ss:$8 sps:$4 sm:$0xff]  }
  0xc8   :  { %2687 = vmatpush1.bf16.msra.mxu1 %v8964_v23  ;;  %2645 = vmatprep.subr.bf16.mxu0 %v8969_v24  ;;  %v9050_v23 = vld [vmem:[#allocation2 + $0x574] ss:$8 sps:$4 sm:$0xff]   ;;  %v217_v24 = vpack.c.bf16 %v193_v19, %v169_v18  ;;  %v9125_v18 = vld [vmem:[#allocation2 + $0x4a4] ss:$8 sps:$4 sm:$0xff]  }
  0xc9   :  { %2688 = vmatprep.subr.bf16.mxu1 %v8972_v25  ;;  %v219_v25 = vpack.c.bf16 %v195_v21, %v171_v20  ;;  %v9128_v19 = vld [vmem:[#allocation2 + $0x5a4] ss:$8 sps:$4 sm:$0xff]   ;;  %v9123_v20 = vld [vmem:[#allocation2 + $0x4a0] ss:$8 sps:$4 sm:$0xff]  }
  0xca   :  { %v9126_v21 = vld [vmem:[#allocation2 + $0x5a0] ss:$8 sps:$4 sm:$0xff]  }
  0xcb   :  { %2646 = vmatpush1.bf16.msra.mxu0 %v8967_v26  ;;  %v9045_v26 = vld [vmem:[#allocation2 + $0x470] ss:$8 sps:$4 sm:$0xff]  }
  0xcc   :  { %2689 = vmatpush1.bf16.msra.mxu1 %v8970_v27  ;;  %2647 = vmatprep.subr.bf16.mxu0 %v8975_v28  ;;  %v9048_v27 = vld [vmem:[#allocation2 + $0x570] ss:$8 sps:$4 sm:$0xff]   ;;  %v9053_v28 = vld [vmem:[#allocation2 + $0x464] ss:$8 sps:$4 sm:$0xff]  }
  0xcd   :  { %2690 = vmatprep.subr.bf16.mxu1 %v8978_v29  ;;  %v9056_v29 = vld [vmem:[#allocation2 + $0x564] ss:$8 sps:$4 sm:$0xff]  }
  0xcf   :  { %2648 = vmatpush1.bf16.msra.mxu0 %v8973_v30  ;;  %v9051_v30 = vld [vmem:[#allocation2 + $0x460] ss:$8 sps:$4 sm:$0xff]  }
  0xd0   :  { %2691 = vmatpush1.bf16.msra.mxu1 %v8976_v31  ;;  %2649 = vmatprep.subr.bf16.mxu0 %v8981_v32  ;;  %v9054_v31 = vld [vmem:[#allocation2 + $0x560] ss:$8 sps:$4 sm:$0xff]   ;;  %v9059_v32 = vld [vmem:[#allocation2 + $0x454] ss:$8 sps:$4 sm:$0xff]  }
  0xd1   :  { %2692 = vmatprep.subr.bf16.mxu1 %v8984_v33  ;;  %v9062_v33 = vld [vmem:[#allocation2 + $0x554] ss:$8 sps:$4 sm:$0xff]  }
  0xd3   :  { %2650 = vmatpush1.bf16.msra.mxu0 %v8979_v34  ;;  %v174_v34 = vld [vmem:[%s10549_s0 + $0x48] sm:$0xff] }
  0xd4   :  { %2693 = vmatpush1.bf16.msra.mxu1 %v8982_v35  ;;  %2651 = vmatprep.subr.bf16.mxu0 %v8987_v36  ;;  %v198_v35 = vld [vmem:[%s10549_s0 + $0x108] sm:$0xff] }
  0xd5   :  { %2694 = vmatprep.subr.bf16.mxu1 %v8990_v37  ;;  %v222_v36 = vpack.c.bf16 %v198_v35, %v174_v34  ;;  %v176_v37 = vld [vmem:[%s10549_s0 + $0x58] sm:$0xff] }
  0xd6   :  { %v9143_v34 = vld [vmem:[#allocation2 + $0x674] ss:$8 sps:$4 sm:$0xff]  }
  0xd7   :  { %2652 = vmatpush1.bf16.msra.mxu0 %v8985_v38  ;;  %v200_v38 = vld [vmem:[%s10549_s0 + $0x118] sm:$0xff] }
  0xd8   :  { %2695 = vmatpush1.bf16.msra.mxu1 %v8988_v39  ;;  %2653 = vmatprep.subr.bf16.mxu0 %v8993_v43  ;;  %v9057_v39 = vld [vmem:[#allocation2 + $0x450] ss:$8 sps:$4 sm:$0xff]   ;;  %v224_v41 = vpack.c.bf16 %v200_v38, %v176_v37  ;;  %v9068_v43 = vld [vmem:[#allocation2 + $0x544] ss:$8 sps:$4 sm:$0xff]   ;;  %v9146_v35 = vld [vmem:[#allocation2 + $0x774] ss:$8 sps:$4 sm:$0xff]  }
  0xd9   :  { %2696 = vmatprep.subr.bf16.mxu1 %v8996_v44  ;;  %v9063_v44 = vld [vmem:[#allocation2 + $0x440] ss:$8 sps:$4 sm:$0xff]   ;;  %v9141_v37 = vld [vmem:[#allocation2 + $0x670] ss:$8 sps:$4 sm:$0xff]  }
  0xda   :  { %v202_v38 = vld [vmem:[%s10549_s0 + $0x128] sm:$0xff] }
  0xdb   :  { %2654 = vmatpush1.bf16.msra.mxu0 %v8991_v48  ;;  %v9069_v48 = vld [vmem:[#allocation2 + $0x430] ss:$8 sps:$4 sm:$0xff]  }
  0xdc   :  { %2697 = vmatpush1.bf16.msra.mxu1 %v8994_v49  ;;  %2655 = vmatprep.subr.bf16.mxu0 %v8999_v50  ;;  %v9072_v49 = vld [vmem:[#allocation2 + $0x530] ss:$8 sps:$4 sm:$0xff]   ;;  %v9077_v50 = vld [vmem:[#allocation2 + $0x424] ss:$8 sps:$4 sm:$0xff]  }
  0xdd   :  { %2698 = vmatprep.subr.bf16.mxu1 %v9002_v51  ;;  %v9080_v51 = vld [vmem:[#allocation2 + $0x524] ss:$8 sps:$4 sm:$0xff]  }
  0xdf   :  { %2656 = vmatpush2.bf16.msra.mxu0 %v8997_v52  ;;  %v9075_v52 = vld [vmem:[#allocation2 + $0x420] ss:$8 sps:$4 sm:$0xff]  }
  0xe0   :  { %2699 = vmatpush2.bf16.msra.mxu1 %v9000_v53  ;;  %2657 = vmatprep.subr.bf16.mxu0 %v9005_v54  ;;  %v9078_v53 = vld [vmem:[#allocation2 + $0x520] ss:$8 sps:$4 sm:$0xff]   ;;  %v9083_v54 = vld [vmem:[#allocation2 + $0x414] ss:$8 sps:$4 sm:$0xff]  }
  0xe1   :  { %2700 = vmatprep.subr.bf16.mxu1 %v9008_v55  ;;  %v9086_v55 = vld [vmem:[#allocation2 + $0x514] ss:$8 sps:$4 sm:$0xff]  }
  0xe3   :  { %2658 = vmatpush2.bf16.msra.mxu0 %v9003_v56  ;;  %v9081_v56 = vld [vmem:[#allocation2 + $0x410] ss:$8 sps:$4 sm:$0xff]  }
  0xe4   :  { %2701 = vmatpush2.bf16.msra.mxu1 %v9006_v57  ;;  %2659 = vmatprep.subr.bf16.mxu0 %v9011_v58  ;;  %v9084_v57 = vld [vmem:[#allocation2 + $0x510] ss:$8 sps:$4 sm:$0xff]   ;;  %v9089_v58 = vld [vmem:[#allocation2 + $0x404] ss:$8 sps:$4 sm:$0xff]  }
  0xe5   :  { %2702 = vmatprep.subr.bf16.mxu1 %v9014_v59  ;;  %v9092_v59 = vld [vmem:[#allocation2 + $0x504] ss:$8 sps:$4 sm:$0xff]  }
  0xe7   :  { %2660 = vmatpush2.bf16.msra.mxu0 %v9009_v60  ;;  %v9087_v60 = vld [vmem:[#allocation2 + $0x400] ss:$8 sps:$4 sm:$0xff]  }
  0xe8   :  { %2703 = vmatpush2.bf16.msra.mxu1 %v9012_v61  ;;  %2661 = vmatprep.subr.bf16.mxu0 %v9017_v62  ;;  %v9090_v61 = vld [vmem:[#allocation2 + $0x500] ss:$8 sps:$4 sm:$0xff]   ;;  %v9095_v62 = vld [vmem:[#allocation2 + $0x4f4] ss:$8 sps:$4 sm:$0xff]  }
  0xe9   :  { %2704 = vmatprep.subr.bf16.mxu1 %v9020_v63  ;;  %v9098_v63 = vld [vmem:[#allocation2 + $0x5f4] ss:$8 sps:$4 sm:$0xff]  }
  0xeb   :  { %2662 = vmatpush2.bf16.msra.mxu0 %v9015_v0  ;;  %v9093_v0 = vld [vmem:[#allocation2 + $0x4f0] ss:$8 sps:$4 sm:$0xff]  }
  0xec   :  { %2705 = vmatpush2.bf16.msra.mxu1 %v9018_v1  ;;  %2663 = vmatprep.subr.bf16.mxu0 %v9023_v2  ;;  %v9096_v1 = vld [vmem:[#allocation2 + $0x5f0] ss:$8 sps:$4 sm:$0xff]   ;;  %v9101_v2 = vld [vmem:[#allocation2 + $0x4e4] ss:$8 sps:$4 sm:$0xff]  }
  0xed   :  { %2706 = vmatprep.subr.bf16.mxu1 %v9026_v3  ;;  %v9104_v3 = vld [vmem:[#allocation2 + $0x5e4] ss:$8 sps:$4 sm:$0xff]  }
  0xef   :  { %2664 = vmatpush2.bf16.msra.mxu0 %v9021_v4  ;;  %v9099_v4 = vld [vmem:[#allocation2 + $0x4e0] ss:$8 sps:$4 sm:$0xff]  }
  0xf0   :  { %2707 = vmatpush2.bf16.msra.mxu1 %v9024_v5  ;;  %2665 = vmatprep.subr.bf16.mxu0 %v9029_v6  ;;  %v9102_v5 = vld [vmem:[#allocation2 + $0x5e0] ss:$8 sps:$4 sm:$0xff]   ;;  %v9107_v6 = vld [vmem:[#allocation2 + $0x4d4] ss:$8 sps:$4 sm:$0xff]  }
  0xf1   :  { %2708 = vmatprep.subr.bf16.mxu1 %v9032_v7  ;;  %v9110_v7 = vld [vmem:[#allocation2 + $0x5d4] ss:$8 sps:$4 sm:$0xff]  }
  0xf3   :  { %2666 = vmatpush2.bf16.msra.mxu0 %v9027_v8  ;;  %v9105_v8 = vld [vmem:[#allocation2 + $0x4d0] ss:$8 sps:$4 sm:$0xff]  }
  0xf4   :  { %2709 = vmatpush2.bf16.msra.mxu1 %v9030_v9  ;;  %2667 = vmatprep.subr.bf16.mxu0 %v9035_v10  ;;  %v9108_v9 = vld [vmem:[#allocation2 + $0x5d0] ss:$8 sps:$4 sm:$0xff]   ;;  %v9113_v10 = vld [vmem:[#allocation2 + $0x4c4] ss:$8 sps:$4 sm:$0xff]  }
  0xf5   :  { %2710 = vmatprep.subr.bf16.mxu1 %v9038_v11  ;;  %v9116_v11 = vld [vmem:[#allocation2 + $0x5c4] ss:$8 sps:$4 sm:$0xff]  }
  0xf7   :  { %2668 = vmatpush2.bf16.msra.mxu0 %v9033_v12  ;;  %v9111_v12 = vld [vmem:[#allocation2 + $0x4c0] ss:$8 sps:$4 sm:$0xff]  }
  0xf8   :  { %2711 = vmatpush2.bf16.msra.mxu1 %v9036_v13  ;;  %2669 = vmatprep.subr.bf16.mxu0 %v9041_v14  ;;  %v9114_v13 = vld [vmem:[#allocation2 + $0x5c0] ss:$8 sps:$4 sm:$0xff]   ;;  %v9119_v14 = vld [vmem:[#allocation2 + $0x4b4] ss:$8 sps:$4 sm:$0xff]  }
  0xf9   :  { %2712 = vmatprep.subr.bf16.mxu1 %v9044_v15  ;;  %v9122_v15 = vld [vmem:[#allocation2 + $0x5b4] ss:$8 sps:$4 sm:$0xff]  }
  0xfb   :  { %2670 = vmatpush2.bf16.msra.mxu0 %v9039_v16  ;;  %v9117_v16 = vld [vmem:[#allocation2 + $0x4b0] ss:$8 sps:$4 sm:$0xff]  }
  0xfc   :  { %2713 = vmatpush2.bf16.msra.mxu1 %v9042_v17  ;;  %2725 = vmatprep.subr.bf16.mxu0 %v9047_v22  ;;  %v9120_v17 = vld [vmem:[#allocation2 + $0x5b0] ss:$8 sps:$4 sm:$0xff]   ;;  %v9131_v22 = vld [vmem:[#allocation2 + $0x494] ss:$8 sps:$4 sm:$0xff]  }
  0xfd   :  { %2768 = vmatprep.subr.bf16.mxu1 %v9050_v23  ;;  %v9134_v23 = vld [vmem:[#allocation2 + $0x594] ss:$8 sps:$4 sm:$0xff]  }
  0xfe   :  { %2672 = vmatmul.mubr.bf16.vlgmr.msra.gmra.mxu0 %v217_v24  ;;  %v9129_v24 = vld [vmem:[#allocation2 + $0x490] ss:$8 sps:$4 sm:$0xff]  }
  0xff   :  { %2715 = vmatmul.mubr.bf16.vlgmr.msra.gmra.mxu1 %v219_v25  ;;  %2726 = vmatpush1.bf16.msra.mxu0 %v9045_v26  ;;  %v9132_v25 = vld [vmem:[#allocation2 + $0x590] ss:$8 sps:$4 sm:$0xff]   ;;  %v9137_v26 = vld [vmem:[#allocation2 + $0x484] ss:$8 sps:$4 sm:$0xff]  }
 0x100   :  { %2769 = vmatpush1.bf16.msra.mxu1 %v9048_v27  ;;  %2727 = vmatprep.subr.bf16.mxu0 %v9053_v28  ;;  %v9140_v27 = vld [vmem:[#allocation2 + $0x584] ss:$8 sps:$4 sm:$0xff]   ;;  %v9135_v28 = vld [vmem:[#allocation2 + $0x480] ss:$8 sps:$4 sm:$0xff]  }
 0x101   :  { %2770 = vmatprep.subr.bf16.mxu1 %v9056_v29  ;;  %2757 = vmatprep.mubr.bf16.mxu0 %v222_v36  ;;  %v9138_v29 = vld [vmem:[#allocation2 + $0x580] ss:$8 sps:$4 sm:$0xff]  }
 0x102   :  { %2800 = vmatprep.mubr.bf16.mxu1 %v224_v41  ;;  %v178_v36 = vld [vmem:[%s10549_s0 + $0x68] sm:$0xff] }
 0x103   :  { %2728 = vmatpush1.bf16.msra.mxu0 %v9051_v30  ;;  %v173_v30 = vld [vmem:[%s10549_s0 + $0x40] sm:$0xff] }
 0x104   :  { %2771 = vmatpush1.bf16.msra.mxu1 %v9054_v31  ;;  %2729 = vmatprep.subr.bf16.mxu0 %v9059_v32  ;;  %v197_v31 = vld [vmem:[%s10549_s0 + $0x100] sm:$0xff]  ;;  %v175_v32 = vld [vmem:[%s10549_s0 + $0x50] sm:$0xff] }
 0x105   :  { %2772 = vmatprep.subr.bf16.mxu1 %v9062_v33  ;;  %v199_v33 = vld [vmem:[%s10549_s0 + $0x110] sm:$0xff] }
 0x106   :  { %v223_v41 = vpack.c.bf16 %v199_v33, %v175_v32  ;;  %v9219_v32 = vld [vmem:[#allocation2 + $0x6a0] ss:$8 sps:$4 sm:$0xff]  }
 0x107   :  { %2730 = vmatpush1.bf16.msra.mxu0 %v9057_v39  ;;  %v180_v39 = vld [vmem:[%s10549_s0 + $0x78] sm:$0xff]  ;;  %v9222_v33 = vld [vmem:[#allocation2 + $0x7a0] ss:$8 sps:$4 sm:$0xff]  }
 0x108   :  { %2773 = vmatpush1.bf16.msra.mxu1 %v9060_v40  ;;  %2731 = vmatprep.subr.bf16.mxu0 %v9065_v42  ;;  %v221_v40 = vpack.c.bf16 %v197_v31, %v173_v30  ;;  %v204_v42 = vld [vmem:[%s10549_s0 + $0x138] sm:$0xff]  ;;  %v9221_v30 = vld [vmem:[#allocation2 + $0x6a4] ss:$8 sps:$4 sm:$0xff]  }
 0x109   :  { %2774 = vmatprep.subr.bf16.mxu1 %v9068_v43  ;;  %v9144_v43 = vld [vmem:[#allocation2 + $0x770] ss:$8 sps:$4 sm:$0xff]   ;;  %v9224_v31 = vld [vmem:[#allocation2 + $0x7a4] ss:$8 sps:$4 sm:$0xff]  }
 0x10b   :  { %2732 = vmatpush1.bf16.msra.mxu0 %v9063_v44  ;;  %v9149_v44 = vld [vmem:[#allocation2 + $0x664] ss:$8 sps:$4 sm:$0xff]  }
 0x10c   :  { %2775 = vmatpush1.bf16.msra.mxu1 %v9066_v45  ;;  %2733 = vmatprep.subr.bf16.mxu0 %v9071_v46  ;;  %v9152_v45 = vld [vmem:[#allocation2 + $0x764] ss:$8 sps:$4 sm:$0xff]   ;;  %v226_v46 = vpack.c.bf16 %v202_v38, %v178_v36  ;;  %v9225_v36 = vld [vmem:[#allocation2 + $0x690] ss:$8 sps:$4 sm:$0xff]  }
 0x10d   :  { %2776 = vmatprep.subr.bf16.mxu1 %v9074_v47  ;;  %v228_v47 = vpack.c.bf16 %v204_v42, %v180_v39  ;;  %v9233_v38 = vld [vmem:[#allocation2 + $0x684] ss:$8 sps:$4 sm:$0xff]  }
 0x10e   :  { %v9236_v39 = vld [vmem:[#allocation2 + $0x784] ss:$8 sps:$4 sm:$0xff]  }
 0x10f   :  { %2734 = vmatpush1.bf16.msra.mxu0 %v9069_v48  ;;  %v9147_v48 = vld [vmem:[#allocation2 + $0x660] ss:$8 sps:$4 sm:$0xff]  }
 0x110   :  { %2777 = vmatpush1.bf16.msra.mxu1 %v9072_v49  ;;  %2735 = vmatprep.subr.bf16.mxu0 %v9077_v50  ;;  %v9150_v49 = vld [vmem:[#allocation2 + $0x760] ss:$8 sps:$4 sm:$0xff]   ;;  %v9155_v50 = vld [vmem:[#allocation2 + $0x654] ss:$8 sps:$4 sm:$0xff]  }
 0x111   :  { %2778 = vmatprep.subr.bf16.mxu1 %v9080_v51  ;;  %v9158_v51 = vld [vmem:[#allocation2 + $0x754] ss:$8 sps:$4 sm:$0xff]   ;;  %v177_v42 = vld [vmem:[%s10549_s0 + $0x60] sm:$0xff] }
 0x113   :  { %2736 = vmatpush1.bf16.msra.mxu0 %v9075_v52  ;;  %v9153_v52 = vld [vmem:[#allocation2 + $0x650] ss:$8 sps:$4 sm:$0xff]  }
 0x114   :  { %2779 = vmatpush1.bf16.msra.mxu1 %v9078_v53  ;;  %2737 = vmatprep.subr.bf16.mxu0 %v9083_v54  ;;  %v9156_v53 = vld [vmem:[#allocation2 + $0x750] ss:$8 sps:$4 sm:$0xff]   ;;  %v9161_v54 = vld [vmem:[#allocation2 + $0x644] ss:$8 sps:$4 sm:$0xff]  }
 0x115   :  { %2780 = vmatprep.subr.bf16.mxu1 %v9086_v55  ;;  %v9164_v55 = vld [vmem:[#allocation2 + $0x744] ss:$8 sps:$4 sm:$0xff]  }
 0x117   :  { %2738 = vmatpush1.bf16.msra.mxu0 %v9081_v56  ;;  %v9159_v56 = vld [vmem:[#allocation2 + $0x640] ss:$8 sps:$4 sm:$0xff]  }
 0x118   :  { %2781 = vmatpush1.bf16.msra.mxu1 %v9084_v57  ;;  %2739 = vmatprep.subr.bf16.mxu0 %v9089_v58  ;;  %v9162_v57 = vld [vmem:[#allocation2 + $0x740] ss:$8 sps:$4 sm:$0xff]   ;;  %v9167_v58 = vld [vmem:[#allocation2 + $0x634] ss:$8 sps:$4 sm:$0xff]  }
 0x119   :  { %2782 = vmatprep.subr.bf16.mxu1 %v9092_v59  ;;  %v9170_v59 = vld [vmem:[#allocation2 + $0x734] ss:$8 sps:$4 sm:$0xff]  }
 0x11b   :  { %2740 = vmatpush1.bf16.msra.mxu0 %v9087_v60  ;;  %v9165_v60 = vld [vmem:[#allocation2 + $0x630] ss:$8 sps:$4 sm:$0xff]  }
 0x11c   :  { %2783 = vmatpush1.bf16.msra.mxu1 %v9090_v61  ;;  %2741 = vmatprep.subr.bf16.mxu0 %v9095_v62  ;;  %v9168_v61 = vld [vmem:[#allocation2 + $0x730] ss:$8 sps:$4 sm:$0xff]   ;;  %v9173_v62 = vld [vmem:[#allocation2 + $0x624] ss:$8 sps:$4 sm:$0xff]  }
 0x11d   :  { %2784 = vmatprep.subr.bf16.mxu1 %v9098_v63  ;;  %v9176_v63 = vld [vmem:[#allocation2 + $0x724] ss:$8 sps:$4 sm:$0xff]  }
 0x11f   :  { %2742 = vmatpush2.bf16.msra.mxu0 %v9093_v0  ;;  %v9171_v0 = vld [vmem:[#allocation2 + $0x620] ss:$8 sps:$4 sm:$0xff]  }
 0x120   :  { %2785 = vmatpush2.bf16.msra.mxu1 %v9096_v1  ;;  %2743 = vmatprep.subr.bf16.mxu0 %v9101_v2  ;;  %v9174_v1 = vld [vmem:[#allocation2 + $0x720] ss:$8 sps:$4 sm:$0xff]   ;;  %v9179_v2 = vld [vmem:[#allocation2 + $0x614] ss:$8 sps:$4 sm:$0xff]  }
 0x121   :  { %2786 = vmatprep.subr.bf16.mxu1 %v9104_v3  ;;  %v9182_v3 = vld [vmem:[#allocation2 + $0x714] ss:$8 sps:$4 sm:$0xff]  }
 0x123   :  { %2744 = vmatpush2.bf16.msra.mxu0 %v9099_v4  ;;  %v9177_v4 = vld [vmem:[#allocation2 + $0x610] ss:$8 sps:$4 sm:$0xff]  }
 0x124   :  { %2787 = vmatpush2.bf16.msra.mxu1 %v9102_v5  ;;  %2745 = vmatprep.subr.bf16.mxu0 %v9107_v6  ;;  %v9180_v5 = vld [vmem:[#allocation2 + $0x710] ss:$8 sps:$4 sm:$0xff]   ;;  %v9185_v6 = vld [vmem:[#allocation2 + $0x604] ss:$8 sps:$4 sm:$0xff]  }
 0x125   :  { %2788 = vmatprep.subr.bf16.mxu1 %v9110_v7  ;;  %v9188_v7 = vld [vmem:[#allocation2 + $0x704] ss:$8 sps:$4 sm:$0xff]  }
 0x127   :  { %2746 = vmatpush2.bf16.msra.mxu0 %v9105_v8  ;;  %v9183_v8 = vld [vmem:[#allocation2 + $0x600] ss:$8 sps:$4 sm:$0xff]  }
 0x128   :  { %2789 = vmatpush2.bf16.msra.mxu1 %v9108_v9  ;;  %2747 = vmatprep.subr.bf16.mxu0 %v9113_v10  ;;  %v9186_v9 = vld [vmem:[#allocation2 + $0x700] ss:$8 sps:$4 sm:$0xff]   ;;  %v9191_v10 = vld [vmem:[#allocation2 + $0x6f4] ss:$8 sps:$4 sm:$0xff]  }
 0x129   :  { %2790 = vmatprep.subr.bf16.mxu1 %v9116_v11  ;;  %v9194_v11 = vld [vmem:[#allocation2 + $0x7f4] ss:$8 sps:$4 sm:$0xff]  }
 0x12b   :  { %2748 = vmatpush2.bf16.msra.mxu0 %v9111_v12  ;;  %v9189_v12 = vld [vmem:[#allocation2 + $0x6f0] ss:$8 sps:$4 sm:$0xff]  }
 0x12c   :  { %2791 = vmatpush2.bf16.msra.mxu1 %v9114_v13  ;;  %2749 = vmatprep.subr.bf16.mxu0 %v9119_v14  ;;  %v9192_v13 = vld [vmem:[#allocation2 + $0x7f0] ss:$8 sps:$4 sm:$0xff]   ;;  %v9197_v14 = vld [vmem:[#allocation2 + $0x6e4] ss:$8 sps:$4 sm:$0xff]  }
 0x12d   :  { %2792 = vmatprep.subr.bf16.mxu1 %v9122_v15  ;;  %v9200_v15 = vld [vmem:[#allocation2 + $0x7e4] ss:$8 sps:$4 sm:$0xff]  }
 0x12f   :  { %2750 = vmatpush2.bf16.msra.mxu0 %v9117_v16  ;;  %v9195_v16 = vld [vmem:[#allocation2 + $0x6e0] ss:$8 sps:$4 sm:$0xff]  }
 0x130   :  { %2793 = vmatpush2.bf16.msra.mxu1 %v9120_v17  ;;  %2751 = vmatprep.subr.bf16.mxu0 %v9125_v18  ;;  %v9198_v17 = vld [vmem:[#allocation2 + $0x7e0] ss:$8 sps:$4 sm:$0xff]   ;;  %v9203_v18 = vld [vmem:[#allocation2 + $0x6d4] ss:$8 sps:$4 sm:$0xff]  }
 0x131   :  { %2794 = vmatprep.subr.bf16.mxu1 %v9128_v19  ;;  %v9206_v19 = vld [vmem:[#allocation2 + $0x7d4] ss:$8 sps:$4 sm:$0xff]  }
 0x133   :  { %2752 = vmatpush2.bf16.msra.mxu0 %v9123_v20  ;;  %v9201_v20 = vld [vmem:[#allocation2 + $0x6d0] ss:$8 sps:$4 sm:$0xff]  }
 0x134   :  { %2795 = vmatpush2.bf16.msra.mxu1 %v9126_v21  ;;  %2753 = vmatprep.subr.bf16.mxu0 %v9131_v22  ;;  %v9204_v21 = vld [vmem:[#allocation2 + $0x7d0] ss:$8 sps:$4 sm:$0xff]   ;;  %v9209_v22 = vld [vmem:[#allocation2 + $0x6c4] ss:$8 sps:$4 sm:$0xff]  }
 0x135   :  { %2796 = vmatprep.subr.bf16.mxu1 %v9134_v23  ;;  %v9212_v23 = vld [vmem:[#allocation2 + $0x7c4] ss:$8 sps:$4 sm:$0xff]  }
 0x137   :  { %2754 = vmatpush2.bf16.msra.mxu0 %v9129_v24  ;;  %v9207_v24 = vld [vmem:[#allocation2 + $0x6c0] ss:$8 sps:$4 sm:$0xff]  }
 0x138   :  { %2797 = vmatpush2.bf16.msra.mxu1 %v9132_v25  ;;  %2755 = vmatprep.subr.bf16.mxu0 %v9137_v26  ;;  %v9210_v25 = vld [vmem:[#allocation2 + $0x7c0] ss:$8 sps:$4 sm:$0xff]   ;;  %v9215_v26 = vld [vmem:[#allocation2 + $0x6b4] ss:$8 sps:$4 sm:$0xff]  }
 0x139   :  { %2798 = vmatprep.subr.bf16.mxu1 %v9140_v27  ;;  %v9218_v27 = vld [vmem:[#allocation2 + $0x7b4] ss:$8 sps:$4 sm:$0xff]  }
 0x13b   :  { %2756 = vmatpush2.bf16.msra.mxu0 %v9135_v28  ;;  %v9213_v28 = vld [vmem:[#allocation2 + $0x6b0] ss:$8 sps:$4 sm:$0xff]  }
 0x13c   :  { %2799 = vmatpush2.bf16.msra.mxu1 %v9138_v29  ;;  %2811 = vmatprep.subr.bf16.mxu0 %v9143_v34  ;;  %v9216_v29 = vld [vmem:[#allocation2 + $0x7b0] ss:$8 sps:$4 sm:$0xff]   ;;  %v9227_v34 = vld [vmem:[#allocation2 + $0x694] ss:$8 sps:$4 sm:$0xff]  }
 0x13d   :  { %2854 = vmatprep.subr.bf16.mxu1 %v9146_v35  ;;  %v9230_v35 = vld [vmem:[#allocation2 + $0x794] ss:$8 sps:$4 sm:$0xff]  }
 0x13e   :  { %2758 = vmatmul.mubr.bf16.vlgmr.msra.gmra.mxu0 %v221_v40  ;;  %v9231_v40 = vld [vmem:[#allocation2 + $0x680] ss:$8 sps:$4 sm:$0xff]  }
 0x13f   :  { %2801 = vmatmul.mubr.bf16.vlgmr.msra.gmra.mxu1 %v223_v41  ;;  %2812 = vmatpush1.bf16.msra.mxu0 %v9141_v37  ;;  %v9228_v37 = vld [vmem:[#allocation2 + $0x790] ss:$8 sps:$4 sm:$0xff]   ;;  %v9234_v41 = vld [vmem:[#allocation2 + $0x780] ss:$8 sps:$4 sm:$0xff]  }
 0x140   :  { %2855 = vmatpush1.bf16.msra.mxu1 %v9144_v43  ;;  %2813 = vmatprep.subr.bf16.mxu0 %v9149_v44  ;;  %v201_v43 = vld [vmem:[%s10549_s0 + $0x120] sm:$0xff]  ;;  %v179_v44 = vld [vmem:[%s10549_s0 + $0x70] sm:$0xff] }
 0x141   :  { %2856 = vmatprep.subr.bf16.mxu1 %v9152_v45  ;;  %2843 = vmatprep.mubr.bf16.mxu0 %v226_v46  ;;  %v203_v45 = vld [vmem:[%s10549_s0 + $0x130] sm:$0xff] }
 0x142   :  { %2886 = vmatprep.mubr.bf16.mxu1 %v228_v47  ;;  %v9239_v46 = vld [vmem:[#allocation2 + $0x874] ss:$8 sps:$4 sm:$0xff]  }
 0x143   :  { %2814 = vmatpush1.bf16.msra.mxu0 %v9147_v48  ;;  %v9242_v47 = vld [vmem:[#allocation2 + $0x974] ss:$8 sps:$4 sm:$0xff]   ;;  %v182_v48 = vld [vmem:[%s10549_s0 + $0x88] sm:$0xff] }
 0x144   :  { %2857 = vmatpush1.bf16.msra.mxu1 %v9150_v49  ;;  %2815 = vmatprep.subr.bf16.mxu0 %v9155_v50  ;;  %v9237_v49 = vld [vmem:[#allocation2 + $0x870] ss:$8 sps:$4 sm:$0xff]   ;;  %v206_v50 = vld [vmem:[%s10549_s0 + $0x148] sm:$0xff] }
 0x145   :  { %2858 = vmatprep.subr.bf16.mxu1 %v9158_v51  ;;  %v184_v51 = vld [vmem:[%s10549_s0 + $0x98] sm:$0xff] }
 0x147   :  { %2816 = vmatpush1.bf16.msra.mxu0 %v9153_v52  ;;  %v225_v52 = vpack.c.bf16 %v201_v43, %v177_v42  ;;  %v9317_v42 = vld [vmem:[#allocation2 + $0x8a4] ss:$8 sps:$4 sm:$0xff]  }
 0x148   :  { %2859 = vmatpush1.bf16.msra.mxu1 %v9156_v53  ;;  %2817 = vmatprep.subr.bf16.mxu0 %v9161_v54  ;;  %v227_v53 = vpack.c.bf16 %v203_v45, %v179_v44  ;;  %v208_v54 = vld [vmem:[%s10549_s0 + $0x158] sm:$0xff]  ;;  %v9320_v43 = vld [vmem:[#allocation2 + $0x9a4] ss:$8 sps:$4 sm:$0xff]   ;;  %v9315_v44 = vld [vmem:[#allocation2 + $0x8a0] ss:$8 sps:$4 sm:$0xff]  }
 0x149   :  { %2860 = vmatprep.subr.bf16.mxu1 %v9164_v55  ;;  %v9240_v55 = vld [vmem:[#allocation2 + $0x970] ss:$8 sps:$4 sm:$0xff]   ;;  %v9318_v45 = vld [vmem:[#allocation2 + $0x9a0] ss:$8 sps:$4 sm:$0xff]  }
 0x14b   :  { %2818 = vmatpush1.bf16.msra.mxu0 %v9159_v56  ;;  %v9245_v56 = vld [vmem:[#allocation2 + $0x864] ss:$8 sps:$4 sm:$0xff]  }
 0x14c   :  { %2861 = vmatpush1.bf16.msra.mxu1 %v9162_v57  ;;  %2819 = vmatprep.subr.bf16.mxu0 %v9167_v58  ;;  %v9248_v57 = vld [vmem:[#allocation2 + $0x964] ss:$8 sps:$4 sm:$0xff]   ;;  %v230_v58 = vpack.c.bf16 %v206_v50, %v182_v48  ;;  %v9321_v48 = vld [vmem:[#allocation2 + $0x890] ss:$8 sps:$4 sm:$0xff]  }
 0x14d   :  { %2862 = vmatprep.subr.bf16.mxu1 %v9170_v59  ;;  %v232_v59 = vpack.c.bf16 %v208_v54, %v184_v51  ;;  %v9329_v50 = vld [vmem:[#allocation2 + $0x884] ss:$8 sps:$4 sm:$0xff]  }
 0x14e   :  { %v9332_v51 = vld [vmem:[#allocation2 + $0x984] ss:$8 sps:$4 sm:$0xff]  }
 0x14f   :  { %2820 = vmatpush1.bf16.msra.mxu0 %v9165_v60  ;;  %v9243_v60 = vld [vmem:[#allocation2 + $0x860] ss:$8 sps:$4 sm:$0xff]  }
 0x150   :  { %2863 = vmatpush1.bf16.msra.mxu1 %v9168_v61  ;;  %2821 = vmatprep.subr.bf16.mxu0 %v9173_v62  ;;  %v9246_v61 = vld [vmem:[#allocation2 + $0x960] ss:$8 sps:$4 sm:$0xff]   ;;  %v9251_v62 = vld [vmem:[#allocation2 + $0x854] ss:$8 sps:$4 sm:$0xff]  }
 0x151   :  { %2864 = vmatprep.subr.bf16.mxu1 %v9176_v63  ;;  %v9254_v63 = vld [vmem:[#allocation2 + $0x954] ss:$8 sps:$4 sm:$0xff]   ;;  %v181_v54 = vld [vmem:[%s10549_s0 + $0x80] sm:$0xff] }
 0x153   :  { %2822 = vmatpush1.bf16.msra.mxu0 %v9171_v0  ;;  %v9249_v0 = vld [vmem:[#allocation2 + $0x850] ss:$8 sps:$4 sm:$0xff]  }
 0x154   :  { %2865 = vmatpush1.bf16.msra.mxu1 %v9174_v1  ;;  %2823 = vmatprep.subr.bf16.mxu0 %v9179_v2  ;;  %v9252_v1 = vld [vmem:[#allocation2 + $0x950] ss:$8 sps:$4 sm:$0xff]   ;;  %v9257_v2 = vld [vmem:[#allocation2 + $0x844] ss:$8 sps:$4 sm:$0xff]  }
 0x155   :  { %2866 = vmatprep.subr.bf16.mxu1 %v9182_v3  ;;  %v9260_v3 = vld [vmem:[#allocation2 + $0x944] ss:$8 sps:$4 sm:$0xff]  }
 0x157   :  { %2824 = vmatpush1.bf16.msra.mxu0 %v9177_v4  ;;  %v9255_v4 = vld [vmem:[#allocation2 + $0x840] ss:$8 sps:$4 sm:$0xff]  }
 0x158   :  { %2867 = vmatpush1.bf16.msra.mxu1 %v9180_v5  ;;  %2825 = vmatprep.subr.bf16.mxu0 %v9185_v6  ;;  %v9258_v5 = vld [vmem:[#allocation2 + $0x940] ss:$8 sps:$4 sm:$0xff]   ;;  %v9263_v6 = vld [vmem:[#allocation2 + $0x834] ss:$8 sps:$4 sm:$0xff]  }
 0x159   :  { %2868 = vmatprep.subr.bf16.mxu1 %v9188_v7  ;;  %v9266_v7 = vld [vmem:[#allocation2 + $0x934] ss:$8 sps:$4 sm:$0xff]  }
 0x15b   :  { %2826 = vmatpush1.bf16.msra.mxu0 %v9183_v8  ;;  %v9261_v8 = vld [vmem:[#allocation2 + $0x830] ss:$8 sps:$4 sm:$0xff]  }
 0x15c   :  { %2869 = vmatpush1.bf16.msra.mxu1 %v9186_v9  ;;  %2827 = vmatprep.subr.bf16.mxu0 %v9191_v10  ;;  %v9264_v9 = vld [vmem:[#allocation2 + $0x930] ss:$8 sps:$4 sm:$0xff]   ;;  %v9269_v10 = vld [vmem:[#allocation2 + $0x824] ss:$8 sps:$4 sm:$0xff]  }
 0x15d   :  { %2870 = vmatprep.subr.bf16.mxu1 %v9194_v11  ;;  %v9272_v11 = vld [vmem:[#allocation2 + $0x924] ss:$8 sps:$4 sm:$0xff]  }
 0x15f   :  { %2828 = vmatpush2.bf16.msra.mxu0 %v9189_v12  ;;  %v9267_v12 = vld [vmem:[#allocation2 + $0x820] ss:$8 sps:$4 sm:$0xff]  }
 0x160   :  { %2871 = vmatpush2.bf16.msra.mxu1 %v9192_v13  ;;  %2829 = vmatprep.subr.bf16.mxu0 %v9197_v14  ;;  %v9270_v13 = vld [vmem:[#allocation2 + $0x920] ss:$8 sps:$4 sm:$0xff]   ;;  %v9275_v14 = vld [vmem:[#allocation2 + $0x814] ss:$8 sps:$4 sm:$0xff]  }
 0x161   :  { %2872 = vmatprep.subr.bf16.mxu1 %v9200_v15  ;;  %v9278_v15 = vld [vmem:[#allocation2 + $0x914] ss:$8 sps:$4 sm:$0xff]  }
 0x163   :  { %2830 = vmatpush2.bf16.msra.mxu0 %v9195_v16  ;;  %v9273_v16 = vld [vmem:[#allocation2 + $0x810] ss:$8 sps:$4 sm:$0xff]  }
 0x164   :  { %2873 = vmatpush2.bf16.msra.mxu1 %v9198_v17  ;;  %2831 = vmatprep.subr.bf16.mxu0 %v9203_v18  ;;  %v9276_v17 = vld [vmem:[#allocation2 + $0x910] ss:$8 sps:$4 sm:$0xff]   ;;  %v9281_v18 = vld [vmem:[#allocation2 + $0x804] ss:$8 sps:$4 sm:$0xff]  }
 0x165   :  { %2874 = vmatprep.subr.bf16.mxu1 %v9206_v19  ;;  %v9284_v19 = vld [vmem:[#allocation2 + $0x904] ss:$8 sps:$4 sm:$0xff]  }
 0x167   :  { %2832 = vmatpush2.bf16.msra.mxu0 %v9201_v20  ;;  %v9279_v20 = vld [vmem:[#allocation2 + $0x800] ss:$8 sps:$4 sm:$0xff]  }
 0x168   :  { %2875 = vmatpush2.bf16.msra.mxu1 %v9204_v21  ;;  %2833 = vmatprep.subr.bf16.mxu0 %v9209_v22  ;;  %v9282_v21 = vld [vmem:[#allocation2 + $0x900] ss:$8 sps:$4 sm:$0xff]   ;;  %v9287_v22 = vld [vmem:[#allocation2 + $0x8f4] ss:$8 sps:$4 sm:$0xff]  }
 0x169   :  { %2876 = vmatprep.subr.bf16.mxu1 %v9212_v23  ;;  %v9290_v23 = vld [vmem:[#allocation2 + $0x9f4] ss:$8 sps:$4 sm:$0xff]  }
 0x16b   :  { %2834 = vmatpush2.bf16.msra.mxu0 %v9207_v24  ;;  %v9285_v24 = vld [vmem:[#allocation2 + $0x8f0] ss:$8 sps:$4 sm:$0xff]  }
 0x16c   :  { %2877 = vmatpush2.bf16.msra.mxu1 %v9210_v25  ;;  %2835 = vmatprep.subr.bf16.mxu0 %v9215_v26  ;;  %v9288_v25 = vld [vmem:[#allocation2 + $0x9f0] ss:$8 sps:$4 sm:$0xff]   ;;  %v9293_v26 = vld [vmem:[#allocation2 + $0x8e4] ss:$8 sps:$4 sm:$0xff]  }
 0x16d   :  { %2878 = vmatprep.subr.bf16.mxu1 %v9218_v27  ;;  %v9296_v27 = vld [vmem:[#allocation2 + $0x9e4] ss:$8 sps:$4 sm:$0xff]  }
 0x16f   :  { %2836 = vmatpush2.bf16.msra.mxu0 %v9213_v28  ;;  %v9291_v28 = vld [vmem:[#allocation2 + $0x8e0] ss:$8 sps:$4 sm:$0xff]  }
 0x170   :  { %2879 = vmatpush2.bf16.msra.mxu1 %v9216_v29  ;;  %2837 = vmatprep.subr.bf16.mxu0 %v9221_v30  ;;  %v9294_v29 = vld [vmem:[#allocation2 + $0x9e0] ss:$8 sps:$4 sm:$0xff]   ;;  %v9299_v30 = vld [vmem:[#allocation2 + $0x8d4] ss:$8 sps:$4 sm:$0xff]  }
 0x171   :  { %2880 = vmatprep.subr.bf16.mxu1 %v9224_v31  ;;  %v9302_v31 = vld [vmem:[#allocation2 + $0x9d4] ss:$8 sps:$4 sm:$0xff]  }
 0x173   :  { %2838 = vmatpush2.bf16.msra.mxu0 %v9219_v32  ;;  %v9297_v32 = vld [vmem:[#allocation2 + $0x8d0] ss:$8 sps:$4 sm:$0xff]  }
 0x174   :  { %2881 = vmatpush2.bf16.msra.mxu1 %v9222_v33  ;;  %2839 = vmatprep.subr.bf16.mxu0 %v9227_v34  ;;  %v9300_v33 = vld [vmem:[#allocation2 + $0x9d0] ss:$8 sps:$4 sm:$0xff]   ;;  %v9305_v34 = vld [vmem:[#allocation2 + $0x8c4] ss:$8 sps:$4 sm:$0xff]  }
 0x175   :  { %2882 = vmatprep.subr.bf16.mxu1 %v9230_v35  ;;  %v9308_v35 = vld [vmem:[#allocation2 + $0x9c4] ss:$8 sps:$4 sm:$0xff]  }
 0x177   :  { %2840 = vmatpush2.bf16.msra.mxu0 %v9225_v36  ;;  %v9303_v36 = vld [vmem:[#allocation2 + $0x8c0] ss:$8 sps:$4 sm:$0xff]  }
 0x178   :  { %2883 = vmatpush2.bf16.msra.mxu1 %v9228_v37  ;;  %2841 = vmatprep.subr.bf16.mxu0 %v9233_v38  ;;  %v9306_v37 = vld [vmem:[#allocation2 + $0x9c0] ss:$8 sps:$4 sm:$0xff]   ;;  %v9311_v38 = vld [vmem:[#allocation2 + $0x8b4] ss:$8 sps:$4 sm:$0xff]  }
 0x179   :  { %2884 = vmatprep.subr.bf16.mxu1 %v9236_v39  ;;  %v9314_v39 = vld [vmem:[#allocation2 + $0x9b4] ss:$8 sps:$4 sm:$0xff]  }
 0x17b   :  { %2842 = vmatpush2.bf16.msra.mxu0 %v9231_v40  ;;  %v9309_v40 = vld [vmem:[#allocation2 + $0x8b0] ss:$8 sps:$4 sm:$0xff]  }
 0x17c   :  { %2885 = vmatpush2.bf16.msra.mxu1 %v9234_v41  ;;  %2897 = vmatprep.subr.bf16.mxu0 %v9239_v46  ;;  %v9312_v41 = vld [vmem:[#allocation2 + $0x9b0] ss:$8 sps:$4 sm:$0xff]   ;;  %v9323_v46 = vld [vmem:[#allocation2 + $0x894] ss:$8 sps:$4 sm:$0xff]  }
 0x17d   :  { %2940 = vmatprep.subr.bf16.mxu1 %v9242_v47  ;;  %v9326_v47 = vld [vmem:[#allocation2 + $0x994] ss:$8 sps:$4 sm:$0xff]  }
 0x17e   :  { %2844 = vmatmul.mubr.bf16.vlgmr.msra.gmra.mxu0 %v225_v52  ;;  %v9327_v52 = vld [vmem:[#allocation2 + $0x880] ss:$8 sps:$4 sm:$0xff]  }
 0x17f   :  { %2887 = vmatmul.mubr.bf16.vlgmr.msra.gmra.mxu1 %v227_v53  ;;  %2898 = vmatpush1.bf16.msra.mxu0 %v9237_v49  ;;  %v9324_v49 = vld [vmem:[#allocation2 + $0x990] ss:$8 sps:$4 sm:$0xff]   ;;  %v9330_v53 = vld [vmem:[#allocation2 + $0x980] ss:$8 sps:$4 sm:$0xff]  }
 0x180   :  { %2941 = vmatpush1.bf16.msra.mxu1 %v9240_v55  ;;  %2899 = vmatprep.subr.bf16.mxu0 %v9245_v56  ;;  %v205_v55 = vld [vmem:[%s10549_s0 + $0x140] sm:$0xff]  ;;  %v183_v56 = vld [vmem:[%s10549_s0 + $0x90] sm:$0xff] }
 0x181   :  { %2942 = vmatprep.subr.bf16.mxu1 %v9248_v57  ;;  %2929 = vmatprep.mubr.bf16.mxu0 %v230_v58  ;;  %v207_v57 = vld [vmem:[%s10549_s0 + $0x150] sm:$0xff] }
 0x182   :  { %2972 = vmatprep.mubr.bf16.mxu1 %v232_v59  ;;  %v9335_v58 = vld [vmem:[#allocation2 + $0xa74] ss:$8 sps:$4 sm:$0xff]  }
 0x183   :  { %2900 = vmatpush1.bf16.msra.mxu0 %v9243_v60  ;;  %v9338_v59 = vld [vmem:[#allocation2 + $0xb74] ss:$8 sps:$4 sm:$0xff]   ;;  %v186_v60 = vld [vmem:[%s10549_s0 + $0xa8] sm:$0xff] }
 0x184   :  { %2943 = vmatpush1.bf16.msra.mxu1 %v9246_v61  ;;  %2901 = vmatprep.subr.bf16.mxu0 %v9251_v62  ;;  %v210_v61 = vld [vmem:[%s10549_s0 + $0x168] sm:$0xff]  ;;  %v188_v62 = vld [vmem:[%s10549_s0 + $0xb8] sm:$0xff] }
 0x185   :  { %2944 = vmatprep.subr.bf16.mxu1 %v9254_v63  ;;  %v212_v63 = vld [vmem:[%s10549_s0 + $0x178] sm:$0xff] }
 0x187   :  { %2902 = vmatpush1.bf16.msra.mxu0 %v9249_v0  ;;  %v9333_v0 = vld [vmem:[#allocation2 + $0xa70] ss:$8 sps:$4 sm:$0xff]  }
 0x188   :  { %2945 = vmatpush1.bf16.msra.mxu1 %v9252_v1  ;;  %2903 = vmatprep.subr.bf16.mxu0 %v9257_v2  ;;  %v9336_v1 = vld [vmem:[#allocation2 + $0xb70] ss:$8 sps:$4 sm:$0xff]   ;;  %v229_v2 = vpack.c.bf16 %v205_v55, %v181_v54  ;;  %v9413_v54 = vld [vmem:[#allocation2 + $0xaa4] ss:$8 sps:$4 sm:$0xff]  }
 0x189   :  { %2946 = vmatprep.subr.bf16.mxu1 %v9260_v3  ;;  %v231_v3 = vpack.c.bf16 %v207_v57, %v183_v56  ;;  %v9416_v55 = vld [vmem:[#allocation2 + $0xba4] ss:$8 sps:$4 sm:$0xff]   ;;  %v9411_v56 = vld [vmem:[#allocation2 + $0xaa0] ss:$8 sps:$4 sm:$0xff]  }
 0x18a   :  { %v9414_v57 = vld [vmem:[#allocation2 + $0xba0] ss:$8 sps:$4 sm:$0xff]  }
 0x18b   :  { %2904 = vmatpush1.bf16.msra.mxu0 %v9255_v4  ;;  %v9341_v4 = vld [vmem:[#allocation2 + $0xa64] ss:$8 sps:$4 sm:$0xff]  }
 0x18c   :  { %2947 = vmatpush1.bf16.msra.mxu1 %v9258_v5  ;;  %2905 = vmatprep.subr.bf16.mxu0 %v9263_v6  ;;  %v9344_v5 = vld [vmem:[#allocation2 + $0xb64] ss:$8 sps:$4 sm:$0xff]   ;;  %v9339_v6 = vld [vmem:[#allocation2 + $0xa60] ss:$8 sps:$4 sm:$0xff]  }
 0x18d   :  { %2948 = vmatprep.subr.bf16.mxu1 %v9266_v7  ;;  %v9342_v7 = vld [vmem:[#allocation2 + $0xb60] ss:$8 sps:$4 sm:$0xff]  }
 0x18f   :  { %2906 = vmatpush1.bf16.msra.mxu0 %v9261_v8  ;;  %v234_v8 = vpack.c.bf16 %v210_v61, %v186_v60  ;;  %v9417_v60 = vld [vmem:[#allocation2 + $0xa90] ss:$8 sps:$4 sm:$0xff]  }
 0x190   :  { %2949 = vmatpush1.bf16.msra.mxu1 %v9264_v9  ;;  %2907 = vmatprep.subr.bf16.mxu0 %v9269_v10  ;;  %v236_v9 = vpack.c.bf16 %v212_v63, %v188_v62  ;;  %v9347_v10 = vld [vmem:[#allocation2 + $0xa54] ss:$8 sps:$4 sm:$0xff]   ;;  %v9420_v61 = vld [vmem:[#allocation2 + $0xb90] ss:$8 sps:$4 sm:$0xff]   ;;  %v9425_v62 = vld [vmem:[#allocation2 + $0xa84] ss:$8 sps:$4 sm:$0xff]  }
 0x191   :  { %2950 = vmatprep.subr.bf16.mxu1 %v9272_v11  ;;  %v9350_v11 = vld [vmem:[#allocation2 + $0xb54] ss:$8 sps:$4 sm:$0xff]   ;;  %v9428_v63 = vld [vmem:[#allocation2 + $0xb84] ss:$8 sps:$4 sm:$0xff]  }
 0x193   :  { %2908 = vmatpush1.bf16.msra.mxu0 %v9267_v12  ;;  %v9345_v12 = vld [vmem:[#allocation2 + $0xa50] ss:$8 sps:$4 sm:$0xff]  }
 0x194   :  { %2951 = vmatpush1.bf16.msra.mxu1 %v9270_v13  ;;  %2909 = vmatprep.subr.bf16.mxu0 %v9275_v14  ;;  %v9348_v13 = vld [vmem:[#allocation2 + $0xb50] ss:$8 sps:$4 sm:$0xff]   ;;  %v9353_v14 = vld [vmem:[#allocation2 + $0xa44] ss:$8 sps:$4 sm:$0xff]  }
 0x195   :  { %2952 = vmatprep.subr.bf16.mxu1 %v9278_v15  ;;  %v9356_v15 = vld [vmem:[#allocation2 + $0xb44] ss:$8 sps:$4 sm:$0xff]  }
 0x197   :  { %2910 = vmatpush1.bf16.msra.mxu0 %v9273_v16  ;;  %v9351_v16 = vld [vmem:[#allocation2 + $0xa40] ss:$8 sps:$4 sm:$0xff]  }
 0x198   :  { %2953 = vmatpush1.bf16.msra.mxu1 %v9276_v17  ;;  %2911 = vmatprep.subr.bf16.mxu0 %v9281_v18  ;;  %v9354_v17 = vld [vmem:[#allocation2 + $0xb40] ss:$8 sps:$4 sm:$0xff]   ;;  %v9359_v18 = vld [vmem:[#allocation2 + $0xa34] ss:$8 sps:$4 sm:$0xff]  }
 0x199   :  { %2954 = vmatprep.subr.bf16.mxu1 %v9284_v19  ;;  %v9362_v19 = vld [vmem:[#allocation2 + $0xb34] ss:$8 sps:$4 sm:$0xff]  }
 0x19b   :  { %2912 = vmatpush1.bf16.msra.mxu0 %v9279_v20  ;;  %v9357_v20 = vld [vmem:[#allocation2 + $0xa30] ss:$8 sps:$4 sm:$0xff]  }
 0x19c   :  { %2955 = vmatpush1.bf16.msra.mxu1 %v9282_v21  ;;  %2913 = vmatprep.subr.bf16.mxu0 %v9287_v22  ;;  %v9360_v21 = vld [vmem:[#allocation2 + $0xb30] ss:$8 sps:$4 sm:$0xff]   ;;  %v9365_v22 = vld [vmem:[#allocation2 + $0xa24] ss:$8 sps:$4 sm:$0xff]  }
 0x19d   :  { %2956 = vmatprep.subr.bf16.mxu1 %v9290_v23  ;;  %v9368_v23 = vld [vmem:[#allocation2 + $0xb24] ss:$8 sps:$4 sm:$0xff]  }
 0x19f   :  { %2914 = vmatpush2.bf16.msra.mxu0 %v9285_v24  ;;  %v9363_v24 = vld [vmem:[#allocation2 + $0xa20] ss:$8 sps:$4 sm:$0xff]  }
 0x1a0   :  { %2957 = vmatpush2.bf16.msra.mxu1 %v9288_v25  ;;  %2915 = vmatprep.subr.bf16.mxu0 %v9293_v26  ;;  %v9366_v25 = vld [vmem:[#allocation2 + $0xb20] ss:$8 sps:$4 sm:$0xff]   ;;  %v9371_v26 = vld [vmem:[#allocation2 + $0xa14] ss:$8 sps:$4 sm:$0xff]  }
 0x1a1   :  { %2958 = vmatprep.subr.bf16.mxu1 %v9296_v27  ;;  %v9374_v27 = vld [vmem:[#allocation2 + $0xb14] ss:$8 sps:$4 sm:$0xff]  }
 0x1a3   :  { %2916 = vmatpush2.bf16.msra.mxu0 %v9291_v28  ;;  %v9369_v28 = vld [vmem:[#allocation2 + $0xa10] ss:$8 sps:$4 sm:$0xff]  }
 0x1a4   :  { %2959 = vmatpush2.bf16.msra.mxu1 %v9294_v29  ;;  %2917 = vmatprep.subr.bf16.mxu0 %v9299_v30  ;;  %v9372_v29 = vld [vmem:[#allocation2 + $0xb10] ss:$8 sps:$4 sm:$0xff]   ;;  %v9377_v30 = vld [vmem:[#allocation2 + $0xa04] ss:$8 sps:$4 sm:$0xff]  }
 0x1a5   :  { %2960 = vmatprep.subr.bf16.mxu1 %v9302_v31  ;;  %v9380_v31 = vld [vmem:[#allocation2 + $0xb04] ss:$8 sps:$4 sm:$0xff]  }
 0x1a7   :  { %2918 = vmatpush2.bf16.msra.mxu0 %v9297_v32  ;;  %v9375_v32 = vld [vmem:[#allocation2 + $0xa00] ss:$8 sps:$4 sm:$0xff]  }
 0x1a8   :  { %2961 = vmatpush2.bf16.msra.mxu1 %v9300_v33  ;;  %2919 = vmatprep.subr.bf16.mxu0 %v9305_v34  ;;  %v9378_v33 = vld [vmem:[#allocation2 + $0xb00] ss:$8 sps:$4 sm:$0xff]   ;;  %v9383_v34 = vld [vmem:[#allocation2 + $0xaf4] ss:$8 sps:$4 sm:$0xff]  }
 0x1a9   :  { %2962 = vmatprep.subr.bf16.mxu1 %v9308_v35  ;;  %v9386_v35 = vld [vmem:[#allocation2 + $0xbf4] ss:$8 sps:$4 sm:$0xff]  }
 0x1ab   :  { %2920 = vmatpush2.bf16.msra.mxu0 %v9303_v36  ;;  %v9381_v36 = vld [vmem:[#allocation2 + $0xaf0] ss:$8 sps:$4 sm:$0xff]  }
 0x1ac   :  { %2963 = vmatpush2.bf16.msra.mxu1 %v9306_v37  ;;  %2921 = vmatprep.subr.bf16.mxu0 %v9311_v38  ;;  %v9384_v37 = vld [vmem:[#allocation2 + $0xbf0] ss:$8 sps:$4 sm:$0xff]   ;;  %v9389_v38 = vld [vmem:[#allocation2 + $0xae4] ss:$8 sps:$4 sm:$0xff]  }
 0x1ad   :  { %2964 = vmatprep.subr.bf16.mxu1 %v9314_v39  ;;  %v9392_v39 = vld [vmem:[#allocation2 + $0xbe4] ss:$8 sps:$4 sm:$0xff]  }
 0x1af   :  { %2922 = vmatpush2.bf16.msra.mxu0 %v9309_v40  ;;  %v9387_v40 = vld [vmem:[#allocation2 + $0xae0] ss:$8 sps:$4 sm:$0xff]  }
 0x1b0   :  { %2965 = vmatpush2.bf16.msra.mxu1 %v9312_v41  ;;  %2923 = vmatprep.subr.bf16.mxu0 %v9317_v42  ;;  %v9390_v41 = vld [vmem:[#allocation2 + $0xbe0] ss:$8 sps:$4 sm:$0xff]   ;;  %v9395_v42 = vld [vmem:[#allocation2 + $0xad4] ss:$8 sps:$4 sm:$0xff]  }
 0x1b1   :  { %2966 = vmatprep.subr.bf16.mxu1 %v9320_v43  ;;  %v9398_v43 = vld [vmem:[#allocation2 + $0xbd4] ss:$8 sps:$4 sm:$0xff]  }
 0x1b3   :  { %2924 = vmatpush2.bf16.msra.mxu0 %v9315_v44  ;;  %v9393_v44 = vld [vmem:[#allocation2 + $0xad0] ss:$8 sps:$4 sm:$0xff]  }
 0x1b4   :  { %2967 = vmatpush2.bf16.msra.mxu1 %v9318_v45  ;;  %2925 = vmatprep.subr.bf16.mxu0 %v9323_v46  ;;  %v9396_v45 = vld [vmem:[#allocation2 + $0xbd0] ss:$8 sps:$4 sm:$0xff]   ;;  %v9401_v46 = vld [vmem:[#allocation2 + $0xac4] ss:$8 sps:$4 sm:$0xff]  }
 0x1b5   :  { %2968 = vmatprep.subr.bf16.mxu1 %v9326_v47  ;;  %v9404_v47 = vld [vmem:[#allocation2 + $0xbc4] ss:$8 sps:$4 sm:$0xff]  }
 0x1b7   :  { %2926 = vmatpush2.bf16.msra.mxu0 %v9321_v48  ;;  %v9399_v48 = vld [vmem:[#allocation2 + $0xac0] ss:$8 sps:$4 sm:$0xff]  }
 0x1b8   :  { %2969 = vmatpush2.bf16.msra.mxu1 %v9324_v49  ;;  %2927 = vmatprep.subr.bf16.mxu0 %v9329_v50  ;;  %v9402_v49 = vld [vmem:[#allocation2 + $0xbc0] ss:$8 sps:$4 sm:$0xff]   ;;  %v9407_v50 = vld [vmem:[#allocation2 + $0xab4] ss:$8 sps:$4 sm:$0xff]  }
 0x1b9   :  { %2970 = vmatprep.subr.bf16.mxu1 %v9332_v51  ;;  %v9410_v51 = vld [vmem:[#allocation2 + $0xbb4] ss:$8 sps:$4 sm:$0xff]  }
 0x1bb   :  { %2928 = vmatpush2.bf16.msra.mxu0 %v9327_v52  ;;  %v9405_v52 = vld [vmem:[#allocation2 + $0xab0] ss:$8 sps:$4 sm:$0xff]  }
 0x1bc   :  { %2971 = vmatpush2.bf16.msra.mxu1 %v9330_v53  ;;  %2983 = vmatprep.subr.bf16.mxu0 %v9335_v58  ;;  %v9408_v53 = vld [vmem:[#allocation2 + $0xbb0] ss:$8 sps:$4 sm:$0xff]   ;;  %v9419_v58 = vld [vmem:[#allocation2 + $0xa94] ss:$8 sps:$4 sm:$0xff]  }
 0x1bd   :  { %3026 = vmatprep.subr.bf16.mxu1 %v9338_v59  ;;  %v9422_v59 = vld [vmem:[#allocation2 + $0xb94] ss:$8 sps:$4 sm:$0xff]  }
 0x1be   :  { %2930 = vmatmul.mubr.bf16.vlgmr.msra.gmra.mxu0 %v229_v2  ;;  %v185_v2 = vld [vmem:[%s10549_s0 + $0xa0] sm:$0xff] }
 0x1bf   :  { %2973 = vmatmul.mubr.bf16.vlgmr.msra.gmra.mxu1 %v231_v3  ;;  %2984 = vmatpush1.bf16.msra.mxu0 %v9333_v0  ;;  %v9423_v0 = vld [vmem:[#allocation2 + $0xa80] ss:$8 sps:$4 sm:$0xff]  }
 0x1c0   :  { %3027 = vmatpush1.bf16.msra.mxu1 %v9336_v1  ;;  %2985 = vmatprep.subr.bf16.mxu0 %v9341_v4  ;;  %v9426_v1 = vld [vmem:[#allocation2 + $0xb80] ss:$8 sps:$4 sm:$0xff]   ;;  %v187_v4 = vld [vmem:[%s10549_s0 + $0xb0] sm:$0xff] }
 0x1c1   :  { %3028 = vmatprep.subr.bf16.mxu1 %v9344_v5  ;;  %3015 = vmatprep.mubr.bf16.mxu0 %v234_v8  ;;  %v209_v3 = vld [vmem:[%s10549_s0 + $0x160] sm:$0xff]  ;;  %v211_v5 = vld [vmem:[%s10549_s0 + $0x170] sm:$0xff] }
 0x1c2   :  { %3058 = vmatprep.mubr.bf16.mxu1 %v236_v9  ;;  %v9429_v8 = vld [vmem:[#allocation6 + $0xe0] ss:$16 sps:$4 sm:$0xff]   ;;  %v9431_v9 = vld [vmem:[#allocation6 + $0xe4] ss:$16 sps:$4 sm:$0xff]  }
 0x1c3   :  { %2986 = vmatpush1.bf16.msra.mxu0 %v9339_v6  ;;  %v233_v6 = vpack.c.bf16 %v209_v3, %v185_v2  ;;  %v9513_v2 = vld [vmem:[#allocation6 + $0x120] ss:$16 sps:$4 sm:$0xff]   ;;  %v9516_v3 = vld [vmem:[#allocation6 + $0x128] ss:$16 sps:$4 sm:$0xff]  }
 0x1c4   :  { %3029 = vmatpush1.bf16.msra.mxu1 %v9342_v7  ;;  %2987 = vmatprep.subr.bf16.mxu0 %v9347_v10  ;;  %v235_v7 = vpack.c.bf16 %v211_v5, %v187_v4  ;;  %v9432_v10 = vld [vmem:[#allocation6 + $0xe8] ss:$16 sps:$4 sm:$0xff]   ;;  %v9521_v4 = vld [vmem:[#allocation6 + $0x104] ss:$16 sps:$4 sm:$0xff]   ;;  %v9524_v5 = vld [vmem:[#allocation6 + $0x10c] ss:$16 sps:$4 sm:$0xff]  }
 0x1c5   :  { %3030 = vmatprep.subr.bf16.mxu1 %v9350_v11  ;;  %v9434_v11 = vld [vmem:[#allocation6 + $0xec] ss:$16 sps:$4 sm:$0xff]  }
 0x1c7   :  { %2988 = vmatpush1.bf16.msra.mxu0 %v9345_v12  ;;  %v9437_v12 = vld [vmem:[#allocation6 + $0xc4] ss:$16 sps:$4 sm:$0xff]  }
 0x1c8   :  { %3031 = vmatpush1.bf16.msra.mxu1 %v9348_v13  ;;  %2989 = vmatprep.subr.bf16.mxu0 %v9353_v14  ;;  %v9440_v13 = vld [vmem:[#allocation6 + $0xcc] ss:$16 sps:$4 sm:$0xff]   ;;  %v9435_v14 = vld [vmem:[#allocation6 + $0xc0] ss:$16 sps:$4 sm:$0xff]  }
 0x1c9   :  { %3032 = vmatprep.subr.bf16.mxu1 %v9356_v15  ;;  %v9438_v15 = vld [vmem:[#allocation6 + $0xc8] ss:$16 sps:$4 sm:$0xff]  }
 0x1cb   :  { %2990 = vmatpush1.bf16.msra.mxu0 %v9351_v16  ;;  %v9443_v16 = vld [vmem:[#allocation6 + $0xa4] ss:$16 sps:$4 sm:$0xff]  }
 0x1cc   :  { %3033 = vmatpush1.bf16.msra.mxu1 %v9354_v17  ;;  %2991 = vmatprep.subr.bf16.mxu0 %v9359_v18  ;;  %v9446_v17 = vld [vmem:[#allocation6 + $0xac] ss:$16 sps:$4 sm:$0xff]   ;;  %v9441_v18 = vld [vmem:[#allocation6 + $0xa0] ss:$16 sps:$4 sm:$0xff]  }
 0x1cd   :  { %3034 = vmatprep.subr.bf16.mxu1 %v9362_v19  ;;  %v9444_v19 = vld [vmem:[#allocation6 + $0xa8] ss:$16 sps:$4 sm:$0xff]  }
 0x1cf   :  { %2992 = vmatpush1.bf16.msra.mxu0 %v9357_v20  ;;  %v9449_v20 = vld [vmem:[#allocation6 + $0x84] ss:$16 sps:$4 sm:$0xff]  }
 0x1d0   :  { %3035 = vmatpush1.bf16.msra.mxu1 %v9360_v21  ;;  %2993 = vmatprep.subr.bf16.mxu0 %v9365_v22  ;;  %v9452_v21 = vld [vmem:[#allocation6 + $0x8c] ss:$16 sps:$4 sm:$0xff]   ;;  %v9447_v22 = vld [vmem:[#allocation6 + $0x80] ss:$16 sps:$4 sm:$0xff]  }
 0x1d1   :  { %3036 = vmatprep.subr.bf16.mxu1 %v9368_v23  ;;  %v9450_v23 = vld [vmem:[#allocation6 + $0x88] ss:$16 sps:$4 sm:$0xff]  }
 0x1d3   :  { %2994 = vmatpush1.bf16.msra.mxu0 %v9363_v24  ;;  %v9455_v24 = vld [vmem:[#allocation6 + $0x64] ss:$16 sps:$4 sm:$0xff]  }
 0x1d4   :  { %3037 = vmatpush1.bf16.msra.mxu1 %v9366_v25  ;;  %2995 = vmatprep.subr.bf16.mxu0 %v9371_v26  ;;  %v9458_v25 = vld [vmem:[#allocation6 + $0x6c] ss:$16 sps:$4 sm:$0xff]   ;;  %v9453_v26 = vld [vmem:[#allocation6 + $0x60] ss:$16 sps:$4 sm:$0xff]  }
 0x1d5   :  { %3038 = vmatprep.subr.bf16.mxu1 %v9374_v27  ;;  %v9456_v27 = vld [vmem:[#allocation6 + $0x68] ss:$16 sps:$4 sm:$0xff]  }
 0x1d7   :  { %2996 = vmatpush1.bf16.msra.mxu0 %v9369_v28  ;;  %v9461_v28 = vld [vmem:[#allocation6 + $0x44] ss:$16 sps:$4 sm:$0xff]  }
 0x1d8   :  { %3039 = vmatpush1.bf16.msra.mxu1 %v9372_v29  ;;  %2997 = vmatprep.subr.bf16.mxu0 %v9377_v30  ;;  %v9464_v29 = vld [vmem:[#allocation6 + $0x4c] ss:$16 sps:$4 sm:$0xff]   ;;  %v9459_v30 = vld [vmem:[#allocation6 + $0x40] ss:$16 sps:$4 sm:$0xff]  }
 0x1d9   :  { %3040 = vmatprep.subr.bf16.mxu1 %v9380_v31  ;;  %v9462_v31 = vld [vmem:[#allocation6 + $0x48] ss:$16 sps:$4 sm:$0xff]  }
 0x1db   :  { %2998 = vmatpush1.bf16.msra.mxu0 %v9375_v32  ;;  %v9467_v32 = vld [vmem:[#allocation6 + $0x24] ss:$16 sps:$4 sm:$0xff]  }
 0x1dc   :  { %3041 = vmatpush1.bf16.msra.mxu1 %v9378_v33  ;;  %2999 = vmatprep.subr.bf16.mxu0 %v9383_v34  ;;  %v9470_v33 = vld [vmem:[#allocation6 + $0x2c] ss:$16 sps:$4 sm:$0xff]   ;;  %v9465_v34 = vld [vmem:[#allocation6 + $0x20] ss:$16 sps:$4 sm:$0xff]  }
 0x1dd   :  { %3042 = vmatprep.subr.bf16.mxu1 %v9386_v35  ;;  %v9468_v35 = vld [vmem:[#allocation6 + $0x28] ss:$16 sps:$4 sm:$0xff]  }
 0x1df   :  { %3000 = vmatpush2.bf16.msra.mxu0 %v9381_v36  ;;  %v9473_v36 = vld [vmem:[#allocation6 + $0x4] ss:$16 sps:$4 sm:$0xff]  }
 0x1e0   :  { %3043 = vmatpush2.bf16.msra.mxu1 %v9384_v37  ;;  %3001 = vmatprep.subr.bf16.mxu0 %v9389_v38  ;;  %v9476_v37 = vld [vmem:[#allocation6 + $0xc] ss:$16 sps:$4 sm:$0xff]   ;;  %v9471_v38 = vld [vmem:[#allocation6] ss:$16 sps:$4 sm:$0xff]  }
 0x1e1   :  { %3044 = vmatprep.subr.bf16.mxu1 %v9392_v39  ;;  %v9474_v39 = vld [vmem:[#allocation6 + $0x8] ss:$16 sps:$4 sm:$0xff]  }
 0x1e3   :  { %3002 = vmatpush2.bf16.msra.mxu0 %v9387_v40  ;;  %v9479_v40 = vld [vmem:[#allocation6 + $0x1e4] ss:$16 sps:$4 sm:$0xff]  }
 0x1e4   :  { %3045 = vmatpush2.bf16.msra.mxu1 %v9390_v41  ;;  %3003 = vmatprep.subr.bf16.mxu0 %v9395_v42  ;;  %v9482_v41 = vld [vmem:[#allocation6 + $0x1ec] ss:$16 sps:$4 sm:$0xff]   ;;  %v9477_v42 = vld [vmem:[#allocation6 + $0x1e0] ss:$16 sps:$4 sm:$0xff]  }
 0x1e5   :  { %3046 = vmatprep.subr.bf16.mxu1 %v9398_v43  ;;  %v9480_v43 = vld [vmem:[#allocation6 + $0x1e8] ss:$16 sps:$4 sm:$0xff]  }
 0x1e7   :  { %3004 = vmatpush2.bf16.msra.mxu0 %v9393_v44  ;;  %v9485_v44 = vld [vmem:[#allocation6 + $0x1c4] ss:$16 sps:$4 sm:$0xff]  }
 0x1e8   :  { %3047 = vmatpush2.bf16.msra.mxu1 %v9396_v45  ;;  %3005 = vmatprep.subr.bf16.mxu0 %v9401_v46  ;;  %v9488_v45 = vld [vmem:[#allocation6 + $0x1cc] ss:$16 sps:$4 sm:$0xff]   ;;  %v9483_v46 = vld [vmem:[#allocation6 + $0x1c0] ss:$16 sps:$4 sm:$0xff]  }
 0x1e9   :  { %3048 = vmatprep.subr.bf16.mxu1 %v9404_v47  ;;  %v9486_v47 = vld [vmem:[#allocation6 + $0x1c8] ss:$16 sps:$4 sm:$0xff]  }
 0x1eb   :  { %3006 = vmatpush2.bf16.msra.mxu0 %v9399_v48  ;;  %v9491_v48 = vld [vmem:[#allocation6 + $0x1a4] ss:$16 sps:$4 sm:$0xff]  }
 0x1ec   :  { %3049 = vmatpush2.bf16.msra.mxu1 %v9402_v49  ;;  %3007 = vmatprep.subr.bf16.mxu0 %v9407_v50  ;;  %v9494_v49 = vld [vmem:[#allocation6 + $0x1ac] ss:$16 sps:$4 sm:$0xff]   ;;  %v9489_v50 = vld [vmem:[#allocation6 + $0x1a0] ss:$16 sps:$4 sm:$0xff]  }
 0x1ed   :  { %3050 = vmatprep.subr.bf16.mxu1 %v9410_v51  ;;  %v9492_v51 = vld [vmem:[#allocation6 + $0x1a8] ss:$16 sps:$4 sm:$0xff]  }
 0x1ef   :  { %3008 = vmatpush2.bf16.msra.mxu0 %v9405_v52  ;;  %v9497_v52 = vld [vmem:[#allocation6 + $0x184] ss:$16 sps:$4 sm:$0xff]  }
 0x1f0   :  { %3051 = vmatpush2.bf16.msra.mxu1 %v9408_v53  ;;  %3009 = vmatprep.subr.bf16.mxu0 %v9413_v54  ;;  %v9500_v53 = vld [vmem:[#allocation6 + $0x18c] ss:$16 sps:$4 sm:$0xff]   ;;  %v9495_v54 = vld [vmem:[#allocation6 + $0x180] ss:$16 sps:$4 sm:$0xff]  }
 0x1f1   :  { %3052 = vmatprep.subr.bf16.mxu1 %v9416_v55  ;;  %v9498_v55 = vld [vmem:[#allocation6 + $0x188] ss:$16 sps:$4 sm:$0xff]  }
 0x1f3   :  { %3010 = vmatpush2.bf16.msra.mxu0 %v9411_v56  ;;  %v9503_v56 = vld [vmem:[#allocation6 + $0x164] ss:$16 sps:$4 sm:$0xff]  }
 0x1f4   :  { %3053 = vmatpush2.bf16.msra.mxu1 %v9414_v57  ;;  %3011 = vmatprep.subr.bf16.mxu0 %v9419_v58  ;;  %v9506_v57 = vld [vmem:[#allocation6 + $0x16c] ss:$16 sps:$4 sm:$0xff]   ;;  %v9501_v58 = vld [vmem:[#allocation6 + $0x160] ss:$16 sps:$4 sm:$0xff]  }
 0x1f5   :  { %3054 = vmatprep.subr.bf16.mxu1 %v9422_v59  ;;  %v9504_v59 = vld [vmem:[#allocation6 + $0x168] ss:$16 sps:$4 sm:$0xff]  }
 0x1f7   :  { %3012 = vmatpush2.bf16.msra.mxu0 %v9417_v60  ;;  %v9509_v60 = vld [vmem:[#allocation6 + $0x144] ss:$16 sps:$4 sm:$0xff]  }
 0x1f8   :  { %3055 = vmatpush2.bf16.msra.mxu1 %v9420_v61  ;;  %3013 = vmatprep.subr.bf16.mxu0 %v9425_v62  ;;  %v9512_v61 = vld [vmem:[#allocation6 + $0x14c] ss:$16 sps:$4 sm:$0xff]   ;;  %v9507_v62 = vld [vmem:[#allocation6 + $0x140] ss:$16 sps:$4 sm:$0xff]  }
 0x1f9   :  { %3056 = vmatprep.subr.bf16.mxu1 %v9428_v63  ;;  %v9510_v63 = vld [vmem:[#allocation6 + $0x148] ss:$16 sps:$4 sm:$0xff]  }
 0x1fb   :  { %3014 = vmatpush2.bf16.msra.mxu0 %v9423_v0  ;;  %v9515_v0 = vld [vmem:[#allocation6 + $0x124] ss:$16 sps:$4 sm:$0xff]  }
 0x1fc   :  { %3057 = vmatpush2.bf16.msra.mxu1 %v9426_v1  ;;  %3481 = vmatprep.subr.bf16.mxu0 %v9431_v9  ;;  %v9518_v1 = vld [vmem:[#allocation6 + $0x12c] ss:$16 sps:$4 sm:$0xff]   ;;  %v10413_v9 = vld [vmem:[#allocation9 + $0x1e0] sm:$0xff] }
 0x1fd   :  { %3524 = vmatprep.subr.bf16.mxu1 %v9434_v11 }
 0x1fe   :  { %3016 = vmatmul.mubr.bf16.vlgmr.msra.gmra.mxu0 %v233_v6  ;;  %v9519_v6 = vld [vmem:[#allocation6 + $0x100] ss:$16 sps:$4 sm:$0xff]  }
 0x1ff   :  { %3059 = vmatmul.mubr.bf16.vlgmr.msra.gmra.mxu1 %v235_v7  ;;  %3482 = vmatpush1.bf16.msra.mxu0 %v9429_v8  ;;  %v9522_v7 = vld [vmem:[#allocation6 + $0x108] ss:$16 sps:$4 sm:$0xff]  }
 0x200   :  { %3525 = vmatpush1.bf16.msra.mxu1 %v9432_v10  ;;  %3483 = vmatprep.subr.bf16.mxu0 %v9437_v12  ;;  %v10411_v8 = vld [vmem:[#allocation9 + $0x1c0] sm:$0xff] }
 0x201   :  { %3526 = vmatprep.subr.bf16.mxu1 %v9440_v13  ;;  %v10415_v10 = vld [vmem:[#allocation9 + $0x5c0] sm:$0xff]  ;;  %v8302_v11 = vcombine.low %v10411_v8, %v10413_v9  ;;  %v8303_v12 = vcombine.high %v10411_v8, %v10413_v9 }
 0x202   :  { %v10421_v13 = vld [vmem:[#allocation9 + $0x5e0] sm:$0xff] }
 0x203   :  { %3484 = vmatpush1.bf16.msra.mxu0 %v9435_v14  ;;  %v8430_v14 = vcombine.low %v10415_v10, %v10421_v13 }
 0x204   :  { %3527 = vmatpush1.bf16.msra.mxu1 %v9438_v15  ;;  %3485 = vmatprep.subr.bf16.mxu0 %v9443_v16  ;;  %v8431_v15 = vcombine.high %v10415_v10, %v10421_v13  ;;  %v2587_v16 = vpop.f32.mrf.mxu0  ;;  %v3603_v10 = vld [vmem:[#allocation9 + $0xc0] sm:$0xff] }
 0x205   :  { %3528 = vmatprep.subr.bf16.mxu1 %v9446_v17  ;;  %v2630_v17 = vpop.f32.mrf.mxu1  ;;  %v3731_v13 = vld [vmem:[#allocation9 + $0x4c0] sm:$0xff] }
 0x207   :  { %3486 = vmatpush1.bf16.msra.mxu0 %v9441_v18  ;;  %v2589_v18 = vpop.f32.mrf.mxu0 }
 0x208   :  { %3529 = vmatpush1.bf16.msra.mxu1 %v9444_v19  ;;  %3487 = vmatprep.subr.bf16.mxu0 %v9449_v20  ;;  %v2632_v19 = vpop.f32.mrf.mxu1 }
 0x209   :  { %3530 = vmatprep.subr.bf16.mxu1 %v9452_v21  ;;  %v2591_v20 = vpop.f32.mrf.mxu0 }
 0x20a   :  { %v2634_v21 = vpop.f32.mrf.mxu1 }
 0x20b   :  { %3488 = vmatpush1.bf16.msra.mxu0 %v9447_v22  ;;  %v2593_v22 = vpop.f32.mrf.mxu0 }
 0x20c   :  { %3531 = vmatpush1.bf16.msra.mxu1 %v9450_v23  ;;  %3489 = vmatprep.subr.bf16.mxu0 %v9455_v24  ;;  %v2636_v23 = vpop.f32.mrf.mxu1 }
 0x20d   :  { %3532 = vmatprep.subr.bf16.mxu1 %v9458_v25  ;;  %v2673_v24 = vpop.f32.mrf.mxu0 }
 0x20e   :  { %v2716_v25 = vpop.f32.mrf.mxu1 }
 0x20f   :  { %3490 = vmatpush1.bf16.msra.mxu0 %v9453_v26  ;;  %v2675_v26 = vpop.f32.mrf.mxu0 }
 0x210   :  { %3533 = vmatpush1.bf16.msra.mxu1 %v9456_v27  ;;  %3491 = vmatprep.subr.bf16.mxu0 %v9461_v28  ;;  %v2718_v27 = vpop.f32.mrf.mxu1 }
 0x211   :  { %3534 = vmatprep.subr.bf16.mxu1 %v9464_v29  ;;  %v2677_v28 = vpop.f32.mrf.mxu0 }
 0x212   :  { %v2720_v29 = vpop.f32.mrf.mxu1 }
 0x213   :  { %3492 = vmatpush1.bf16.msra.mxu0 %v9459_v30  ;;  %v2679_v30 = vpop.f32.mrf.mxu0 }
 0x214   :  { %3535 = vmatpush1.bf16.msra.mxu1 %v9462_v31  ;;  %3493 = vmatprep.subr.bf16.mxu0 %v9467_v32  ;;  %v2722_v31 = vpop.f32.mrf.mxu1  ;;  %v623_v32 = vlaneseq }
 0x215   :  { %3536 = vmatprep.subr.bf16.mxu1 %v9470_v33  ;;  %v2759_v33 = vpop.f32.mrf.mxu0 }
 0x217   :  { %3494 = vmatpush1.bf16.msra.mxu0 %v9465_v34  ;;  %v2802_v34 = vpop.f32.mrf.mxu1 }
 0x218   :  { %3537 = vmatpush1.bf16.msra.mxu1 %v9468_v35  ;;  %3495 = vmatprep.subr.bf16.mxu0 %v9473_v36  ;;  %v10427_v35 = vshrl.u32 %v623_v32, 7  ;;  %v2761_v36 = vpop.f32.mrf.mxu0 }
 0x219   :  { %3538 = vmatprep.subr.bf16.mxu1 %v9476_v37  ;;  %v2804_v37 = vpop.f32.mrf.mxu1 }
 0x21b   :  { %3496 = vmatpush1.bf16.msra.mxu0 %v9471_v38  ;;  %v10430_v38 = vsub.s32 1, %v10427_v35 }
 0x21c   :  { %3539 = vmatpush1.bf16.msra.mxu1 %v9474_v39  ;;  %3497 = vmatprep.subr.bf16.mxu0 %v9479_v40  ;;  %v621_v39 = vld [vmem:[#allocation4] sm:$0x3]  ;;  %v10433_v40 = vsub.s32 0, %v10427_v35 }
 0x21d   :  { %3540 = vmatprep.subr.bf16.mxu1 %v9482_v41  ;;  %v2763_v41 = vpop.f32.mrf.mxu0 }
 0x21f   :  { %3498 = vmatpush2.bf16.msra.mxu0 %v9477_v42  ;;  %v2806_v42 = vpop.f32.mrf.mxu1 }
 0x220   :  { %3541 = vmatpush2.bf16.msra.mxu1 %v9480_v43  ;;  %3499 = vmatprep.subr.bf16.mxu0 %v9485_v44  ;;  %v630_v43 = vrot.slane %v621_v39, %v10430_v38  ;;  %v626_v44 = vrot.slane %v621_v39, %v10433_v40 }
 0x221   :  { %3542 = vmatprep.subr.bf16.mxu1 %v9488_v45  ;;  %v2765_v45 = vpop.f32.mrf.mxu0 }
 0x223   :  { %3500 = vmatpush2.bf16.msra.mxu0 %v9483_v46  ;;  %v2808_v46 = vpop.f32.mrf.mxu1 }
 0x224   :  { %3543 = vmatpush2.bf16.msra.mxu1 %v9486_v47  ;;  %3501 = vmatprep.subr.bf16.mxu0 %v9491_v48 }
 0x225   :  { %3544 = vmatprep.subr.bf16.mxu1 %v9494_v49  ;;  %v2590_v49 = vadd.f32 %v2589_v18, %v630_v43 }
 0x227   :  { %3502 = vmatpush2.bf16.msra.mxu0 %v9489_v50  ;;  %v2588_v50 = vadd.f32 %v2587_v16, %v626_v44 }
 0x228   :  { %3545 = vmatpush2.bf16.msra.mxu1 %v9492_v51  ;;  %3503 = vmatprep.subr.bf16.mxu0 %v9497_v52  ;;  %v2592_v51 = vadd.f32 %v2591_v20, %v626_v44 }
 0x229   :  { %3546 = vmatprep.subr.bf16.mxu1 %v9500_v53 }
 0x22b   :  { %3504 = vmatpush2.bf16.msra.mxu0 %v9495_v54  ;;  %v2633_v54 = vadd.f32 %v2632_v19, %v2590_v49 }
 0x22c   :  { %3547 = vmatpush2.bf16.msra.mxu1 %v9498_v55  ;;  %3505 = vmatprep.subr.bf16.mxu0 %v9503_v56  ;;  %v2594_v55 = vadd.f32 %v2593_v22, %v630_v43  ;;  %v2631_v56 = vadd.f32 %v2630_v17, %v2588_v50 }
 0x22d   :  { %3548 = vmatprep.subr.bf16.mxu1 %v9506_v57  ;;  %v2635_v57 = vadd.f32 %v2634_v21, %v2592_v51 }
 0x22f   :  { %3506 = vmatpush2.bf16.msra.mxu0 %v9501_v58  ;;  %v2676_v58 = vadd.f32 %v2675_v26, %v2633_v54 }
 0x230   :  { %3549 = vmatpush2.bf16.msra.mxu1 %v9504_v59  ;;  %3507 = vmatprep.subr.bf16.mxu0 %v9509_v60  ;;  %v2674_v59 = vadd.f32 %v2673_v24, %v2631_v56 }
 0x231   :  { %3550 = vmatprep.subr.bf16.mxu1 %v9512_v61 }
 0x233   :  { %3508 = vmatpush2.bf16.msra.mxu0 %v9507_v62  ;;  %v2637_v62 = vadd.f32 %v2636_v23, %v2594_v55 }
 0x234   :  { %3551 = vmatpush2.bf16.msra.mxu1 %v9510_v63  ;;  %3509 = vmatprep.subr.bf16.mxu0 %v9515_v0  ;;  %v2678_v63 = vadd.f32 %v2677_v28, %v2635_v57  ;;  %v2719_v0 = vadd.f32 %v2718_v27, %v2676_v58 }
 0x235   :  { %3552 = vmatprep.subr.bf16.mxu1 %v9518_v1  ;;  %v2680_v1 = vadd.f32 %v2679_v30, %v2637_v62 }
 0x237   :  { %3510 = vmatpush2.bf16.msra.mxu0 %v9513_v2  ;;  %v2717_v2 = vadd.f32 %v2716_v25, %v2674_v59  ;;  %v2723_v16 = vadd.f32 %v2722_v31, %v2680_v1  ;;  %v3627_v1 = vld [vmem:[#allocation9 + $0x180] sm:$0xff] }
 0x238   :  { %3553 = vmatpush2.bf16.msra.mxu1 %v9516_v3  ;;  %3511 = vmatprep.subr.bf16.mxu0 %v9521_v4 }
 0x239   :  { %3554 = vmatprep.subr.bf16.mxu1 %v9524_v5  ;;  %v2721_v5 = vadd.f32 %v2720_v29, %v2678_v63  ;;  %v2766_v19 = vadd.f32 %v2765_v45, %v2723_v16 }
 0x23b   :  { %3512 = vmatpush2.bf16.msra.mxu0 %v9519_v6  ;;  %v2762_v6 = vadd.f32 %v2761_v36, %v2719_v0  ;;  %v2764_v18 = vadd.f32 %v2763_v41, %v2721_v5  ;;  %v2809_v27 = vadd.f32 %v2808_v46, %v2766_v19  ;;  %v3755_v5 = vld [vmem:[#allocation9 + $0x580] sm:$0xff] }
 0x23c   :  { %3555 = vmatpush2.bf16.msra.mxu1 %v9522_v7  ;;  %5157 = vmatprep.subr.bf16.mxu0 %v8303_v12  ;;  %v2760_v7 = vadd.f32 %v2759_v33, %v2717_v2  ;;  %v3623_v19 = vld [vmem:[#allocation9 + $0x160] sm:$0xff] }
 0x23d   :  { %5200 = vmatprep.subr.bf16.mxu1 %v8431_v15  ;;  %v2805_v17 = vadd.f32 %v2804_v37, %v2762_v6  ;;  %v2807_v24 = vadd.f32 %v2806_v42, %v2764_v18  ;;  %v3759_v6 = vld [vmem:[#allocation9 + $0x5a0] sm:$0xff] }
 0x23e   :  { %v2845_v47 = vpop.f32.mrf.mxu0  ;;  %v2803_v20 = vadd.f32 %v2802_v34, %v2760_v7  ;;  %v8423_v18 = vcombine.high %v3755_v5, %v3759_v6 }
 0x23f   :  { %v2888_v48 = vpop.f32.mrf.mxu1 }
 0x240   :  { %v2847_v52 = vpop.f32.mrf.mxu0  ;;  %v2846_v26 = vadd.f32 %v2845_v47, %v2803_v20  ;;  %v3747_v20 = vld [vmem:[#allocation9 + $0x540] sm:$0xff] }
 0x241   :  { %v2890_v53 = vpop.f32.mrf.mxu1  ;;  %v2848_v23 = vadd.f32 %v2847_v52, %v2805_v17  ;;  %v3619_v17 = vld [vmem:[#allocation9 + $0x140] sm:$0xff] }
 0x242   :  { %v2849_v60 = vpop.f32.mrf.mxu0  ;;  %v2889_v36 = vadd.f32 %v2888_v48, %v2846_v26 }
 0x243   :  { %v2892_v61 = vpop.f32.mrf.mxu1  ;;  %v2850_v28 = vadd.f32 %v2849_v60, %v2807_v24  ;;  %v2891_v32 = vadd.f32 %v2890_v53, %v2848_v23  ;;  %v8422_v24 = vcombine.low %v3755_v5, %v3759_v6  ;;  %v8287_v23 = vcombine.high %v3619_v17, %v3623_v19 }
 0x244   :  { %v2851_v3 = vpop.f32.mrf.mxu0 }
 0x245   :  { %v2894_v4 = vpop.f32.mrf.mxu1  ;;  %v2852_v29 = vadd.f32 %v2851_v3, %v2809_v27  ;;  %v2893_v33 = vadd.f32 %v2892_v61, %v2850_v28  ;;  %v3611_v27 = vld [vmem:[#allocation9 + $0x100] sm:$0xff] }
 0x246   :  { %v3615_v28 = vld [vmem:[#allocation9 + $0x120] sm:$0xff] }
 0x247   :  { %v2895_v37 = vadd.f32 %v2894_v4, %v2852_v29  ;;  %v3631_v4 = vld [vmem:[#allocation9 + $0x1a0] sm:$0xff]  ;;  %v8279_v8 = vcombine.high %v3611_v27, %v3615_v28 }
 0x248   :  { %v8295_v16 = vcombine.high %v3627_v1, %v3631_v4 }
 0x27e   :  { %v2931_v12 = vpop.f32.mrf.mxu0 }
 0x27f   :  { %v2974_v15 = vpop.f32.mrf.mxu1  ;;  %v2932_v43 = vadd.f32 %v2931_v12, %v2889_v36  ;;  %v8278_v36 = vcombine.low %v3611_v27, %v3615_v28 }
 0x280   :  { %v2933_v21 = vpop.f32.mrf.mxu0 }
 0x281   :  { %v2976_v22 = vpop.f32.mrf.mxu1  ;;  %v2934_v39 = vadd.f32 %v2933_v21, %v2891_v32  ;;  %v2975_v50 = vadd.f32 %v2974_v15, %v2932_v43  ;;  %v3751_v21 = vld [vmem:[#allocation9 + $0x560] sm:$0xff]  ;;  %v8286_v32 = vcombine.low %v3619_v17, %v3623_v19 }
 0x282   :  { %v2935_v25 = vpop.f32.mrf.mxu0  ;;  %v8415_v26 = vcombine.high %v3747_v20, %v3751_v21  ;;  %v8414_v29 = vcombine.low %v3747_v20, %v3751_v21  ;;  %v3683_v21 = vld [vmem:[#allocation9 + $0x340] sm:$0xff] }
 0x283   :  { %v2978_v30 = vpop.f32.mrf.mxu1  ;;  %v2936_v44 = vadd.f32 %v2935_v25, %v2893_v33  ;;  %v2977_v49 = vadd.f32 %v2976_v22, %v2934_v39  ;;  %v8294_v22 = vcombine.low %v3627_v1, %v3631_v4  ;;  %v3739_v25 = vld [vmem:[#allocation9 + $0x500] sm:$0xff] }
 0x284   :  { %v2937_v31 = vpop.f32.mrf.mxu0  ;;  %v3827_v1 = vld [vmem:[#allocation9 + $0x7c0] sm:$0xff] }
 0x285   :  { %v2980_v41 = vpop.f32.mrf.mxu1  ;;  %v2938_v42 = vadd.f32 %v2937_v31, %v2895_v37  ;;  %v2979_v51 = vadd.f32 %v2978_v30, %v2936_v44  ;;  %v3743_v30 = vld [vmem:[#allocation9 + $0x520] sm:$0xff] }
 0x286   :  { %v8407_v9 = vcombine.high %v3739_v25, %v3743_v30  ;;  %v8406_v33 = vcombine.low %v3739_v25, %v3743_v30  ;;  %v3595_v31 = vld [vmem:[#allocation9 + $0x80] sm:$0xff] }
 0x287   :  { %v2981_v48 = vadd.f32 %v2980_v41, %v2938_v42  ;;  %v3599_v41 = vld [vmem:[#allocation9 + $0xa0] sm:$0xff] }
 0x288   :  { %v3723_v37 = vld [vmem:[#allocation9 + $0x480] sm:$0xff] }
 0x289   :  { %v3727_v44 = vld [vmem:[#allocation9 + $0x4a0] sm:$0xff] }
 0x28a   :  { %v8391_v42 = vcombine.high %v3723_v37, %v3727_v44  ;;  %v3675_v30 = vld [vmem:[#allocation9 + $0x300] sm:$0xff] }
 0x2be   :  { %v3017_v34 = vpop.f32.mrf.mxu0 }
 0x2bf   :  { %v3060_v45 = vpop.f32.mrf.mxu1  ;;  %v3018_v54 = vadd.f32 %v3017_v34, %v2975_v50  ;;  %v3587_v50 = vld [vmem:[#allocation9 + $0x40] sm:$0xff] }
 0x2c0   :  { %v3019_v47 = vpop.f32.mrf.mxu0 }
 0x2c1   :  { %v3062_v46 = vpop.f32.mrf.mxu1  ;;  %v3020_v52 = vadd.f32 %v3019_v47, %v2977_v49  ;;  %v3061_v61 = vadd.f32 %v3060_v45, %v3018_v54  ;;  %v8263_v49 = vcombine.high %v3595_v31, %v3599_v41  ;;  %v3591_v47 = vld [vmem:[#allocation9 + $0x60] sm:$0xff]  ;;  %v8390_v54 = vcombine.low %v3723_v37, %v3727_v44 }
 0x2c2   :  { %v3021_v53 = vpop.f32.mrf.mxu0 }
 0x2c3   :  { %v3064_v55 = vpop.f32.mrf.mxu1  ;;  %v3022_v56 = vadd.f32 %v3021_v53, %v2979_v51  ;;  %v3063_v58 = vadd.f32 %v3062_v46, %v3020_v52  ;;  %v3069_v7 = vmax.f32 %v3061_v61, 0.0  ;;  %v3715_v46 = vld [vmem:[#allocation9 + $0x440] sm:$0xff]  ;;  %v8262_v52 = vcombine.low %v3595_v31, %v3599_v41 }
 0x2c4   :  { %v3023_v57 = vpop.f32.mrf.mxu0  ;;  %v3719_v51 = vld [vmem:[#allocation9 + $0x460] sm:$0xff]  ;;  %v8255_v53 = vcombine.high %v3587_v50, %v3591_v47 }
 0x2c5   :  { %v3065_v59 = vadd.f32 %v3064_v55, %v3022_v56  ;;  %v3024_v60 = vadd.f32 %v3023_v57, %v2981_v48  ;;  %v3066_v62 = vpop.f32.mrf.mxu1  ;;  %v3070_v2 = vmax.f32 %v3063_v58, 0.0  ;;  %v8383_v55 = vcombine.high %v3715_v46, %v3719_v51  ;;  %v3579_v48 = vld [vmem:[#allocation9] sm:$0xff] }
 0x2c6   :  { %v3583_v56 = vld [vmem:[#allocation9 + $0x20] sm:$0xff] }
 0x2c7   :  { %v3067_v63 = vadd.f32 %v3066_v62, %v3024_v60  ;;  %v3071_v0 = vmax.f32 %v3065_v59, 0.0  ;;  %v3707_v57 = vld [vmem:[#allocation9 + $0x400] sm:$0xff]  ;;  %v8254_v59 = vcombine.low %v3587_v50, %v3591_v47  ;;  %v8382_v60 = vcombine.low %v3715_v46, %v3719_v51 }
 0x2c8   :  { %v3711_v58 = vld [vmem:[#allocation9 + $0x420] sm:$0xff]  ;;  %v8247_v61 = vcombine.high %v3579_v48, %v3583_v56 }
 0x2c9   :  { %v3072_v3 = vmax.f32 %v3067_v63, 0.0  ;;  %v3073_v15 = vpack.c.bf16 %v3071_v0, %v3069_v7  ;;  %v8375_v62 = vcombine.high %v3707_v57, %v3711_v58  ;;  %v3699_v63 = vld [vmem:[#allocation9 + $0x3c0] sm:$0xff]  ;;  %v8374_v4 = vcombine.low %v3707_v57, %v3711_v58 }
 0x2ca   :  { %v3703_v0 = vld [vmem:[#allocation9 + $0x3e0] sm:$0xff] }
 0x2cb   :  { %v3074_v12 = vpack.c.bf16 %v3072_v3, %v3070_v2  ;;  %v3831_v2 = vld [vmem:[#allocation9 + $0x7e0] sm:$0xff]  ;;  %v8246_v3 = vcombine.low %v3579_v48, %v3583_v56  ;;  %v8367_v5 = vcombine.high %v3699_v63, %v3703_v0 }
 0x2cc   :  { %v8495_v6 = vcombine.high %v3827_v1, %v3831_v2  ;;  %v3691_v7 = vld [vmem:[#allocation9 + $0x380] sm:$0xff]  ;;  %v8494_v17 = vcombine.low %v3827_v1, %v3831_v2 }
 0x2cd   :  { %3513 = vmatprep.mubr.bf16.mxu0 %v3074_v12  ;;  %3556 = vmatprep.mubr.bf16.mxu1 %v3074_v12  ;;  %v3695_v12 = vld [vmem:[#allocation9 + $0x3a0] sm:$0xff] }
 0x2ce   :  { %3514 = vmatmul.mubr.bf16.vlgmr.msra.gmra.mxu0 %v3073_v15  ;;  %3557 = vmatmul.mubr.bf16.vlgmr.msra.gmra.mxu1 %v3073_v15  ;;  %v3819_v15 = vld [vmem:[#allocation9 + $0x780] sm:$0xff]  ;;  %v8359_v19 = vcombine.high %v3691_v7, %v3695_v12 }
 0x2cf   :  { %5158 = vmatpush1.bf16.msra.mxu0 %v8302_v11  ;;  %5201 = vmatpush1.bf16.msra.mxu1 %v8430_v14  ;;  %v3607_v11 = vld [vmem:[#allocation9 + $0xe0] sm:$0xff] }
 0x2d0   :  { %5159 = vmatprep.subr.bf16.mxu0 %v8295_v16  ;;  %5202 = vmatprep.subr.bf16.mxu1 %v8423_v18  ;;  %v3735_v14 = vld [vmem:[#allocation9 + $0x4e0] sm:$0xff]  ;;  %v8271_v39 = vcombine.high %v3603_v10, %v3607_v11  ;;  %v8270_v34 = vcombine.low %v3603_v10, %v3607_v11  ;;  %v8366_v18 = vcombine.low %v3699_v63, %v3703_v0 }
 0x2d1   :  { %v8399_v43 = vcombine.high %v3731_v13, %v3735_v14  ;;  %v8398_v45 = vcombine.low %v3731_v13, %v3735_v14  ;;  %v3823_v16 = vld [vmem:[#allocation9 + $0x7a0] sm:$0xff] }
 0x2d2   :  { %v8487_v20 = vcombine.high %v3819_v15, %v3823_v16  ;;  %v8486_v27 = vcombine.low %v3819_v15, %v3823_v16  ;;  %v3667_v14 = vld [vmem:[#allocation9 + $0x2c0] sm:$0xff] }
 0x2d3   :  { %5160 = vmatpush1.bf16.msra.mxu0 %v8294_v22  ;;  %5203 = vmatpush1.bf16.msra.mxu1 %v8422_v24  ;;  %v3687_v22 = vld [vmem:[#allocation9 + $0x360] sm:$0xff] }
 0x2d4   :  { %5161 = vmatprep.subr.bf16.mxu0 %v8287_v23  ;;  %5204 = vmatprep.subr.bf16.mxu1 %v8415_v26  ;;  %v3811_v24 = vld [vmem:[#allocation9 + $0x740] sm:$0xff]  ;;  %v8358_v26 = vcombine.low %v3691_v7, %v3695_v12  ;;  %v8351_v28 = vcombine.high %v3683_v21, %v3687_v22  ;;  %v3768_v12 = vld [vmem:[#allocation9 + $0x5e8] sm:$0xff] }
 0x2d5   :  { %v3815_v23 = vld [vmem:[#allocation9 + $0x760] sm:$0xff] }
 0x2d6   :  { %v8479_v25 = vcombine.high %v3811_v24, %v3815_v23  ;;  %v8478_v10 = vcombine.low %v3811_v24, %v3815_v23  ;;  %v3791_v47 = vld [vmem:[#allocation9 + $0x6a0] sm:$0xff] }
 0x2d7   :  { %5162 = vmatpush1.bf16.msra.mxu0 %v8286_v32  ;;  %5205 = vmatpush1.bf16.msra.mxu1 %v8414_v29  ;;  %v3679_v32 = vld [vmem:[#allocation9 + $0x320] sm:$0xff] }
 0x2d8   :  { %5163 = vmatprep.subr.bf16.mxu0 %v8279_v8  ;;  %5206 = vmatprep.subr.bf16.mxu1 %v8407_v9  ;;  %v3803_v29 = vld [vmem:[#allocation9 + $0x700] sm:$0xff]  ;;  %v8350_v9 = vcombine.low %v3683_v21, %v3687_v22  ;;  %v8343_v11 = vcombine.high %v3675_v30, %v3679_v32 }
 0x2d9   :  { %v3807_v8 = vld [vmem:[#allocation9 + $0x720] sm:$0xff] }
 0x2da   :  { %v8471_v13 = vcombine.high %v3803_v29, %v3807_v8  ;;  %v8470_v31 = vcombine.low %v3803_v29, %v3807_v8  ;;  %v3783_v56 = vld [vmem:[#allocation9 + $0x660] sm:$0xff] }
 0x2db   :  { %5164 = vmatpush1.bf16.msra.mxu0 %v8278_v36  ;;  %5207 = vmatpush1.bf16.msra.mxu1 %v8406_v33  ;;  %v3671_v36 = vld [vmem:[#allocation9 + $0x2e0] sm:$0xff] }
 0x2dc   :  { %5165 = vmatprep.subr.bf16.mxu0 %v8271_v39  ;;  %5208 = vmatprep.subr.bf16.mxu1 %v8399_v43  ;;  %v3795_v33 = vld [vmem:[#allocation9 + $0x6c0] sm:$0xff]  ;;  %v8342_v43 = vcombine.low %v3675_v30, %v3679_v32  ;;  %v8335_v41 = vcombine.high %v3667_v14, %v3671_v36  ;;  %v8334_v44 = vcombine.low %v3667_v14, %v3671_v36 }
 0x2dd   :  { %v3799_v39 = vld [vmem:[#allocation9 + $0x6e0] sm:$0xff] }
 0x2de   :  { %v8463_v37 = vcombine.high %v3795_v33, %v3799_v39  ;;  %v3775_v0 = vld [vmem:[#allocation9 + $0x620] sm:$0xff] }
 0x2df   :  { %5166 = vmatpush1.bf16.msra.mxu0 %v8270_v34  ;;  %5209 = vmatpush1.bf16.msra.mxu1 %v8398_v45  ;;  %v8462_v34 = vcombine.low %v3795_v33, %v3799_v39  ;;  %v3659_v45 = vld [vmem:[#allocation9 + $0x280] sm:$0xff] }
 0x2e0   :  { %5167 = vmatprep.subr.bf16.mxu0 %v8263_v49  ;;  %5210 = vmatprep.subr.bf16.mxu1 %v8391_v42  ;;  %v3663_v49 = vld [vmem:[#allocation9 + $0x2a0] sm:$0xff] }
 0x2e1   :  { %v3787_v42 = vld [vmem:[#allocation9 + $0x680] sm:$0xff]  ;;  %v8327_v50 = vcombine.high %v3659_v45, %v3663_v49  ;;  %v8326_v46 = vcombine.low %v3659_v45, %v3663_v49  ;;  %v3628_v45 = vld [vmem:[#allocation9 + $0x188] sm:$0xff] }
 0x2e2   :  { %v8454_v51 = vcombine.low %v3787_v42, %v3791_v47 }
 0x2e3   :  { %5168 = vmatpush1.bf16.msra.mxu0 %v8262_v52  ;;  %5211 = vmatpush1.bf16.msra.mxu1 %v8390_v54  ;;  %v8455_v52 = vcombine.high %v3787_v42, %v3791_v47  ;;  %v3651_v54 = vld [vmem:[#allocation9 + $0x240] sm:$0xff]  ;;  %v3756_v47 = vld [vmem:[#allocation9 + $0x588] sm:$0xff] }
 0x2e4   :  { %5169 = vmatprep.subr.bf16.mxu0 %v8255_v53  ;;  %5212 = vmatprep.subr.bf16.mxu1 %v8383_v55  ;;  %v3655_v53 = vld [vmem:[#allocation9 + $0x260] sm:$0xff] }
 0x2e5   :  { %v3779_v55 = vld [vmem:[#allocation9 + $0x640] sm:$0xff]  ;;  %v8319_v48 = vcombine.high %v3651_v54, %v3655_v53  ;;  %v8318_v57 = vcombine.low %v3651_v54, %v3655_v53 }
 0x2e6   :  { %v8446_v58 = vcombine.low %v3779_v55, %v3783_v56 }
 0x2e7   :  { %5170 = vmatpush1.bf16.msra.mxu0 %v8254_v59  ;;  %5213 = vmatpush1.bf16.msra.mxu1 %v8382_v60  ;;  %v8447_v59 = vcombine.high %v3779_v55, %v3783_v56  ;;  %v3643_v60 = vld [vmem:[#allocation9 + $0x200] sm:$0xff]  ;;  %v3620_v55 = vld [vmem:[#allocation9 + $0x148] sm:$0xff] }
 0x2e8   :  { %5171 = vmatprep.subr.bf16.mxu0 %v8247_v61  ;;  %5214 = vmatprep.subr.bf16.mxu1 %v8375_v62  ;;  %v3647_v61 = vld [vmem:[#allocation9 + $0x220] sm:$0xff] }
 0x2e9   :  { %v3771_v62 = vld [vmem:[#allocation9 + $0x600] sm:$0xff]  ;;  %v8311_v63 = vcombine.high %v3643_v60, %v3647_v61  ;;  %v8310_v1 = vcombine.low %v3643_v60, %v3647_v61 }
 0x2ea   :  { %v8438_v2 = vcombine.low %v3771_v62, %v3775_v0 }
 0x2eb   :  { %5172 = vmatpush1.bf16.msra.mxu0 %v8246_v3  ;;  %5215 = vmatpush1.bf16.msra.mxu1 %v8374_v4  ;;  %v8439_v3 = vcombine.high %v3771_v62, %v3775_v0  ;;  %v3636_v4 = vld [vmem:[#allocation9 + $0x1c8] sm:$0xff] }
 0x2ec   :  { %5173 = vmatprep.subr.bf16.mxu0 %v8367_v5  ;;  %5216 = vmatprep.subr.bf16.mxu1 %v8495_v6  ;;  %v3640_v5 = vld [vmem:[#allocation9 + $0x1e8] sm:$0xff] }
 0x2ed   :  { %v3764_v6 = vld [vmem:[#allocation9 + $0x5c8] sm:$0xff]  ;;  %v8305_v7 = vcombine.high %v3636_v4, %v3640_v5  ;;  %v8304_v15 = vcombine.low %v3636_v4, %v3640_v5 }
 0x2ee   :  { %v8432_v16 = vcombine.low %v3764_v6, %v3768_v12  ;;  %v3612_v0 = vld [vmem:[#allocation9 + $0x108] sm:$0xff] }
 0x2ef   :  { %5174 = vmatpush2.bf16.msra.mxu0 %v8366_v18  ;;  %5217 = vmatpush2.bf16.msra.mxu1 %v8494_v17  ;;  %v8433_v18 = vcombine.high %v3764_v6, %v3768_v12  ;;  %v10444_v17 = vsub.s32 3, %v10427_v35  ;;  %v3604_v12 = vld [vmem:[#allocation9 + $0xc8] sm:$0xff] }
 0x2f0   :  { %5175 = vmatprep.subr.bf16.mxu0 %v8359_v19  ;;  %5218 = vmatprep.subr.bf16.mxu1 %v8487_v20  ;;  %v10447_v19 = vsub.s32 2, %v10427_v35  ;;  %v3139_v20 = vld [vmem:[#allocation7] sm:$0xf] }
 0x2f1   :  { %v3148_v24 = vrot.slane %v3139_v20, %v10430_v38  ;;  %v3156_v23 = vrot.slane %v3139_v20, %v10444_v17 }
 0x2f3   :  { %5176 = vmatpush2.bf16.msra.mxu0 %v8358_v26  ;;  %5219 = vmatpush2.bf16.msra.mxu1 %v8486_v27  ;;  %v3144_v26 = vrot.slane %v3139_v20, %v10433_v40  ;;  %v3152_v27 = vrot.slane %v3139_v20, %v10447_v19 }
 0x2f4   :  { %5177 = vmatprep.subr.bf16.mxu0 %v8351_v28  ;;  %5220 = vmatprep.subr.bf16.mxu1 %v8479_v25 }
 0x2f7   :  { %5178 = vmatpush2.bf16.msra.mxu0 %v8350_v9  ;;  %5221 = vmatpush2.bf16.msra.mxu1 %v8478_v10 }
 0x2f8   :  { %5179 = vmatprep.subr.bf16.mxu0 %v8343_v11  ;;  %5222 = vmatprep.subr.bf16.mxu1 %v8471_v13 }
 0x2fb   :  { %5180 = vmatpush2.bf16.msra.mxu0 %v8342_v43  ;;  %5223 = vmatpush2.bf16.msra.mxu1 %v8470_v31 }
 0x2fc   :  { %5181 = vmatprep.subr.bf16.mxu0 %v8335_v41  ;;  %5224 = vmatprep.subr.bf16.mxu1 %v8463_v37 }
 0x2ff   :  { %5182 = vmatpush2.bf16.msra.mxu0 %v8334_v44  ;;  %5225 = vmatpush2.bf16.msra.mxu1 %v8462_v34 }
 0x300   :  { %5183 = vmatprep.subr.bf16.mxu0 %v8327_v50  ;;  %5226 = vmatprep.subr.bf16.mxu1 %v8455_v52  ;;  %v3632_v50 = vld [vmem:[#allocation9 + $0x1a8] sm:$0xff] }
 0x301   :  { %v8296_v60 = vcombine.low %v3628_v45, %v3632_v50 }
 0x303   :  { %5184 = vmatpush2.bf16.msra.mxu0 %v8326_v46  ;;  %5227 = vmatpush2.bf16.msra.mxu1 %v8454_v51  ;;  %v3760_v46 = vld [vmem:[#allocation9 + $0x5a8] sm:$0xff] }
 0x304   :  { %5185 = vmatprep.subr.bf16.mxu0 %v8319_v48  ;;  %5228 = vmatprep.subr.bf16.mxu1 %v8447_v59  ;;  %v8297_v48 = vcombine.high %v3628_v45, %v3632_v50  ;;  %v8425_v56 = vcombine.high %v3756_v47, %v3760_v46  ;;  %v3752_v59 = vld [vmem:[#allocation9 + $0x568] sm:$0xff]  ;;  %v8424_v61 = vcombine.low %v3756_v47, %v3760_v46 }
 0x305   :  { %v3828_v50 = vld [vmem:[#allocation9 + $0x7c8] sm:$0xff] }
 0x306   :  { %v3832_v47 = vld [vmem:[#allocation9 + $0x7e8] sm:$0xff] }
 0x307   :  { %5186 = vmatpush2.bf16.msra.mxu0 %v8318_v57  ;;  %5229 = vmatpush2.bf16.msra.mxu1 %v8446_v58  ;;  %v3624_v57 = vld [vmem:[#allocation9 + $0x168] sm:$0xff] }
 0x308   :  { %5187 = vmatprep.subr.bf16.mxu0 %v8311_v63  ;;  %5230 = vmatprep.subr.bf16.mxu1 %v8439_v3  ;;  %v3748_v58 = vld [vmem:[#allocation9 + $0x548] sm:$0xff]  ;;  %v8289_v62 = vcombine.high %v3620_v55, %v3624_v57  ;;  %v8288_v4 = vcombine.low %v3620_v55, %v3624_v57 }
 0x309   :  { %v8417_v63 = vcombine.high %v3748_v58, %v3752_v59  ;;  %v3744_v3 = vld [vmem:[#allocation9 + $0x528] sm:$0xff]  ;;  %v8416_v5 = vcombine.low %v3748_v58, %v3752_v59 }
 0x30a   :  { %v3692_v57 = vld [vmem:[#allocation9 + $0x388] sm:$0xff] }
 0x30b   :  { %5188 = vmatpush2.bf16.msra.mxu0 %v8310_v1  ;;  %5231 = vmatpush2.bf16.msra.mxu1 %v8438_v2  ;;  %v3616_v1 = vld [vmem:[#allocation9 + $0x128] sm:$0xff] }
 0x30c   :  { %5243 = vmatprep.subr.bf16.mxu0 %v8305_v7  ;;  %5286 = vmatprep.subr.bf16.mxu1 %v8433_v18  ;;  %v3740_v2 = vld [vmem:[#allocation9 + $0x508] sm:$0xff]  ;;  %v8281_v6 = vcombine.high %v3612_v0, %v3616_v1  ;;  %v8280_v20 = vcombine.low %v3612_v0, %v3616_v1 }
 0x30d   :  { %v8409_v7 = vcombine.high %v3740_v2, %v3744_v3  ;;  %v3736_v18 = vld [vmem:[#allocation9 + $0x4e8] sm:$0xff] }
 0x30e   :  { %v3696_v58 = vld [vmem:[#allocation9 + $0x3a8] sm:$0xff] }
 0x30f   :  { %v3820_v59 = vld [vmem:[#allocation9 + $0x788] sm:$0xff] }
 0x310   :  { %v3684_v1 = vld [vmem:[#allocation9 + $0x348] sm:$0xff] }
 0x38e   :  { %v3515_v21 = vpop.f32.mrf.mxu0  ;;  %v3558_v22 = vpop.f32.mrf.mxu1 }
 0x38f   :  { %v3516_v11 = vadd.f32 %v3515_v21, %v3144_v26  ;;  %v3559_v13 = vadd.f32 %v3558_v22, %v3152_v27  ;;  %v8408_v21 = vcombine.low %v3740_v2, %v3744_v3  ;;  %v3688_v2 = vld [vmem:[#allocation9 + $0x368] sm:$0xff] }
 0x390   :  { %v3517_v28 = vpop.f32.mrf.mxu0  ;;  %v3560_v25 = vpop.f32.mrf.mxu1  ;;  %v3812_v3 = vld [vmem:[#allocation9 + $0x748] sm:$0xff] }
 0x391   :  { %v3518_v29 = vadd.f32 %v3517_v28, %v3148_v24  ;;  %v3561_v8 = vadd.f32 %v3560_v25, %v3156_v23  ;;  %v3567_v49 = vmax.f32 %v3516_v11, 0.0  ;;  %v3569_v42 = vmax.f32 %v3559_v13, 0.0  ;;  %v3728_v28 = vld [vmem:[#allocation9 + $0x4a8] sm:$0xff] }
 0x392   :  { %v3519_v30 = vpop.f32.mrf.mxu0  ;;  %v3562_v32 = vpop.f32.mrf.mxu1  ;;  %v3720_v11 = vld [vmem:[#allocation9 + $0x468] sm:$0xff] }
 0x393   :  { %v3520_v9 = vadd.f32 %v3519_v30, %v3144_v26  ;;  %v3563_v10 = vadd.f32 %v3562_v32, %v3152_v27  ;;  %v3568_v41 = vmax.f32 %v3518_v29, 0.0  ;;  %v3570_v37 = vmax.f32 %v3561_v8, 0.0  ;;  %v3600_v26 = vld [vmem:[#allocation9 + $0xa8] sm:$0xff] }
 0x394   :  { %v3521_v14 = vpop.f32.mrf.mxu0  ;;  %v3564_v36 = vpop.f32.mrf.mxu1  ;;  %v3724_v27 = vld [vmem:[#allocation9 + $0x488] sm:$0xff] }
 0x395   :  { %v3522_v33 = vadd.f32 %v3521_v14, %v3148_v24  ;;  %v3565_v39 = vadd.f32 %v3564_v36, %v3156_v23  ;;  %v3571_v43 = vmax.f32 %v3520_v9, 0.0  ;;  %v3573_v31 = vmax.f32 %v3563_v10, 0.0  ;;  %v3596_v23 = vld [vmem:[#allocation9 + $0x88] sm:$0xff] }
 0x396   :  { %v8265_v32 = vcombine.high %v3596_v23, %v3600_v26  ;;  %v8393_v29 = vcombine.high %v3724_v27, %v3728_v28  ;;  %v3588_v8 = vld [vmem:[#allocation9 + $0x48] sm:$0xff]  ;;  %v8264_v13 = vcombine.low %v3596_v23, %v3600_v26  ;;  %v8392_v14 = vcombine.low %v3724_v27, %v3728_v28 }
 0x397   :  { %v3572_v44 = vmax.f32 %v3522_v33, 0.0  ;;  %v3574_v34 = vmax.f32 %v3565_v39, 0.0  ;;  %v10457_v54 = vpack.c.bf16 %v3571_v43, %v3567_v49  ;;  %v10459_v53 = vpack.c.bf16 %v3573_v31, %v3569_v42  ;;  %v3592_v9 = vld [vmem:[#allocation9 + $0x68] sm:$0xff] }
 0x398   :  { %v3716_v10 = vld [vmem:[#allocation9 + $0x448] sm:$0xff]  ;;  %v8257_v36 = vcombine.high %v3588_v8, %v3592_v9 }
 0x399   :  { %v10453_v51 = vpack.c.bf16 %v3572_v44, %v3568_v41  ;;  %v10455_v52 = vpack.c.bf16 %v3574_v34, %v3570_v37  ;;  %v8385_v33 = vcombine.high %v3716_v10, %v3720_v11  ;;  %v3580_v39 = vld [vmem:[#allocation9 + $0x8] sm:$0xff]  ;;  %v8256_v37 = vcombine.low %v3588_v8, %v3592_v9 }
 0x39a   :  { %v3584_v43 = vld [vmem:[#allocation9 + $0x28] sm:$0xff]  ;;  %v8384_v44 = vcombine.low %v3716_v10, %v3720_v11 }
 0x39b   :  { %5189 = vmatprep.mubr.bf16.mxu0 %v10453_v51  ;;  %5232 = vmatprep.mubr.bf16.mxu1 %v10455_v52  ;;  %v3708_v31 = vld [vmem:[#allocation9 + $0x408] sm:$0xff]  ;;  %v8249_v34 = vcombine.high %v3580_v39, %v3584_v43  ;;  %v8248_v46 = vcombine.low %v3580_v39, %v3584_v43 }
 0x39c   :  { %5190 = vmatmul.mubr.bf16.vlgmr.msra.gmra.mxu0 %v10457_v54  ;;  %5233 = vmatmul.mubr.bf16.vlgmr.msra.gmra.mxu1 %v10459_v53  ;;  %v3712_v41 = vld [vmem:[#allocation9 + $0x428] sm:$0xff] }
 0x39d   :  { %5244 = vmatpush1.bf16.msra.mxu0 %v8304_v15  ;;  %5287 = vmatpush1.bf16.msra.mxu1 %v8432_v16  ;;  %v3608_v15 = vld [vmem:[#allocation9 + $0xe8] sm:$0xff]  ;;  %v8377_v45 = vcombine.high %v3708_v31, %v3712_v41  ;;  %v8376_v55 = vcombine.low %v3708_v31, %v3712_v41 }
 0x39e   :  { %5275 = vmatprep.mubr.bf16.mxu0 %v10453_v51  ;;  %5318 = vmatprep.mubr.bf16.mxu1 %v10455_v52  ;;  %v3732_v16 = vld [vmem:[#allocation9 + $0x4c8] sm:$0xff]  ;;  %v8273_v22 = vcombine.high %v3604_v12, %v3608_v15  ;;  %v8272_v25 = vcombine.low %v3604_v12, %v3608_v15 }
 0x39f   :  { %5245 = vmatprep.subr.bf16.mxu0 %v8297_v48  ;;  %5288 = vmatprep.subr.bf16.mxu1 %v8425_v56  ;;  %v8401_v24 = vcombine.high %v3732_v16, %v3736_v18  ;;  %v8400_v30 = vcombine.low %v3732_v16, %v3736_v18  ;;  %v3700_v49 = vld [vmem:[#allocation9 + $0x3c8] sm:$0xff]  ;;  %v8497_v56 = vcombine.high %v3828_v50, %v3832_v47 }
 0x3a0   :  { %v3704_v42 = vld [vmem:[#allocation9 + $0x3e8] sm:$0xff] }
 0x3a1   :  { %5246 = vmatpush1.bf16.msra.mxu0 %v8296_v60  ;;  %5289 = vmatpush1.bf16.msra.mxu1 %v8424_v61  ;;  %v8369_v48 = vcombine.high %v3700_v49, %v3704_v42  ;;  %v3824_v60 = vld [vmem:[#allocation9 + $0x7a8] sm:$0xff]  ;;  %v8368_v61 = vcombine.low %v3700_v49, %v3704_v42 }
 0x3a2   :  { %5247 = vmatprep.subr.bf16.mxu0 %v8289_v62  ;;  %5290 = vmatprep.subr.bf16.mxu1 %v8417_v63  ;;  %v8496_v62 = vcombine.low %v3828_v50, %v3832_v47  ;;  %v8361_v63 = vcombine.high %v3692_v57, %v3696_v58  ;;  %v8489_v0 = vcombine.high %v3820_v59, %v3824_v60  ;;  %v3676_v15 = vld [vmem:[#allocation9 + $0x308] sm:$0xff] }
 0x3a3   :  { %v3680_v16 = vld [vmem:[#allocation9 + $0x328] sm:$0xff] }
 0x3a4   :  { %v3804_v18 = vld [vmem:[#allocation9 + $0x708] sm:$0xff] }
 0x3a5   :  { %5248 = vmatpush1.bf16.msra.mxu0 %v8288_v4  ;;  %5291 = vmatpush1.bf16.msra.mxu1 %v8416_v5  ;;  %v3816_v4 = vld [vmem:[#allocation9 + $0x768] sm:$0xff]  ;;  %v8360_v5 = vcombine.low %v3692_v57, %v3696_v58  ;;  %v3637_v58 = vld [vmem:[#allocation9 + $0x1d0] sm:$0xff] }
 0x3a6   :  { %5249 = vmatprep.subr.bf16.mxu0 %v8281_v6  ;;  %5292 = vmatprep.subr.bf16.mxu1 %v8409_v7  ;;  %v8488_v6 = vcombine.low %v3820_v59, %v3824_v60  ;;  %v8353_v7 = vcombine.high %v3684_v1, %v3688_v2  ;;  %v8481_v12 = vcombine.high %v3812_v3, %v3816_v4  ;;  %v3668_v26 = vld [vmem:[#allocation9 + $0x2c8] sm:$0xff]  ;;  %v3641_v59 = vld [vmem:[#allocation9 + $0x1f0] sm:$0xff] }
 0x3a7   :  { %v3672_v27 = vld [vmem:[#allocation9 + $0x2e8] sm:$0xff]  ;;  %v3765_v60 = vld [vmem:[#allocation9 + $0x5d0] sm:$0xff] }
 0x3a8   :  { %v3796_v28 = vld [vmem:[#allocation9 + $0x6c8] sm:$0xff] }
 0x3a9   :  { %5250 = vmatpush1.bf16.msra.mxu0 %v8280_v20  ;;  %5293 = vmatpush1.bf16.msra.mxu1 %v8408_v21  ;;  %v3808_v20 = vld [vmem:[#allocation9 + $0x728] sm:$0xff]  ;;  %v8352_v21 = vcombine.low %v3684_v1, %v3688_v2  ;;  %v3629_v2 = vld [vmem:[#allocation9 + $0x190] sm:$0xff] }
 0x3aa   :  { %5251 = vmatprep.subr.bf16.mxu0 %v8273_v22  ;;  %5294 = vmatprep.subr.bf16.mxu1 %v8401_v24  ;;  %v8480_v22 = vcombine.low %v3812_v3, %v3816_v4  ;;  %v8345_v24 = vcombine.high %v3676_v15, %v3680_v16  ;;  %v8473_v23 = vcombine.high %v3804_v18, %v3808_v20  ;;  %v3660_v9 = vld [vmem:[#allocation9 + $0x288] sm:$0xff]  ;;  %v3633_v3 = vld [vmem:[#allocation9 + $0x1b0] sm:$0xff] }
 0x3ab   :  { %v3664_v10 = vld [vmem:[#allocation9 + $0x2a8] sm:$0xff]  ;;  %v3757_v4 = vld [vmem:[#allocation9 + $0x590] sm:$0xff] }
 0x3ac   :  { %v3788_v11 = vld [vmem:[#allocation9 + $0x688] sm:$0xff] }
 0x3ad   :  { %5252 = vmatpush1.bf16.msra.mxu0 %v8272_v25  ;;  %5295 = vmatpush1.bf16.msra.mxu1 %v8400_v30  ;;  %v3800_v25 = vld [vmem:[#allocation9 + $0x6e8] sm:$0xff]  ;;  %v8344_v30 = vcombine.low %v3676_v15, %v3680_v16  ;;  %v3621_v16 = vld [vmem:[#allocation9 + $0x150] sm:$0xff] }
 0x3ae   :  { %5253 = vmatprep.subr.bf16.mxu0 %v8265_v32  ;;  %5296 = vmatprep.subr.bf16.mxu1 %v8393_v29  ;;  %v8472_v32 = vcombine.low %v3804_v18, %v3808_v20  ;;  %v8337_v29 = vcombine.high %v3668_v26, %v3672_v27  ;;  %v8465_v8 = vcombine.high %v3796_v28, %v3800_v25  ;;  %v3652_v43 = vld [vmem:[#allocation9 + $0x248] sm:$0xff]  ;;  %v3625_v18 = vld [vmem:[#allocation9 + $0x170] sm:$0xff] }
 0x3af   :  { %v3656_v31 = vld [vmem:[#allocation9 + $0x268] sm:$0xff]  ;;  %v3749_v20 = vld [vmem:[#allocation9 + $0x550] sm:$0xff] }
 0x3b0   :  { %v3780_v41 = vld [vmem:[#allocation9 + $0x648] sm:$0xff] }
 0x3b1   :  { %5254 = vmatpush1.bf16.msra.mxu0 %v8264_v13  ;;  %5297 = vmatpush1.bf16.msra.mxu1 %v8392_v14  ;;  %v3792_v13 = vld [vmem:[#allocation9 + $0x6a8] sm:$0xff]  ;;  %v8336_v14 = vcombine.low %v3668_v26, %v3672_v27  ;;  %v3613_v27 = vld [vmem:[#allocation9 + $0x110] sm:$0xff] }
 0x3b2   :  { %5255 = vmatprep.subr.bf16.mxu0 %v8257_v36  ;;  %5298 = vmatprep.subr.bf16.mxu1 %v8385_v33  ;;  %v8464_v36 = vcombine.low %v3796_v28, %v3800_v25  ;;  %v8329_v33 = vcombine.high %v3660_v9, %v3664_v10  ;;  %v8457_v39 = vcombine.high %v3788_v11, %v3792_v13  ;;  %v3644_v42 = vld [vmem:[#allocation9 + $0x208] sm:$0xff]  ;;  %v3617_v28 = vld [vmem:[#allocation9 + $0x130] sm:$0xff] }
 0x3b3   :  { %v3648_v50 = vld [vmem:[#allocation9 + $0x228] sm:$0xff]  ;;  %v3741_v25 = vld [vmem:[#allocation9 + $0x510] sm:$0xff] }
 0x3b4   :  { %v3772_v47 = vld [vmem:[#allocation9 + $0x608] sm:$0xff] }
 0x3b5   :  { %5256 = vmatpush1.bf16.msra.mxu0 %v8256_v37  ;;  %5299 = vmatpush1.bf16.msra.mxu1 %v8384_v44  ;;  %v3784_v37 = vld [vmem:[#allocation9 + $0x668] sm:$0xff]  ;;  %v8328_v44 = vcombine.low %v3660_v9, %v3664_v10  ;;  %v3605_v10 = vld [vmem:[#allocation9 + $0xd0] sm:$0xff] }
 0x3b6   :  { %5257 = vmatprep.subr.bf16.mxu0 %v8249_v34  ;;  %5300 = vmatprep.subr.bf16.mxu1 %v8377_v45  ;;  %v8456_v34 = vcombine.low %v3788_v11, %v3792_v13  ;;  %v8321_v45 = vcombine.high %v3652_v43, %v3656_v31  ;;  %v8449_v49 = vcombine.high %v3780_v41, %v3784_v37  ;;  %v3609_v11 = vld [vmem:[#allocation9 + $0xf0] sm:$0xff] }
 0x3b7   :  { %v3733_v13 = vld [vmem:[#allocation9 + $0x4d0] sm:$0xff] }
 0x3b9   :  { %5258 = vmatpush1.bf16.msra.mxu0 %v8248_v46  ;;  %5301 = vmatpush1.bf16.msra.mxu1 %v8376_v55  ;;  %v3776_v46 = vld [vmem:[#allocation9 + $0x628] sm:$0xff]  ;;  %v8320_v55 = vcombine.low %v3652_v43, %v3656_v31  ;;  %v3597_v31 = vld [vmem:[#allocation9 + $0x90] sm:$0xff] }
 0x3ba   :  { %5259 = vmatprep.subr.bf16.mxu0 %v8369_v48  ;;  %5302 = vmatprep.subr.bf16.mxu1 %v8497_v56  ;;  %v8448_v48 = vcombine.low %v3780_v41, %v3784_v37  ;;  %v8313_v56 = vcombine.high %v3644_v42, %v3648_v50  ;;  %v8441_v57 = vcombine.high %v3772_v47, %v3776_v46  ;;  %v3601_v41 = vld [vmem:[#allocation9 + $0xb0] sm:$0xff] }
 0x3bb   :  { %v3725_v37 = vld [vmem:[#allocation9 + $0x490] sm:$0xff] }
 0x3bd   :  { %5260 = vmatpush2.bf16.msra.mxu0 %v8368_v61  ;;  %5303 = vmatpush2.bf16.msra.mxu1 %v8496_v62  ;;  %v3769_v61 = vld [vmem:[#allocation9 + $0x5f0] sm:$0xff]  ;;  %v8312_v62 = vcombine.low %v3644_v42, %v3648_v50 }
 0x3be   :  { %5261 = vmatprep.subr.bf16.mxu0 %v8361_v63  ;;  %5304 = vmatprep.subr.bf16.mxu1 %v8489_v0  ;;  %v8440_v63 = vcombine.low %v3772_v47, %v3776_v46  ;;  %v8307_v0 = vcombine.high %v3637_v58, %v3641_v59  ;;  %v8435_v1 = vcombine.high %v3765_v60, %v3769_v61  ;;  %v3589_v50 = vld [vmem:[#allocation9 + $0x50] sm:$0xff] }
 0x3bf   :  { %v3593_v47 = vld [vmem:[#allocation9 + $0x70] sm:$0xff] }
 0x3c0   :  { %v3717_v46 = vld [vmem:[#allocation9 + $0x450] sm:$0xff] }
 0x3c1   :  { %5262 = vmatpush2.bf16.msra.mxu0 %v8360_v5  ;;  %5305 = vmatpush2.bf16.msra.mxu1 %v8488_v6  ;;  %v3761_v5 = vld [vmem:[#allocation9 + $0x5b0] sm:$0xff]  ;;  %v8306_v6 = vcombine.low %v3637_v58, %v3641_v59 }
 0x3c2   :  { %5263 = vmatprep.subr.bf16.mxu0 %v8353_v7  ;;  %5306 = vmatprep.subr.bf16.mxu1 %v8481_v12  ;;  %v8434_v7 = vcombine.low %v3765_v60, %v3769_v61  ;;  %v8299_v12 = vcombine.high %v3629_v2, %v3633_v3  ;;  %v8427_v15 = vcombine.high %v3757_v4, %v3761_v5  ;;  %v3581_v59 = vld [vmem:[#allocation9 + $0x10] sm:$0xff] }
 0x3c3   :  { %v3585_v60 = vld [vmem:[#allocation9 + $0x30] sm:$0xff] }
 0x3c4   :  { %v3709_v61 = vld [vmem:[#allocation9 + $0x410] sm:$0xff] }
 0x3c5   :  { %5264 = vmatpush2.bf16.msra.mxu0 %v8352_v21  ;;  %5307 = vmatpush2.bf16.msra.mxu1 %v8480_v22  ;;  %v3753_v21 = vld [vmem:[#allocation9 + $0x570] sm:$0xff]  ;;  %v8298_v22 = vcombine.low %v3629_v2, %v3633_v3 }
 0x3c6   :  { %5265 = vmatprep.subr.bf16.mxu0 %v8345_v24  ;;  %5308 = vmatprep.subr.bf16.mxu1 %v8473_v23  ;;  %v8426_v24 = vcombine.low %v3757_v4, %v3761_v5  ;;  %v8291_v23 = vcombine.high %v3621_v16, %v3625_v18  ;;  %v8419_v26 = vcombine.high %v3749_v20, %v3753_v21  ;;  %v3701_v3 = vld [vmem:[#allocation9 + $0x3d0] sm:$0xff] }
 0x3c7   :  { %v3705_v4 = vld [vmem:[#allocation9 + $0x3f0] sm:$0xff] }
 0x3c8   :  { %v3829_v5 = vld [vmem:[#allocation9 + $0x7d0] sm:$0xff] }
 0x3c9   :  { %5266 = vmatpush2.bf16.msra.mxu0 %v8344_v30  ;;  %5309 = vmatpush2.bf16.msra.mxu1 %v8472_v32  ;;  %v3745_v30 = vld [vmem:[#allocation9 + $0x530] sm:$0xff]  ;;  %v8290_v32 = vcombine.low %v3621_v16, %v3625_v18 }
 0x3ca   :  { %5267 = vmatprep.subr.bf16.mxu0 %v8337_v29  ;;  %5310 = vmatprep.subr.bf16.mxu1 %v8465_v8  ;;  %v8418_v29 = vcombine.low %v3749_v20, %v3753_v21  ;;  %v8283_v8 = vcombine.high %v3613_v27, %v3617_v28  ;;  %v8411_v9 = vcombine.high %v3741_v25, %v3745_v30  ;;  %v3693_v18 = vld [vmem:[#allocation9 + $0x390] sm:$0xff] }
 0x3cb   :  { %v3697_v20 = vld [vmem:[#allocation9 + $0x3b0] sm:$0xff] }
 0x3cc   :  { %v3821_v21 = vld [vmem:[#allocation9 + $0x790] sm:$0xff] }
 0x3cd   :  { %5268 = vmatpush2.bf16.msra.mxu0 %v8336_v14  ;;  %5311 = vmatpush2.bf16.msra.mxu1 %v8464_v36  ;;  %v3737_v14 = vld [vmem:[#allocation9 + $0x4f0] sm:$0xff]  ;;  %v8282_v36 = vcombine.low %v3613_v27, %v3617_v28 }
 0x3ce   :  { %5269 = vmatprep.subr.bf16.mxu0 %v8329_v33  ;;  %5312 = vmatprep.subr.bf16.mxu1 %v8457_v39  ;;  %v8410_v33 = vcombine.low %v3741_v25, %v3745_v30  ;;  %v8275_v39 = vcombine.high %v3605_v10, %v3609_v11  ;;  %v8403_v43 = vcombine.high %v3733_v13, %v3737_v14  ;;  %v3685_v28 = vld [vmem:[#allocation9 + $0x350] sm:$0xff] }
 0x3cf   :  { %v3689_v25 = vld [vmem:[#allocation9 + $0x370] sm:$0xff] }
 0x3d0   :  { %v3813_v30 = vld [vmem:[#allocation9 + $0x750] sm:$0xff] }
 0x3d1   :  { %5270 = vmatpush2.bf16.msra.mxu0 %v8328_v44  ;;  %5313 = vmatpush2.bf16.msra.mxu1 %v8456_v34  ;;  %v3729_v44 = vld [vmem:[#allocation9 + $0x4b0] sm:$0xff]  ;;  %v8274_v34 = vcombine.low %v3605_v10, %v3609_v11 }
 0x3d2   :  { %5271 = vmatprep.subr.bf16.mxu0 %v8321_v45  ;;  %5314 = vmatprep.subr.bf16.mxu1 %v8449_v49  ;;  %v8402_v45 = vcombine.low %v3733_v13, %v3737_v14  ;;  %v8267_v49 = vcombine.high %v3597_v31, %v3601_v41  ;;  %v8395_v42 = vcombine.high %v3725_v37, %v3729_v44  ;;  %v3677_v11 = vld [vmem:[#allocation9 + $0x310] sm:$0xff] }
 0x3d3   :  { %v3681_v13 = vld [vmem:[#allocation9 + $0x330] sm:$0xff] }
 0x3d4   :  { %v3805_v14 = vld [vmem:[#allocation9 + $0x710] sm:$0xff] }
 0x3d5   :  { %5272 = vmatpush2.bf16.msra.mxu0 %v8320_v55  ;;  %5315 = vmatpush2.bf16.msra.mxu1 %v8448_v48  ;;  %v3721_v55 = vld [vmem:[#allocation9 + $0x470] sm:$0xff]  ;;  %v8266_v48 = vcombine.low %v3597_v31, %v3601_v41 }
 0x3d6   :  { %5273 = vmatprep.subr.bf16.mxu0 %v8313_v56  ;;  %5316 = vmatprep.subr.bf16.mxu1 %v8441_v57  ;;  %v8394_v56 = vcombine.low %v3725_v37, %v3729_v44  ;;  %v8259_v57 = vcombine.high %v3589_v50, %v3593_v47  ;;  %v8387_v58 = vcombine.high %v3717_v46, %v3721_v55  ;;  %v3669_v41 = vld [vmem:[#allocation9 + $0x2d0] sm:$0xff] }
 0x3d7   :  { %v3673_v37 = vld [vmem:[#allocation9 + $0x2f0] sm:$0xff] }
 0x3d8   :  { %v3797_v44 = vld [vmem:[#allocation9 + $0x6d0] sm:$0xff] }
 0x3d9   :  { %5274 = vmatpush2.bf16.msra.mxu0 %v8312_v62  ;;  %5317 = vmatpush2.bf16.msra.mxu1 %v8440_v63  ;;  %v3713_v62 = vld [vmem:[#allocation9 + $0x430] sm:$0xff]  ;;  %v8258_v63 = vcombine.low %v3589_v50, %v3593_v47 }
 0x3da   :  { %5329 = vmatprep.subr.bf16.mxu0 %v8307_v0  ;;  %5372 = vmatprep.subr.bf16.mxu1 %v8435_v1  ;;  %v8386_v0 = vcombine.low %v3717_v46, %v3721_v55  ;;  %v8251_v1 = vcombine.high %v3581_v59, %v3585_v60  ;;  %v8379_v2 = vcombine.high %v3709_v61, %v3713_v62  ;;  %v3661_v47 = vld [vmem:[#allocation9 + $0x290] sm:$0xff] }
 0x3db   :  { %v3665_v46 = vld [vmem:[#allocation9 + $0x2b0] sm:$0xff] }
 0x3dc   :  { %5276 = vmatmul.mubr.bf16.vlgmr.msra.gmra.mxu0 %v10457_v54  ;;  %5319 = vmatmul.mubr.bf16.vlgmr.msra.gmra.mxu1 %v10459_v53  ;;  %v3789_v55 = vld [vmem:[#allocation9 + $0x690] sm:$0xff] }
 0x3dd   :  { %5330 = vmatpush1.bf16.msra.mxu0 %v8306_v6  ;;  %5361 = vmatprep.mubr.bf16.mxu0 %v10453_v51  ;;  %v3833_v6 = vld [vmem:[#allocation9 + $0x7f0] sm:$0xff] }
 0x3de   :  { %5373 = vmatpush1.bf16.msra.mxu1 %v8434_v7  ;;  %5404 = vmatprep.mubr.bf16.mxu1 %v10455_v52  ;;  %v8250_v7 = vcombine.low %v3581_v59, %v3585_v60  ;;  %v8499_v16 = vcombine.high %v3829_v5, %v3833_v6  ;;  %v3653_v60 = vld [vmem:[#allocation9 + $0x250] sm:$0xff] }
 0x3df   :  { %5331 = vmatprep.subr.bf16.mxu0 %v8299_v12  ;;  %5374 = vmatprep.subr.bf16.mxu1 %v8427_v15  ;;  %v8378_v12 = vcombine.low %v3709_v61, %v3713_v62  ;;  %v8371_v15 = vcombine.high %v3701_v3, %v3705_v4  ;;  %v3657_v61 = vld [vmem:[#allocation9 + $0x270] sm:$0xff] }
 0x3e0   :  { %v3781_v62 = vld [vmem:[#allocation9 + $0x650] sm:$0xff] }
 0x3e1   :  { %5332 = vmatpush1.bf16.msra.mxu0 %v8298_v22  ;;  %v3825_v22 = vld [vmem:[#allocation9 + $0x7b0] sm:$0xff] }
 0x3e2   :  { %5375 = vmatpush1.bf16.msra.mxu1 %v8426_v24  ;;  %5333 = vmatprep.subr.bf16.mxu0 %v8291_v23  ;;  %v8370_v24 = vcombine.low %v3701_v3, %v3705_v4  ;;  %v8498_v23 = vcombine.low %v3829_v5, %v3833_v6  ;;  %v8491_v27 = vcombine.high %v3821_v21, %v3825_v22  ;;  %v3645_v4 = vld [vmem:[#allocation9 + $0x210] sm:$0xff] }
 0x3e3   :  { %5376 = vmatprep.subr.bf16.mxu1 %v8419_v26  ;;  %v8363_v26 = vcombine.high %v3693_v18, %v3697_v20  ;;  %v3649_v5 = vld [vmem:[#allocation9 + $0x230] sm:$0xff] }
 0x3e4   :  { %v3773_v6 = vld [vmem:[#allocation9 + $0x610] sm:$0xff] }
 0x3e5   :  { %5334 = vmatpush1.bf16.msra.mxu0 %v8290_v32  ;;  %v3817_v32 = vld [vmem:[#allocation9 + $0x770] sm:$0xff] }
 0x3e6   :  { %5377 = vmatpush1.bf16.msra.mxu1 %v8418_v29  ;;  %5335 = vmatprep.subr.bf16.mxu0 %v8283_v8  ;;  %v8362_v29 = vcombine.low %v3693_v18, %v3697_v20  ;;  %v8490_v8 = vcombine.low %v3821_v21, %v3825_v22  ;;  %v8483_v10 = vcombine.high %v3813_v30, %v3817_v32  ;;  %v3638_v20 = vld [vmem:[#allocation9 + $0x1d8] sm:$0xff] }
 0x3e7   :  { %5378 = vmatprep.subr.bf16.mxu1 %v8411_v9  ;;  %v8355_v9 = vcombine.high %v3685_v28, %v3689_v25  ;;  %v3642_v21 = vld [vmem:[#allocation9 + $0x1f8] sm:$0xff] }
 0x3e8   :  { %v3766_v22 = vld [vmem:[#allocation9 + $0x5d8] sm:$0xff] }
 0x3e9   :  { %5336 = vmatpush1.bf16.msra.mxu0 %v8282_v36  ;;  %v3809_v36 = vld [vmem:[#allocation9 + $0x730] sm:$0xff] }
 0x3ea   :  { %5379 = vmatpush1.bf16.msra.mxu1 %v8410_v33  ;;  %5337 = vmatprep.subr.bf16.mxu0 %v8275_v39  ;;  %v8354_v33 = vcombine.low %v3685_v28, %v3689_v25  ;;  %v8482_v39 = vcombine.low %v3813_v30, %v3817_v32  ;;  %v8475_v31 = vcombine.high %v3805_v14, %v3809_v36  ;;  %v3630_v25 = vld [vmem:[#allocation9 + $0x198] sm:$0xff] }
 0x3eb   :  { %5380 = vmatprep.subr.bf16.mxu1 %v8403_v43  ;;  %v8347_v43 = vcombine.high %v3677_v11, %v3681_v13  ;;  %v3634_v30 = vld [vmem:[#allocation9 + $0x1b8] sm:$0xff]  ;;  %v8308_v32 = vcombine.low %v3638_v20, %v3642_v21 }
 0x3ed   :  { %5338 = vmatpush1.bf16.msra.mxu0 %v8274_v34  ;;  %v3801_v34 = vld [vmem:[#allocation9 + $0x6f0] sm:$0xff] }
 0x3ee   :  { %5381 = vmatpush1.bf16.msra.mxu1 %v8402_v45  ;;  %5339 = vmatprep.subr.bf16.mxu0 %v8267_v49  ;;  %v8346_v45 = vcombine.low %v3677_v11, %v3681_v13  ;;  %v8474_v49 = vcombine.low %v3805_v14, %v3809_v36  ;;  %v8467_v50 = vcombine.high %v3797_v44, %v3801_v34  ;;  %v3622_v11 = vld [vmem:[#allocation9 + $0x158] sm:$0xff] }
 0x3ef   :  { %5382 = vmatprep.subr.bf16.mxu1 %v8395_v42  ;;  %v8339_v42 = vcombine.high %v3669_v41, %v3673_v37  ;;  %v3626_v13 = vld [vmem:[#allocation9 + $0x178] sm:$0xff] }
 0x3f0   :  { %v3750_v36 = vld [vmem:[#allocation9 + $0x558] sm:$0xff] }
 0x3f1   :  { %5340 = vmatpush1.bf16.msra.mxu0 %v8266_v48  ;;  %v3793_v48 = vld [vmem:[#allocation9 + $0x6b0] sm:$0xff] }
 0x3f2   :  { %5383 = vmatpush1.bf16.msra.mxu1 %v8394_v56  ;;  %5341 = vmatprep.subr.bf16.mxu0 %v8259_v57  ;;  %v8338_v56 = vcombine.low %v3669_v41, %v3673_v37  ;;  %v8466_v57 = vcombine.low %v3797_v44, %v3801_v34  ;;  %v8459_v59 = vcombine.high %v3789_v55, %v3793_v48  ;;  %v3614_v37 = vld [vmem:[#allocation9 + $0x118] sm:$0xff] }
 0x3f3   :  { %5384 = vmatprep.subr.bf16.mxu1 %v8387_v58  ;;  %v8331_v58 = vcombine.high %v3661_v47, %v3665_v46  ;;  %v3618_v44 = vld [vmem:[#allocation9 + $0x138] sm:$0xff] }
 0x3f4   :  { %v3742_v34 = vld [vmem:[#allocation9 + $0x518] sm:$0xff] }
 0x3f5   :  { %5342 = vmatpush1.bf16.msra.mxu0 %v8258_v63  ;;  %v3785_v63 = vld [vmem:[#allocation9 + $0x670] sm:$0xff] }
 0x3f6   :  { %5385 = vmatpush1.bf16.msra.mxu1 %v8386_v0  ;;  %5343 = vmatprep.subr.bf16.mxu0 %v8251_v1  ;;  %v8330_v0 = vcombine.low %v3661_v47, %v3665_v46  ;;  %v8458_v1 = vcombine.low %v3789_v55, %v3793_v48  ;;  %v8451_v3 = vcombine.high %v3781_v62, %v3785_v63  ;;  %v3606_v47 = vld [vmem:[#allocation9 + $0xd8] sm:$0xff] }
 0x3f7   :  { %5386 = vmatprep.subr.bf16.mxu1 %v8379_v2  ;;  %v8323_v2 = vcombine.high %v3653_v60, %v3657_v61  ;;  %v3610_v46 = vld [vmem:[#allocation9 + $0xf8] sm:$0xff] }
 0x3f8   :  { %v3734_v55 = vld [vmem:[#allocation9 + $0x4d8] sm:$0xff] }
 0x3f9   :  { %5344 = vmatpush1.bf16.msra.mxu0 %v8250_v7  ;;  %v3777_v7 = vld [vmem:[#allocation9 + $0x630] sm:$0xff]  ;;  %v3738_v48 = vld [vmem:[#allocation9 + $0x4f8] sm:$0xff] }
 0x3fa   :  { %5387 = vmatpush1.bf16.msra.mxu1 %v8378_v12  ;;  %5345 = vmatprep.subr.bf16.mxu0 %v8371_v15  ;;  %v8322_v12 = vcombine.low %v3653_v60, %v3657_v61  ;;  %v8450_v15 = vcombine.low %v3781_v62, %v3785_v63  ;;  %v8443_v18 = vcombine.high %v3773_v6, %v3777_v7  ;;  %v3602_v60 = vld [vmem:[#allocation9 + $0xb8] sm:$0xff] }
 0x3fb   :  { %5388 = vmatprep.subr.bf16.mxu1 %v8499_v16  ;;  %v8315_v16 = vcombine.high %v3645_v4, %v3649_v5  ;;  %v3726_v61 = vld [vmem:[#allocation9 + $0x498] sm:$0xff]  ;;  %v8276_v63 = vcombine.low %v3606_v47, %v3610_v46 }
 0x3fc   :  { %v3730_v62 = vld [vmem:[#allocation9 + $0x4b8] sm:$0xff] }
 0x3fd   :  { %5346 = vmatpush2.bf16.msra.mxu0 %v8370_v24  ;;  %v3770_v24 = vld [vmem:[#allocation9 + $0x5f8] sm:$0xff] }
 0x3fe   :  { %5389 = vmatpush2.bf16.msra.mxu1 %v8498_v23  ;;  %5347 = vmatprep.subr.bf16.mxu0 %v8363_v26  ;;  %v8314_v23 = vcombine.low %v3645_v4, %v3649_v5  ;;  %v8442_v26 = vcombine.low %v3773_v6, %v3777_v7  ;;  %v8437_v28 = vcombine.high %v3766_v22, %v3770_v24  ;;  %v3594_v4 = vld [vmem:[#allocation9 + $0x78] sm:$0xff] }
 0x3ff   :  { %5390 = vmatprep.subr.bf16.mxu1 %v8491_v27  ;;  %v8309_v27 = vcombine.high %v3638_v20, %v3642_v21  ;;  %v3718_v5 = vld [vmem:[#allocation9 + $0x458] sm:$0xff] }
 0x400   :  { %v3722_v6 = vld [vmem:[#allocation9 + $0x478] sm:$0xff] }
 0x401   :  { %5348 = vmatpush2.bf16.msra.mxu0 %v8362_v29  ;;  %v3758_v29 = vld [vmem:[#allocation9 + $0x598] sm:$0xff] }
 0x402   :  { %5391 = vmatpush2.bf16.msra.mxu1 %v8490_v8  ;;  %5349 = vmatprep.subr.bf16.mxu0 %v8355_v9  ;;  %v3762_v8 = vld [vmem:[#allocation9 + $0x5b8] sm:$0xff]  ;;  %v8436_v9 = vcombine.low %v3766_v22, %v3770_v24 }
 0x403   :  { %5392 = vmatprep.subr.bf16.mxu1 %v8483_v10  ;;  %v8301_v10 = vcombine.high %v3630_v25, %v3634_v30  ;;  %v8429_v14 = vcombine.high %v3758_v29, %v3762_v8  ;;  %v3586_v20 = vld [vmem:[#allocation9 + $0x38] sm:$0xff] }
 0x404   :  { %v3710_v21 = vld [vmem:[#allocation9 + $0x418] sm:$0xff] }
 0x405   :  { %5350 = vmatpush2.bf16.msra.mxu0 %v8354_v33  ;;  %v3754_v33 = vld [vmem:[#allocation9 + $0x578] sm:$0xff] }
 0x406   :  { %5393 = vmatpush2.bf16.msra.mxu1 %v8482_v39  ;;  %5351 = vmatprep.subr.bf16.mxu0 %v8347_v43  ;;  %v8300_v39 = vcombine.low %v3630_v25, %v3634_v30  ;;  %v8428_v43 = vcombine.low %v3758_v29, %v3762_v8  ;;  %v8421_v41 = vcombine.high %v3750_v36, %v3754_v33  ;;  %v3714_v22 = vld [vmem:[#allocation9 + $0x438] sm:$0xff] }
 0x407   :  { %5394 = vmatprep.subr.bf16.mxu1 %v8475_v31  ;;  %v8293_v31 = vcombine.high %v3622_v11, %v3626_v13  ;;  %v3706_v25 = vld [vmem:[#allocation9 + $0x3f8] sm:$0xff]  ;;  %v8380_v8 = vcombine.low %v3710_v21, %v3714_v22 }
 0x408   :  { %v3830_v30 = vld [vmem:[#allocation9 + $0x7d8] sm:$0xff] }
 0x409   :  { %5352 = vmatpush2.bf16.msra.mxu0 %v8346_v45  ;;  %v3746_v45 = vld [vmem:[#allocation9 + $0x538] sm:$0xff] }
 0x40a   :  { %5395 = vmatpush2.bf16.msra.mxu1 %v8474_v49  ;;  %5353 = vmatprep.subr.bf16.mxu0 %v8339_v42  ;;  %v8292_v49 = vcombine.low %v3622_v11, %v3626_v13  ;;  %v8420_v42 = vcombine.low %v3750_v36, %v3754_v33  ;;  %v3694_v11 = vld [vmem:[#allocation9 + $0x398] sm:$0xff] }
 0x40b   :  { %5396 = vmatprep.subr.bf16.mxu1 %v8467_v50  ;;  %v8285_v50 = vcombine.high %v3614_v37, %v3618_v44  ;;  %v3698_v13 = vld [vmem:[#allocation9 + $0x3b8] sm:$0xff] }
 0x40c   :  { %v3826_v36 = vld [vmem:[#allocation9 + $0x7b8] sm:$0xff] }
 0x40d   :  { %5354 = vmatpush2.bf16.msra.mxu0 %v8338_v56  ;;  %v8412_v56 = vcombine.low %v3742_v34, %v3746_v45 }
 0x40e   :  { %5397 = vmatpush2.bf16.msra.mxu1 %v8466_v57  ;;  %5355 = vmatprep.subr.bf16.mxu0 %v8331_v58  ;;  %v8277_v57 = vcombine.high %v3606_v47, %v3610_v46  ;;  %v8405_v58 = vcombine.high %v3734_v55, %v3738_v48  ;;  %v3682_v47 = vld [vmem:[#allocation9 + $0x338] sm:$0xff] }
 0x40f   :  { %5398 = vmatprep.subr.bf16.mxu1 %v8459_v59  ;;  %v3598_v59 = vld [vmem:[#allocation9 + $0x98] sm:$0xff] }
 0x410   :  { %v8268_v7 = vcombine.low %v3598_v59, %v3602_v60  ;;  %v3806_v46 = vld [vmem:[#allocation9 + $0x718] sm:$0xff] }
 0x411   :  { %5356 = vmatpush2.bf16.msra.mxu0 %v8330_v0  ;;  %v8404_v0 = vcombine.low %v3734_v55, %v3738_v48  ;;  %v3810_v55 = vld [vmem:[#allocation9 + $0x738] sm:$0xff] }
 0x412   :  { %5399 = vmatpush2.bf16.msra.mxu1 %v8458_v1  ;;  %5357 = vmatprep.subr.bf16.mxu0 %v8323_v2  ;;  %v8269_v1 = vcombine.high %v3598_v59, %v3602_v60  ;;  %v8397_v2 = vcombine.high %v3726_v61, %v3730_v62  ;;  %v3674_v59 = vld [vmem:[#allocation9 + $0x2f8] sm:$0xff] }
 0x413   :  { %5400 = vmatprep.subr.bf16.mxu1 %v8451_v3  ;;  %v3590_v3 = vld [vmem:[#allocation9 + $0x58] sm:$0xff] }
 0x414   :  { %v8260_v24 = vcombine.low %v3590_v3, %v3594_v4  ;;  %v3798_v60 = vld [vmem:[#allocation9 + $0x6d8] sm:$0xff] }
 0x415   :  { %5358 = vmatpush2.bf16.msra.mxu0 %v8322_v12  ;;  %v8396_v12 = vcombine.low %v3726_v61, %v3730_v62  ;;  %v3802_v61 = vld [vmem:[#allocation9 + $0x6f8] sm:$0xff] }
 0x416   :  { %5401 = vmatpush2.bf16.msra.mxu1 %v8450_v15  ;;  %5359 = vmatprep.subr.bf16.mxu0 %v8315_v16  ;;  %v8261_v15 = vcombine.high %v3590_v3, %v3594_v4  ;;  %v8389_v16 = vcombine.high %v3718_v5, %v3722_v6  ;;  %v3666_v3 = vld [vmem:[#allocation9 + $0x2b8] sm:$0xff] }
 0x417   :  { %5402 = vmatprep.subr.bf16.mxu1 %v8443_v18  ;;  %v3582_v18 = vld [vmem:[#allocation9 + $0x18] sm:$0xff] }
 0x418   :  { %v8252_v29 = vcombine.low %v3582_v18, %v3586_v20  ;;  %v3790_v4 = vld [vmem:[#allocation9 + $0x698] sm:$0xff] }
 0x419   :  { %5360 = vmatpush2.bf16.msra.mxu0 %v8314_v23  ;;  %v8388_v23 = vcombine.low %v3718_v5, %v3722_v6  ;;  %v3794_v5 = vld [vmem:[#allocation9 + $0x6b8] sm:$0xff] }
 0x41a   :  { %5403 = vmatpush2.bf16.msra.mxu1 %v8442_v26  ;;  %5415 = vmatprep.subr.bf16.mxu0 %v8309_v27  ;;  %v8253_v26 = vcombine.high %v3582_v18, %v3586_v20  ;;  %v8381_v27 = vcombine.high %v3710_v21, %v3714_v22  ;;  %v3658_v18 = vld [vmem:[#allocation9 + $0x278] sm:$0xff] }
 0x41b   :  { %5458 = vmatprep.subr.bf16.mxu1 %v8437_v28  ;;  %v3702_v28 = vld [vmem:[#allocation9 + $0x3d8] sm:$0xff] }
 0x41c   :  { %5362 = vmatmul.mubr.bf16.vlgmr.msra.gmra.mxu0 %v10457_v54  ;;  %v8372_v33 = vcombine.low %v3702_v28, %v3706_v25  ;;  %v3782_v20 = vld [vmem:[#allocation9 + $0x658] sm:$0xff] }
 0x41d   :  { %5405 = vmatmul.mubr.bf16.vlgmr.msra.gmra.mxu1 %v10459_v53  ;;  %5416 = vmatpush1.bf16.msra.mxu0 %v8308_v32  ;;  %v3834_v32 = vld [vmem:[#allocation9 + $0x7f8] sm:$0xff] }
 0x41e   :  { %5447 = vmatprep.mubr.bf16.mxu0 %v10453_v51  ;;  %5459 = vmatpush1.bf16.msra.mxu1 %v8436_v9  ;;  %v8413_v51 = vcombine.high %v3742_v34, %v3746_v45  ;;  %v8373_v9 = vcombine.high %v3702_v28, %v3706_v25  ;;  %v3818_v34 = vld [vmem:[#allocation9 + $0x778] sm:$0xff]  ;;  %v8364_v45 = vcombine.low %v3694_v11, %v3698_v13 }
 0x41f   :  { %5490 = vmatprep.mubr.bf16.mxu1 %v10455_v52  ;;  %5417 = vmatprep.subr.bf16.mxu0 %v8301_v10  ;;  %v8284_v52 = vcombine.low %v3614_v37, %v3618_v44  ;;  %v8501_v10 = vcombine.high %v3830_v30, %v3834_v32  ;;  %v3690_v37 = vld [vmem:[#allocation9 + $0x378] sm:$0xff] }
 0x420   :  { %5460 = vmatprep.subr.bf16.mxu1 %v8429_v14  ;;  %v3822_v14 = vld [vmem:[#allocation9 + $0x798] sm:$0xff] }
 0x421   :  { %5418 = vmatpush1.bf16.msra.mxu0 %v8300_v39  ;;  %v8500_v39 = vcombine.low %v3830_v30, %v3834_v32  ;;  %v3814_v44 = vld [vmem:[#allocation9 + $0x758] sm:$0xff] }
 0x422   :  { %5461 = vmatpush1.bf16.msra.mxu1 %v8428_v43  ;;  %5419 = vmatprep.subr.bf16.mxu0 %v8293_v31  ;;  %v8365_v43 = vcombine.high %v3694_v11, %v3698_v13  ;;  %v8493_v31 = vcombine.high %v3822_v14, %v3826_v36  ;;  %v3786_v21 = vld [vmem:[#allocation9 + $0x678] sm:$0xff] }
 0x423   :  { %5462 = vmatprep.subr.bf16.mxu1 %v8421_v41  ;;  %v3686_v41 = vld [vmem:[#allocation9 + $0x358] sm:$0xff] }
 0x424   :  { %v8356_v48 = vcombine.low %v3686_v41, %v3690_v37  ;;  %v3650_v28 = vld [vmem:[#allocation9 + $0x238] sm:$0xff] }
 0x425   :  { %5420 = vmatpush1.bf16.msra.mxu0 %v8292_v49  ;;  %v8492_v49 = vcombine.low %v3822_v14, %v3826_v36  ;;  %v3774_v25 = vld [vmem:[#allocation9 + $0x618] sm:$0xff] }
 0x426   :  { %5463 = vmatpush1.bf16.msra.mxu1 %v8420_v42  ;;  %5421 = vmatprep.subr.bf16.mxu0 %v8285_v50  ;;  %v8357_v42 = vcombine.high %v3686_v41, %v3690_v37  ;;  %v8485_v50 = vcombine.high %v3814_v44, %v3818_v34  ;;  %v3778_v30 = vld [vmem:[#allocation9 + $0x638] sm:$0xff] }
 0x427   :  { %5464 = vmatprep.subr.bf16.mxu1 %v8413_v51  ;;  %v3678_v51 = vld [vmem:[#allocation9 + $0x318] sm:$0xff]  ;;  %v8444_v11 = vcombine.low %v3774_v25, %v3778_v30 }
 0x428   :  { %v8348_v62 = vcombine.low %v3678_v51, %v3682_v47  ;;  %v9527_v13 = vld [vmem:[#allocation12 + $0xe4] ss:$16 sps:$4 sm:$0xff]   ;;  %v9525_v36 = vld [vmem:[#allocation12 + $0xe0] ss:$16 sps:$4 sm:$0xff]  }
 0x429   :  { %5422 = vmatpush1.bf16.msra.mxu0 %v8284_v52  ;;  %v8484_v52 = vcombine.low %v3814_v44, %v3818_v34  ;;  %v9542_v14 = vld [vmem:[#allocation12 + $0x2e4] ss:$16 sps:$4 sm:$0xff]   ;;  %v9528_v34 = vld [vmem:[#allocation12 + $0xc0] ss:$16 sps:$4 sm:$0xff]  }
 0x42a   :  { %5465 = vmatpush1.bf16.msra.mxu1 %v8412_v56  ;;  %5423 = vmatprep.subr.bf16.mxu0 %v8277_v57  ;;  %v8349_v56 = vcombine.high %v3678_v51, %v3682_v47  ;;  %v8477_v57 = vcombine.high %v3806_v46, %v3810_v55  ;;  %v9548_v41 = vld [vmem:[#allocation12 + $0x2c4] ss:$16 sps:$4 sm:$0xff]  }
 0x42b   :  { %5466 = vmatprep.subr.bf16.mxu1 %v8405_v58  ;;  %v3670_v58 = vld [vmem:[#allocation9 + $0x2d8] sm:$0xff] }
 0x42c   :  { %v8340_v6 = vcombine.low %v3670_v58, %v3674_v59  ;;  %v9554_v47 = vld [vmem:[#allocation12 + $0x2a4] ss:$16 sps:$4 sm:$0xff]  }
 0x42d   :  { %5424 = vmatpush1.bf16.msra.mxu0 %v8276_v63  ;;  %v8476_v63 = vcombine.low %v3806_v46, %v3810_v55  ;;  %v9531_v55 = vld [vmem:[#allocation12 + $0xa0] ss:$16 sps:$4 sm:$0xff]  }
 0x42e   :  { %5467 = vmatpush1.bf16.msra.mxu1 %v8404_v0  ;;  %5425 = vmatprep.subr.bf16.mxu0 %v8269_v1  ;;  %v8341_v0 = vcombine.high %v3670_v58, %v3674_v59  ;;  %v8469_v1 = vcombine.high %v3798_v60, %v3802_v61  ;;  %v9560_v58 = vld [vmem:[#allocation12 + $0x284] ss:$16 sps:$4 sm:$0xff]  }
 0x42f   :  { %5468 = vmatprep.subr.bf16.mxu1 %v8397_v2  ;;  %v3662_v2 = vld [vmem:[#allocation9 + $0x298] sm:$0xff] }
 0x430   :  { %v8332_v22 = vcombine.low %v3662_v2, %v3666_v3 }
 0x431   :  { %5426 = vmatpush1.bf16.msra.mxu0 %v8268_v7  ;;  %v8468_v7 = vcombine.low %v3798_v60, %v3802_v61  ;;  %v9534_v61 = vld [vmem:[#allocation12 + $0x80] ss:$16 sps:$4 sm:$0xff]  }
 0x432   :  { %5469 = vmatpush1.bf16.msra.mxu1 %v8396_v12  ;;  %5427 = vmatprep.subr.bf16.mxu0 %v8261_v15  ;;  %v8333_v12 = vcombine.high %v3662_v2, %v3666_v3  ;;  %v8461_v15 = vcombine.high %v3790_v4, %v3794_v5  ;;  %v9566_v2 = vld [vmem:[#allocation12 + $0x264] ss:$16 sps:$4 sm:$0xff]  }
 0x433   :  { %5470 = vmatprep.subr.bf16.mxu1 %v8389_v16  ;;  %v3654_v16 = vld [vmem:[#allocation9 + $0x258] sm:$0xff] }
 0x434   :  { %v8324_v32 = vcombine.low %v3654_v16, %v3658_v18 }
 0x435   :  { %5428 = vmatpush1.bf16.msra.mxu0 %v8260_v24  ;;  %v8460_v24 = vcombine.low %v3790_v4, %v3794_v5  ;;  %v9537_v4 = vld [vmem:[#allocation12 + $0x60] ss:$16 sps:$4 sm:$0xff]   ;;  %v9545_v5 = vld [vmem:[#allocation12 + $0x44] ss:$16 sps:$4 sm:$0xff]  }
 0x436   :  { %5471 = vmatpush1.bf16.msra.mxu1 %v8388_v23  ;;  %5429 = vmatprep.subr.bf16.mxu0 %v8253_v26  ;;  %v8325_v23 = vcombine.high %v3654_v16, %v3658_v18  ;;  %v8453_v26 = vcombine.high %v3782_v20, %v3786_v21  ;;  %v9570_v16 = vld [vmem:[#allocation12 + $0x240] ss:$16 sps:$4 sm:$0xff]   ;;  %v9578_v18 = vld [vmem:[#allocation12 + $0x224] ss:$16 sps:$4 sm:$0xff]  }
 0x437   :  { %5472 = vmatprep.subr.bf16.mxu1 %v8381_v27  ;;  %v3646_v27 = vld [vmem:[#allocation9 + $0x218] sm:$0xff] }
 0x439   :  { %5430 = vmatpush1.bf16.msra.mxu0 %v8252_v29  ;;  %v8452_v29 = vcombine.low %v3782_v20, %v3786_v21  ;;  %v9549_v20 = vld [vmem:[#allocation12 + $0x20] ss:$16 sps:$4 sm:$0xff]   ;;  %v9557_v21 = vld [vmem:[#allocation12 + $0x4] ss:$16 sps:$4 sm:$0xff]  }
 0x43a   :  { %5473 = vmatpush1.bf16.msra.mxu1 %v8380_v8  ;;  %5431 = vmatprep.subr.bf16.mxu0 %v8373_v9  ;;  %v8317_v8 = vcombine.high %v3646_v27, %v3650_v28  ;;  %v8445_v9 = vcombine.high %v3774_v25, %v3778_v30  ;;  %v9561_v25 = vld [vmem:[#allocation12 + $0x1e0] ss:$16 sps:$4 sm:$0xff]   ;;  %v9569_v30 = vld [vmem:[#allocation12 + $0x1c4] ss:$16 sps:$4 sm:$0xff]  }
 0x43b   :  { %5474 = vmatprep.subr.bf16.mxu1 %v8501_v10  ;;  %v8316_v10 = vcombine.low %v3646_v27, %v3650_v28  ;;  %v9582_v27 = vld [vmem:[#allocation12 + $0x200] ss:$16 sps:$4 sm:$0xff]   ;;  %v9590_v28 = vld [vmem:[#allocation12 + $0x3e4] ss:$16 sps:$4 sm:$0xff]  }
 0x43d   :  { %5432 = vmatpush2.bf16.msra.mxu0 %v8372_v33  ;;  %v10475_v33 = vld [vmem:[#allocation10] sm:$0xff] }
 0x43e   :  { %5475 = vmatpush2.bf16.msra.mxu1 %v8500_v39  ;;  %5433 = vmatprep.subr.bf16.mxu0 %v8365_v43  ;;  %v9530_v39 = vld [vmem:[#allocation12 + $0xc4] ss:$16 sps:$4 sm:$0xff]   ;;  %v9540_v43 = vld [vmem:[#allocation12 + $0x2e0] ss:$16 sps:$4 sm:$0xff]  }
 0x43f   :  { %5476 = vmatprep.subr.bf16.mxu1 %v8493_v31  ;;  %v3844_v31 = vrot.slane %v10475_v33, %v10430_v38 }
 0x441   :  { %5434 = vmatpush2.bf16.msra.mxu0 %v8364_v45 }
 0x442   :  { %5477 = vmatpush2.bf16.msra.mxu1 %v8492_v49  ;;  %5435 = vmatprep.subr.bf16.mxu0 %v8357_v42  ;;  %v9533_v42 = vld [vmem:[#allocation12 + $0xa4] ss:$16 sps:$4 sm:$0xff]  }
 0x443   :  { %5478 = vmatprep.subr.bf16.mxu1 %v8485_v50  ;;  %v9546_v50 = vld [vmem:[#allocation12 + $0x2c0] ss:$16 sps:$4 sm:$0xff]  }
 0x445   :  { %5436 = vmatpush2.bf16.msra.mxu0 %v8356_v48 }
 0x446   :  { %5479 = vmatpush2.bf16.msra.mxu1 %v8484_v52  ;;  %5437 = vmatprep.subr.bf16.mxu0 %v8349_v56  ;;  %v9552_v52 = vld [vmem:[#allocation12 + $0x2a0] ss:$16 sps:$4 sm:$0xff]  }
 0x447   :  { %5480 = vmatprep.subr.bf16.mxu1 %v8477_v57 }
 0x449   :  { %5438 = vmatpush2.bf16.msra.mxu0 %v8348_v62  ;;  %v9539_v62 = vld [vmem:[#allocation12 + $0x64] ss:$16 sps:$4 sm:$0xff]  }
 0x44a   :  { %5481 = vmatpush2.bf16.msra.mxu1 %v8476_v63  ;;  %5439 = vmatprep.subr.bf16.mxu0 %v8341_v0  ;;  %v9558_v63 = vld [vmem:[#allocation12 + $0x280] ss:$16 sps:$4 sm:$0xff]  }
 0x44b   :  { %5482 = vmatprep.subr.bf16.mxu1 %v8469_v1 }
 0x44d   :  { %5440 = vmatpush2.bf16.msra.mxu0 %v8340_v6  ;;  %v9564_v6 = vld [vmem:[#allocation12 + $0x260] ss:$16 sps:$4 sm:$0xff]  }
 0x44e   :  { %5483 = vmatpush2.bf16.msra.mxu1 %v8468_v7  ;;  %5441 = vmatprep.subr.bf16.mxu0 %v8333_v12  ;;  %v9572_v7 = vld [vmem:[#allocation12 + $0x244] ss:$16 sps:$4 sm:$0xff]   ;;  %v9543_v12 = vld [vmem:[#allocation12 + $0x40] ss:$16 sps:$4 sm:$0xff]  }
 0x44f   :  { %5484 = vmatprep.subr.bf16.mxu1 %v8461_v15  ;;  %v9551_v15 = vld [vmem:[#allocation12 + $0x24] ss:$16 sps:$4 sm:$0xff]  }
 0x451   :  { %5442 = vmatpush2.bf16.msra.mxu0 %v8332_v22  ;;  %v9576_v22 = vld [vmem:[#allocation12 + $0x220] ss:$16 sps:$4 sm:$0xff]  }
 0x452   :  { %5485 = vmatpush2.bf16.msra.mxu1 %v8460_v24  ;;  %5443 = vmatprep.subr.bf16.mxu0 %v8325_v23  ;;  %v9584_v24 = vld [vmem:[#allocation12 + $0x204] ss:$16 sps:$4 sm:$0xff]   ;;  %v9555_v23 = vld [vmem:[#allocation12] ss:$16 sps:$4 sm:$0xff]  }
 0x453   :  { %5486 = vmatprep.subr.bf16.mxu1 %v8453_v26  ;;  %v9563_v26 = vld [vmem:[#allocation12 + $0x1e4] ss:$16 sps:$4 sm:$0xff]  }
 0x455   :  { %5444 = vmatpush2.bf16.msra.mxu0 %v8324_v32  ;;  %v9588_v32 = vld [vmem:[#allocation12 + $0x3e0] ss:$16 sps:$4 sm:$0xff]  }
 0x456   :  { %5487 = vmatpush2.bf16.msra.mxu1 %v8452_v29  ;;  %5445 = vmatprep.subr.bf16.mxu0 %v8317_v8  ;;  %v9596_v29 = vld [vmem:[#allocation12 + $0x3c4] ss:$16 sps:$4 sm:$0xff]   ;;  %v9567_v8 = vld [vmem:[#allocation12 + $0x1c0] ss:$16 sps:$4 sm:$0xff]  }
 0x457   :  { %5488 = vmatprep.subr.bf16.mxu1 %v8445_v9  ;;  %v9575_v9 = vld [vmem:[#allocation12 + $0x1a4] ss:$16 sps:$4 sm:$0xff]  }
 0x459   :  { %5446 = vmatpush2.bf16.msra.mxu0 %v8316_v10  ;;  %v9594_v10 = vld [vmem:[#allocation12 + $0x3c0] ss:$16 sps:$4 sm:$0xff]  }
 0x45a   :  { %5489 = vmatpush2.bf16.msra.mxu1 %v8444_v11  ;;  %7083 = vmatprep.subr.bf16.mxu0 %v9527_v13  ;;  %v9602_v11 = vld [vmem:[#allocation12 + $0x3a4] ss:$16 sps:$4 sm:$0xff]   ;;  %v9573_v13 = vld [vmem:[#allocation12 + $0x1a0] ss:$16 sps:$4 sm:$0xff]  }
 0x45b   :  { %7126 = vmatprep.subr.bf16.mxu1 %v9542_v14  ;;  %v9581_v14 = vld [vmem:[#allocation12 + $0x184] ss:$16 sps:$4 sm:$0xff]  }
 0x45c   :  { %5448 = vmatmul.mubr.bf16.vlgmr.msra.gmra.mxu0 %v10457_v54  ;;  %v10480_v37 = vpop.f32.mrf.mxu0  ;;  %v10482_v44 = vpop.f32.mrf.mxu1 }
 0x45d   :  { %5491 = vmatmul.mubr.bf16.vlgmr.msra.gmra.mxu1 %v10459_v53  ;;  %7084 = vmatpush1.bf16.msra.mxu0 %v9525_v36  ;;  %v9536_v53 = vld [vmem:[#allocation12 + $0x84] ss:$16 sps:$4 sm:$0xff]   ;;  %v9600_v36 = vld [vmem:[#allocation12 + $0x3a0] ss:$16 sps:$4 sm:$0xff]  }
 0x45e   :  { %v5193_v45 = vpop.f32.mrf.mxu0  ;;  %v5236_v49 = vpop.f32.mrf.mxu1  ;;  %7085 = vmatprep.subr.bf16.mxu0 %v9530_v39  ;;  %7127 = vmatpush1.bf16.msra.mxu1 %v9540_v43  ;;  %v9608_v39 = vld [vmem:[#allocation12 + $0x384] ss:$16 sps:$4 sm:$0xff]   ;;  %v9579_v43 = vld [vmem:[#allocation12 + $0x180] ss:$16 sps:$4 sm:$0xff]  }
 0x45f   :  { %v5194_v51 = vadd.f32 %v5193_v45, %v3844_v31  ;;  %7128 = vmatprep.subr.bf16.mxu1 %v9548_v41  ;;  %v9606_v41 = vld [vmem:[#allocation12 + $0x380] ss:$16 sps:$4 sm:$0xff]  }
 0x460   :  { %v10485_v46 = vpop.f32.mrf.mxu0  ;;  %v10487_v54 = vpop.f32.mrf.mxu1  ;;  %v9585_v45 = vld [vmem:[#allocation12 + $0x160] ss:$16 sps:$4 sm:$0xff]  }
 0x461   :  { %7086 = vmatpush1.bf16.msra.mxu0 %v9528_v34  ;;  %v5237_v56 = vadd.f32 %v5236_v49, %v5194_v51  ;;  %v9611_v34 = vld [vmem:[#allocation12 + $0x364] ss:$16 sps:$4 sm:$0xff]   ;;  %v3840_v51 = vrot.slane %v10475_v33, %v10433_v40 }
 0x462   :  { %v5197_v48 = vpop.f32.mrf.mxu0  ;;  %7087 = vmatprep.subr.bf16.mxu0 %v9533_v42  ;;  %7129 = vmatpush1.bf16.msra.mxu1 %v9546_v50  ;;  %v5240_v59 = vpop.f32.mrf.mxu1  ;;  %v9593_v49 = vld [vmem:[#allocation12 + $0x144] ss:$16 sps:$4 sm:$0xff]   ;;  %v9609_v42 = vld [vmem:[#allocation12 + $0x360] ss:$16 sps:$4 sm:$0xff]  }
 0x463   :  { %v5198_v57 = vadd.f32 %v5197_v48, %v3844_v31  ;;  %7130 = vmatprep.subr.bf16.mxu1 %v9554_v47  ;;  %v5502_v0 = vmax.f32 %v5237_v56, 0.0  ;;  %v9587_v31 = vld [vmem:[#allocation12 + $0x164] ss:$16 sps:$4 sm:$0xff]   ;;  %v9591_v47 = vld [vmem:[#allocation12 + $0x140] ss:$16 sps:$4 sm:$0xff]   ;;  %v5192_v56 = vadd.f32 %v10480_v37, %v3840_v51 }
 0x464   :  { %v9614_v50 = vld [vmem:[#allocation12 + $0x344] ss:$16 sps:$4 sm:$0xff]  }
 0x465   :  { %v5241_v60 = vadd.f32 %v5240_v59, %v5198_v57  ;;  %7088 = vmatpush1.bf16.msra.mxu0 %v9531_v55  ;;  %v5196_v55 = vadd.f32 %v10485_v46, %v3840_v51  ;;  %v9599_v48 = vld [vmem:[#allocation12 + $0x124] ss:$16 sps:$4 sm:$0xff]   ;;  %v9597_v57 = vld [vmem:[#allocation12 + $0x120] ss:$16 sps:$4 sm:$0xff]   ;;  %v5235_v46 = vadd.f32 %v10482_v44, %v5192_v56  ;;  %v3852_v44 = vrot.slane %v10475_v33, %v10444_v17 }
 0x466   :  { %7089 = vmatprep.subr.bf16.mxu0 %v9536_v53  ;;  %7131 = vmatpush1.bf16.msra.mxu1 %v9552_v52  ;;  %v9612_v53 = vld [vmem:[#allocation12 + $0x340] ss:$16 sps:$4 sm:$0xff]   ;;  %v9617_v52 = vld [vmem:[#allocation12 + $0x324] ss:$16 sps:$4 sm:$0xff]  }
 0x467   :  { %v5510_v1 = vmax.f32 %v5241_v60, 0.0  ;;  %7132 = vmatprep.subr.bf16.mxu1 %v9560_v58  ;;  %v5239_v58 = vadd.f32 %v10487_v54, %v5196_v55  ;;  %v9605_v59 = vld [vmem:[#allocation12 + $0x104] ss:$16 sps:$4 sm:$0xff]   ;;  %v9615_v60 = vld [vmem:[#allocation12 + $0x320] ss:$16 sps:$4 sm:$0xff]  }
 0x468   :  { %v9671_v37 = vld [vmem:[#allocation12 + $0x6e4] ss:$16 sps:$4 sm:$0xff]   ;;  %v9621_v54 = vld [vmem:[#allocation12 + $0x4e0] ss:$16 sps:$4 sm:$0xff]  }
 0x469   :  { %v10489_v3 = vpack.c.bf16 %v5510_v1, %v5502_v0  ;;  %7090 = vmatpush1.bf16.msra.mxu0 %v9534_v61  ;;  %v9620_v61 = vld [vmem:[#allocation12 + $0x304] ss:$16 sps:$4 sm:$0xff]   ;;  %v9618_v0 = vld [vmem:[#allocation12 + $0x300] ss:$16 sps:$4 sm:$0xff]  }
 0x46a   :  { %7091 = vmatprep.subr.bf16.mxu0 %v9539_v62  ;;  %7133 = vmatpush1.bf16.msra.mxu1 %v9558_v63  ;;  %v9603_v62 = vld [vmem:[#allocation12 + $0x100] ss:$16 sps:$4 sm:$0xff]   ;;  %v5509_v63 = vmax.f32 %v5239_v58, 0.0  ;;  %v9623_v1 = vld [vmem:[#allocation12 + $0x4e4] ss:$16 sps:$4 sm:$0xff]  }
 0x46b   :  { %7115 = vmatprep.mubr.bf16.mxu0 %v10489_v3  ;;  %7134 = vmatprep.subr.bf16.mxu1 %v9566_v2  ;;  %v5501_v2 = vmax.f32 %v5235_v46, 0.0  ;;  %v9675_v51 = vld [vmem:[#allocation12 + $0x6c0] ss:$16 sps:$4 sm:$0xff]   ;;  %v9683_v55 = vld [vmem:[#allocation12 + $0x6a4] ss:$16 sps:$4 sm:$0xff]  }
 0x46c   :  { %v9689_v56 = vld [vmem:[#allocation12 + $0x684] ss:$16 sps:$4 sm:$0xff]   ;;  %v9687_v58 = vld [vmem:[#allocation12 + $0x680] ss:$16 sps:$4 sm:$0xff]  }
 0x46d   :  { %7092 = vmatpush1.bf16.msra.mxu0 %v9537_v4  ;;  %v10498_v4 = vpack.c.bf16 %v5509_v63, %v5501_v2  ;;  %v9693_v46 = vld [vmem:[#allocation12 + $0x660] ss:$16 sps:$4 sm:$0xff]   ;;  %v9701_v63 = vld [vmem:[#allocation12 + $0x644] ss:$16 sps:$4 sm:$0xff]  }
 0x46e   :  { %7093 = vmatprep.subr.bf16.mxu0 %v9545_v5  ;;  %7135 = vmatpush1.bf16.msra.mxu1 %v9564_v6  ;;  %v9626_v5 = vld [vmem:[#allocation12 + $0x4c4] ss:$16 sps:$4 sm:$0xff]   ;;  %v3848_v6 = vrot.slane %v10475_v33, %v10447_v19 }
 0x46f   :  { %7136 = vmatprep.subr.bf16.mxu1 %v9572_v7  ;;  %v9707_v2 = vld [vmem:[#allocation12 + $0x624] ss:$16 sps:$4 sm:$0xff]  }
 0x471   :  { %7094 = vmatpush1.bf16.msra.mxu0 %v9543_v12 }
 0x472   :  { %7095 = vmatprep.subr.bf16.mxu0 %v9551_v15  ;;  %7137 = vmatpush1.bf16.msra.mxu1 %v9570_v16  ;;  %v9624_v15 = vld [vmem:[#allocation12 + $0x4c0] ss:$16 sps:$4 sm:$0xff]  }
 0x473   :  { %7138 = vmatprep.subr.bf16.mxu1 %v9578_v18 }
 0x475   :  { %7096 = vmatpush1.bf16.msra.mxu0 %v9549_v20  ;;  %v9629_v20 = vld [vmem:[#allocation12 + $0x4a4] ss:$16 sps:$4 sm:$0xff]  }
 0x476   :  { %7097 = vmatprep.subr.bf16.mxu0 %v9557_v21  ;;  %7139 = vmatpush1.bf16.msra.mxu1 %v9576_v22 }
 0x477   :  { %7140 = vmatprep.subr.bf16.mxu1 %v9584_v24 }
 0x479   :  { %7098 = vmatpush1.bf16.msra.mxu0 %v9555_v23 }
 0x47a   :  { %7099 = vmatprep.subr.bf16.mxu0 %v9563_v26  ;;  %7141 = vmatpush1.bf16.msra.mxu1 %v9582_v27  ;;  %v9627_v27 = vld [vmem:[#allocation12 + $0x4a0] ss:$16 sps:$4 sm:$0xff]  }
 0x47b   :  { %7142 = vmatprep.subr.bf16.mxu1 %v9590_v28 }
 0x47d   :  { %7100 = vmatpush2.bf16.msra.mxu0 %v9561_v25  ;;  %v9632_v25 = vld [vmem:[#allocation12 + $0x484] ss:$16 sps:$4 sm:$0xff]  }
 0x47e   :  { %7101 = vmatprep.subr.bf16.mxu0 %v9569_v30  ;;  %7143 = vmatpush2.bf16.msra.mxu1 %v9588_v32 }
 0x47f   :  { %7144 = vmatprep.subr.bf16.mxu1 %v9596_v29 }
 0x481   :  { %7102 = vmatpush2.bf16.msra.mxu0 %v9567_v8 }
 0x482   :  { %7103 = vmatprep.subr.bf16.mxu0 %v9575_v9  ;;  %7145 = vmatpush2.bf16.msra.mxu1 %v9594_v10 }
 0x483   :  { %7146 = vmatprep.subr.bf16.mxu1 %v9602_v11  ;;  %v9630_v11 = vld [vmem:[#allocation12 + $0x480] ss:$16 sps:$4 sm:$0xff]  }
 0x485   :  { %7104 = vmatpush2.bf16.msra.mxu0 %v9573_v13 }
 0x486   :  { %7105 = vmatprep.subr.bf16.mxu0 %v9581_v14  ;;  %7147 = vmatpush2.bf16.msra.mxu1 %v9600_v36  ;;  %v9635_v14 = vld [vmem:[#allocation12 + $0x464] ss:$16 sps:$4 sm:$0xff]  }
 0x487   :  { %7148 = vmatprep.subr.bf16.mxu1 %v9608_v39 }
 0x489   :  { %7106 = vmatpush2.bf16.msra.mxu0 %v9579_v43 }
 0x48a   :  { %7107 = vmatprep.subr.bf16.mxu0 %v9587_v31  ;;  %7149 = vmatpush2.bf16.msra.mxu1 %v9606_v41  ;;  %v9633_v41 = vld [vmem:[#allocation12 + $0x460] ss:$16 sps:$4 sm:$0xff]  }
 0x48b   :  { %7150 = vmatprep.subr.bf16.mxu1 %v9611_v34  ;;  %v9669_v34 = vld [vmem:[#allocation12 + $0x6e0] ss:$16 sps:$4 sm:$0xff]  }
 0x48d   :  { %7108 = vmatpush2.bf16.msra.mxu0 %v9585_v45 }
 0x48e   :  { %7109 = vmatprep.subr.bf16.mxu0 %v9593_v49  ;;  %7151 = vmatpush2.bf16.msra.mxu1 %v9609_v42  ;;  %v9638_v49 = vld [vmem:[#allocation12 + $0x444] ss:$16 sps:$4 sm:$0xff]  }
 0x48f   :  { %7152 = vmatprep.subr.bf16.mxu1 %v9614_v50  ;;  %v9677_v42 = vld [vmem:[#allocation12 + $0x6c4] ss:$16 sps:$4 sm:$0xff]   ;;  %v9636_v50 = vld [vmem:[#allocation12 + $0x440] ss:$16 sps:$4 sm:$0xff]  }
 0x491   :  { %7110 = vmatpush2.bf16.msra.mxu0 %v9591_v47  ;;  %v9641_v47 = vld [vmem:[#allocation12 + $0x424] ss:$16 sps:$4 sm:$0xff]  }
 0x492   :  { %7111 = vmatprep.subr.bf16.mxu0 %v9599_v48  ;;  %7153 = vmatpush2.bf16.msra.mxu1 %v9612_v53  ;;  %v9639_v48 = vld [vmem:[#allocation12 + $0x420] ss:$16 sps:$4 sm:$0xff]  }
 0x493   :  { %7154 = vmatprep.subr.bf16.mxu1 %v9617_v52  ;;  %v9681_v53 = vld [vmem:[#allocation12 + $0x6a0] ss:$16 sps:$4 sm:$0xff]   ;;  %v9644_v52 = vld [vmem:[#allocation12 + $0x404] ss:$16 sps:$4 sm:$0xff]  }
 0x495   :  { %7112 = vmatpush2.bf16.msra.mxu0 %v9597_v57  ;;  %v9642_v57 = vld [vmem:[#allocation12 + $0x400] ss:$16 sps:$4 sm:$0xff]  }
 0x496   :  { %7113 = vmatprep.subr.bf16.mxu0 %v9605_v59  ;;  %7155 = vmatpush2.bf16.msra.mxu1 %v9615_v60  ;;  %v9647_v59 = vld [vmem:[#allocation12 + $0x5e4] ss:$16 sps:$4 sm:$0xff]  }
 0x497   :  { %7156 = vmatprep.subr.bf16.mxu1 %v9620_v61  ;;  %v9695_v60 = vld [vmem:[#allocation12 + $0x664] ss:$16 sps:$4 sm:$0xff]   ;;  %v9645_v61 = vld [vmem:[#allocation12 + $0x5e0] ss:$16 sps:$4 sm:$0xff]  }
 0x499   :  { %7114 = vmatpush2.bf16.msra.mxu0 %v9603_v62  ;;  %v9650_v62 = vld [vmem:[#allocation12 + $0x5c4] ss:$16 sps:$4 sm:$0xff]  }
 0x49a   :  { %7157 = vmatpush2.bf16.msra.mxu1 %v9618_v0  ;;  %7169 = vmatprep.subr.bf16.mxu0 %v9623_v1  ;;  %v9648_v0 = vld [vmem:[#allocation12 + $0x5c0] ss:$16 sps:$4 sm:$0xff]  }
 0x49b   :  { %7212 = vmatprep.subr.bf16.mxu1 %v9671_v37  ;;  %v9699_v1 = vld [vmem:[#allocation12 + $0x640] ss:$16 sps:$4 sm:$0xff]   ;;  %v9653_v37 = vld [vmem:[#allocation12 + $0x5a4] ss:$16 sps:$4 sm:$0xff]  }
 0x49c   :  { %v5277_v7 = vpop.f32.mrf.mxu0  ;;  %v5320_v12 = vpop.f32.mrf.mxu1  ;;  %7116 = vmatmul.mubr.bf16.vlgmr.msra.gmra.mxu0 %v10498_v4 }
 0x49d   :  { %7170 = vmatpush1.bf16.msra.mxu0 %v9621_v54  ;;  %v5278_v22 = vadd.f32 %v5277_v7, %v3848_v6  ;;  %v9651_v54 = vld [vmem:[#allocation12 + $0x5a0] ss:$16 sps:$4 sm:$0xff]  }
 0x49e   :  { %v5279_v16 = vpop.f32.mrf.mxu0  ;;  %v5322_v18 = vpop.f32.mrf.mxu1  ;;  %7171 = vmatprep.subr.bf16.mxu0 %v9626_v5  ;;  %v9705_v5 = vld [vmem:[#allocation12 + $0x620] ss:$16 sps:$4 sm:$0xff]  }
 0x49f   :  { %v5280_v21 = vadd.f32 %v5279_v16, %v3852_v44  ;;  %v5321_v8 = vadd.f32 %v5320_v12, %v5278_v22  ;;  %v9654_v7 = vld [vmem:[#allocation12 + $0x580] ss:$16 sps:$4 sm:$0xff]   ;;  %v9719_v16 = vld [vmem:[#allocation12 + $0x7e4] ss:$16 sps:$4 sm:$0xff]  }
 0x4a0   :  { %v5281_v24 = vpop.f32.mrf.mxu0  ;;  %v5324_v23 = vpop.f32.mrf.mxu1  ;;  %v9711_v12 = vld [vmem:[#allocation12 + $0x600] ss:$16 sps:$4 sm:$0xff]   ;;  %v9725_v22 = vld [vmem:[#allocation12 + $0x7c4] ss:$16 sps:$4 sm:$0xff]  }
 0x4a1   :  { %v5282_v26 = vadd.f32 %v5281_v24, %v3848_v6  ;;  %7172 = vmatpush1.bf16.msra.mxu0 %v9624_v15  ;;  %v5323_v30 = vadd.f32 %v5322_v18, %v5280_v21  ;;  %v5503_v43 = vmax.f32 %v5321_v8, 0.0  ;;  %v9713_v6 = vld [vmem:[#allocation12 + $0x604] ss:$16 sps:$4 sm:$0xff]   ;;  %v9657_v18 = vld [vmem:[#allocation12 + $0x560] ss:$16 sps:$4 sm:$0xff]  }
 0x4a2   :  { %v5283_v28 = vpop.f32.mrf.mxu0  ;;  %7173 = vmatprep.subr.bf16.mxu0 %v9629_v20  ;;  %v5326_v9 = vpop.f32.mrf.mxu1  ;;  %v9659_v15 = vld [vmem:[#allocation12 + $0x564] ss:$16 sps:$4 sm:$0xff]   ;;  %v9717_v20 = vld [vmem:[#allocation12 + $0x7e0] ss:$16 sps:$4 sm:$0xff]  }
 0x4a3   :  { %v5325_v32 = vadd.f32 %v5324_v23, %v5282_v26  ;;  %v5284_v29 = vadd.f32 %v5283_v28, %v3852_v44  ;;  %v5504_v36 = vmax.f32 %v5323_v30, 0.0  ;;  %v9656_v44 = vld [vmem:[#allocation12 + $0x584] ss:$16 sps:$4 sm:$0xff]   ;;  %v9660_v24 = vld [vmem:[#allocation12 + $0x540] ss:$16 sps:$4 sm:$0xff]  }
 0x4a4   :  { %v9662_v21 = vld [vmem:[#allocation12 + $0x544] ss:$16 sps:$4 sm:$0xff]   ;;  %v9723_v23 = vld [vmem:[#allocation12 + $0x7c0] ss:$16 sps:$4 sm:$0xff]  }
 0x4a5   :  { %v5327_v10 = vadd.f32 %v5326_v9, %v5284_v29  ;;  %7174 = vmatpush1.bf16.msra.mxu0 %v9627_v27  ;;  %v5511_v13 = vmax.f32 %v5325_v32, 0.0  ;;  %v9665_v26 = vld [vmem:[#allocation12 + $0x524] ss:$16 sps:$4 sm:$0xff]   ;;  %v9663_v28 = vld [vmem:[#allocation12 + $0x520] ss:$16 sps:$4 sm:$0xff]  }
 0x4a6   :  { %7175 = vmatprep.subr.bf16.mxu0 %v9632_v25  ;;  %v9731_v27 = vld [vmem:[#allocation12 + $0x7a4] ss:$16 sps:$4 sm:$0xff]   ;;  %v9729_v25 = vld [vmem:[#allocation12 + $0x7a0] ss:$16 sps:$4 sm:$0xff]   ;;  %v9674_v9 = vld [vmem:[#allocation12 + $0xec] ss:$16 sps:$4 sm:$0xff]  }
 0x4a7   :  { %v5512_v39 = vmax.f32 %v5327_v10, 0.0  ;;  %v10507_v45 = vpack.c.bf16 %v5511_v13, %v5503_v43  ;;  %v9668_v30 = vld [vmem:[#allocation12 + $0x504] ss:$16 sps:$4 sm:$0xff]   ;;  %v9666_v29 = vld [vmem:[#allocation12 + $0x500] ss:$16 sps:$4 sm:$0xff]   ;;  %v3855_v13 = vsub.s32 4, %v10427_v35 }
 0x4a8   :  { %v9737_v32 = vld [vmem:[#allocation12 + $0x784] ss:$16 sps:$4 sm:$0xff]   ;;  %v9735_v8 = vld [vmem:[#allocation12 + $0x780] ss:$16 sps:$4 sm:$0xff]  }
 0x4a9   :  { %v10505_v31 = vpack.c.bf16 %v5512_v39, %v5504_v36  ;;  %7176 = vmatpush1.bf16.msra.mxu0 %v9630_v11  ;;  %v9743_v10 = vld [vmem:[#allocation12 + $0x764] ss:$16 sps:$4 sm:$0xff]   ;;  %v3859_v11 = vsub.s32 5, %v10427_v35  ;;  %v3856_v43 = vrot.slane %v10475_v33, %v3855_v13  ;;  %v9738_v13 = vld [vmem:[#allocation12 + $0x188] ss:$16 sps:$4 sm:$0xff]  }
 0x4aa   :  { %7177 = vmatprep.subr.bf16.mxu0 %v9635_v14  ;;  %v9741_v14 = vld [vmem:[#allocation12 + $0x760] ss:$16 sps:$4 sm:$0xff]   ;;  %v9749_v36 = vld [vmem:[#allocation12 + $0x744] ss:$16 sps:$4 sm:$0xff]  }
 0x4ab   :  { %7158 = vmatprep.mubr.bf16.mxu1 %v10505_v31  ;;  %v3860_v39 = vrot.slane %v10475_v33, %v3859_v11  ;;  %v9740_v11 = vld [vmem:[#allocation12 + $0x18c] ss:$16 sps:$4 sm:$0xff]  }
 0x4ac   :  { %7159 = vmatmul.mubr.bf16.vlgmr.msra.gmra.mxu1 %v10507_v45 }
 0x4ad   :  { %7178 = vmatpush1.bf16.msra.mxu0 %v9633_v41  ;;  %7213 = vmatpush1.bf16.msra.mxu1 %v9669_v34 }
 0x4ae   :  { %7179 = vmatprep.subr.bf16.mxu0 %v9638_v49  ;;  %7214 = vmatprep.subr.bf16.mxu1 %v9677_v42  ;;  %v9747_v49 = vld [vmem:[#allocation12 + $0x740] ss:$16 sps:$4 sm:$0xff]  }
 0x4b1   :  { %7180 = vmatpush1.bf16.msra.mxu0 %v9636_v50  ;;  %7215 = vmatpush1.bf16.msra.mxu1 %v9675_v51  ;;  %v9755_v50 = vld [vmem:[#allocation12 + $0x724] ss:$16 sps:$4 sm:$0xff]  }
 0x4b2   :  { %7181 = vmatprep.subr.bf16.mxu0 %v9641_v47  ;;  %7216 = vmatprep.subr.bf16.mxu1 %v9683_v55 }
 0x4b5   :  { %7182 = vmatpush1.bf16.msra.mxu0 %v9639_v48  ;;  %7217 = vmatpush1.bf16.msra.mxu1 %v9681_v53 }
 0x4b6   :  { %7183 = vmatprep.subr.bf16.mxu0 %v9644_v52  ;;  %7218 = vmatprep.subr.bf16.mxu1 %v9689_v56  ;;  %v9753_v56 = vld [vmem:[#allocation12 + $0x720] ss:$16 sps:$4 sm:$0xff]  }
 0x4b9   :  { %7184 = vmatpush1.bf16.msra.mxu0 %v9642_v57  ;;  %7219 = vmatpush1.bf16.msra.mxu1 %v9687_v58  ;;  %v9761_v58 = vld [vmem:[#allocation12 + $0x704] ss:$16 sps:$4 sm:$0xff]  }
 0x4ba   :  { %7185 = vmatprep.subr.bf16.mxu0 %v9647_v59  ;;  %7220 = vmatprep.subr.bf16.mxu1 %v9695_v60 }
 0x4bd   :  { %7186 = vmatpush2.bf16.msra.mxu0 %v9645_v61  ;;  %7221 = vmatpush1.bf16.msra.mxu1 %v9693_v46 }
 0x4be   :  { %7187 = vmatprep.subr.bf16.mxu0 %v9650_v62  ;;  %7222 = vmatprep.subr.bf16.mxu1 %v9701_v63 }
 0x4c1   :  { %7188 = vmatpush2.bf16.msra.mxu0 %v9648_v0  ;;  %7223 = vmatpush1.bf16.msra.mxu1 %v9699_v1  ;;  %v9759_v0 = vld [vmem:[#allocation12 + $0x700] ss:$16 sps:$4 sm:$0xff]  }
 0x4c2   :  { %7189 = vmatprep.subr.bf16.mxu0 %v9653_v37  ;;  %7224 = vmatprep.subr.bf16.mxu1 %v9707_v2  ;;  %v9767_v37 = vld [vmem:[#allocation12 + $0x2ec] ss:$16 sps:$4 sm:$0xff]  }
 0x4c5   :  { %7190 = vmatpush2.bf16.msra.mxu0 %v9651_v54  ;;  %7225 = vmatpush1.bf16.msra.mxu1 %v9705_v5 }
 0x4c6   :  { %7191 = vmatprep.subr.bf16.mxu0 %v9656_v44  ;;  %7226 = vmatprep.subr.bf16.mxu1 %v9713_v6  ;;  %v9672_v6 = vld [vmem:[#allocation12 + $0xe8] ss:$16 sps:$4 sm:$0xff]  }
 0x4c9   :  { %7192 = vmatpush2.bf16.msra.mxu0 %v9654_v7  ;;  %7227 = vmatpush1.bf16.msra.mxu1 %v9711_v12  ;;  %v9680_v12 = vld [vmem:[#allocation12 + $0xcc] ss:$16 sps:$4 sm:$0xff]  }
 0x4ca   :  { %7193 = vmatprep.subr.bf16.mxu0 %v9659_v15  ;;  %7228 = vmatprep.subr.bf16.mxu1 %v9719_v16  ;;  %v9678_v15 = vld [vmem:[#allocation12 + $0xc8] ss:$16 sps:$4 sm:$0xff]   ;;  %v9686_v16 = vld [vmem:[#allocation12 + $0xac] ss:$16 sps:$4 sm:$0xff]  }
 0x4cd   :  { %7194 = vmatpush2.bf16.msra.mxu0 %v9657_v18  ;;  %7229 = vmatpush2.bf16.msra.mxu1 %v9717_v20  ;;  %v9684_v18 = vld [vmem:[#allocation12 + $0xa8] ss:$16 sps:$4 sm:$0xff]   ;;  %v9692_v20 = vld [vmem:[#allocation12 + $0x8c] ss:$16 sps:$4 sm:$0xff]  }
 0x4ce   :  { %7195 = vmatprep.subr.bf16.mxu0 %v9662_v21  ;;  %7230 = vmatprep.subr.bf16.mxu1 %v9725_v22  ;;  %v9690_v21 = vld [vmem:[#allocation12 + $0x88] ss:$16 sps:$4 sm:$0xff]   ;;  %v9698_v22 = vld [vmem:[#allocation12 + $0x6c] ss:$16 sps:$4 sm:$0xff]  }
 0x4d1   :  { %7196 = vmatpush2.bf16.msra.mxu0 %v9660_v24  ;;  %7231 = vmatpush2.bf16.msra.mxu1 %v9723_v23  ;;  %v9696_v24 = vld [vmem:[#allocation12 + $0x68] ss:$16 sps:$4 sm:$0xff]   ;;  %v9704_v23 = vld [vmem:[#allocation12 + $0x4c] ss:$16 sps:$4 sm:$0xff]  }
 0x4d2   :  { %7197 = vmatprep.subr.bf16.mxu0 %v9665_v26  ;;  %7232 = vmatprep.subr.bf16.mxu1 %v9731_v27  ;;  %v9702_v26 = vld [vmem:[#allocation12 + $0x48] ss:$16 sps:$4 sm:$0xff]   ;;  %v9710_v27 = vld [vmem:[#allocation12 + $0x2c] ss:$16 sps:$4 sm:$0xff]  }
 0x4d5   :  { %7198 = vmatpush2.bf16.msra.mxu0 %v9663_v28  ;;  %7233 = vmatpush2.bf16.msra.mxu1 %v9729_v25  ;;  %v9716_v28 = vld [vmem:[#allocation12 + $0xc] ss:$16 sps:$4 sm:$0xff]   ;;  %v9714_v25 = vld [vmem:[#allocation12 + $0x8] ss:$16 sps:$4 sm:$0xff]  }
 0x4d6   :  { %7199 = vmatprep.subr.bf16.mxu0 %v9668_v30  ;;  %7234 = vmatprep.subr.bf16.mxu1 %v9737_v32  ;;  %v9722_v30 = vld [vmem:[#allocation12 + $0x1ec] ss:$16 sps:$4 sm:$0xff]   ;;  %v9720_v32 = vld [vmem:[#allocation12 + $0x1e8] ss:$16 sps:$4 sm:$0xff]  }
 0x4d9   :  { %7200 = vmatpush2.bf16.msra.mxu0 %v9666_v29  ;;  %7235 = vmatpush2.bf16.msra.mxu1 %v9735_v8  ;;  %v9728_v29 = vld [vmem:[#allocation12 + $0x1cc] ss:$16 sps:$4 sm:$0xff]   ;;  %v9726_v8 = vld [vmem:[#allocation12 + $0x1c8] ss:$16 sps:$4 sm:$0xff]  }
 0x4da   :  { %7255 = vmatprep.subr.bf16.mxu0 %v9674_v9  ;;  %7236 = vmatprep.subr.bf16.mxu1 %v9743_v10  ;;  %v9734_v9 = vld [vmem:[#allocation12 + $0x1ac] ss:$16 sps:$4 sm:$0xff]   ;;  %v9732_v10 = vld [vmem:[#allocation12 + $0x1a8] ss:$16 sps:$4 sm:$0xff]  }
 0x4dc   :  { %v5363_v41 = vpop.f32.mrf.mxu0 }
 0x4dd   :  { %v5406_v34 = vpop.f32.mrf.mxu1  ;;  %7237 = vmatpush2.bf16.msra.mxu1 %v9741_v14  ;;  %v5364_v55 = vadd.f32 %v5363_v41, %v3856_v43  ;;  %v9746_v14 = vld [vmem:[#allocation12 + $0x16c] ss:$16 sps:$4 sm:$0xff]  }
 0x4de   :  { %v5365_v42 = vpop.f32.mrf.mxu0  ;;  %7238 = vmatprep.subr.bf16.mxu1 %v9749_v36  ;;  %v3867_v36 = vsub.s32 7, %v10427_v35  ;;  %v9752_v41 = vld [vmem:[#allocation12 + $0x14c] ss:$16 sps:$4 sm:$0xff]  }
 0x4df   :  { %v5366_v51 = vadd.f32 %v5365_v42, %v3860_v39  ;;  %v5408_v47 = vpop.f32.mrf.mxu1  ;;  %v5407_v46 = vadd.f32 %v5406_v34, %v5364_v55  ;;  %v9758_v55 = vld [vmem:[#allocation12 + $0x12c] ss:$16 sps:$4 sm:$0xff]  }
 0x4e0   :  { %v5367_v48 = vpop.f32.mrf.mxu0  ;;  %v3868_v34 = vrot.slane %v10475_v33, %v3867_v36  ;;  %v9801_v36 = vld [vmem:[#allocation12 + $0x228] ss:$16 sps:$4 sm:$0xff]  }
 0x4e1   :  { %v5368_v53 = vadd.f32 %v5367_v48, %v3856_v43  ;;  %v5410_v52 = vpop.f32.mrf.mxu1  ;;  %7239 = vmatpush2.bf16.msra.mxu1 %v9747_v49  ;;  %v5409_v59 = vadd.f32 %v5408_v47, %v5366_v51  ;;  %v5505_v5 = vmax.f32 %v5407_v46, 0.0  ;;  %v9744_v43 = vld [vmem:[#allocation12 + $0x168] ss:$16 sps:$4 sm:$0xff]  }
 0x4e2   :  { %v5369_v57 = vpop.f32.mrf.mxu0  ;;  %7240 = vmatprep.subr.bf16.mxu1 %v9755_v50  ;;  %v9750_v51 = vld [vmem:[#allocation12 + $0x148] ss:$16 sps:$4 sm:$0xff]  }
 0x4e3   :  { %v5411_v60 = vadd.f32 %v5410_v52, %v5368_v53  ;;  %v5370_v61 = vadd.f32 %v5369_v57, %v3860_v39  ;;  %v5412_v62 = vpop.f32.mrf.mxu1  ;;  %v5506_v2 = vmax.f32 %v5409_v59, 0.0  ;;  %v3863_v39 = vsub.s32 6, %v10427_v35 }
 0x4e5   :  { %v5413_v63 = vadd.f32 %v5412_v62, %v5370_v61  ;;  %7241 = vmatpush2.bf16.msra.mxu1 %v9753_v56  ;;  %v5513_v1 = vmax.f32 %v5411_v60, 0.0  ;;  %v3864_v49 = vrot.slane %v10475_v33, %v3863_v39  ;;  %v9764_v60 = vld [vmem:[#allocation12 + $0x10c] ss:$16 sps:$4 sm:$0xff]   ;;  %v9804_v39 = vld [vmem:[#allocation12 + $0x428] ss:$16 sps:$4 sm:$0xff]  }
 0x4e6   :  { %7242 = vmatprep.subr.bf16.mxu1 %v9761_v58  ;;  %v9756_v58 = vld [vmem:[#allocation12 + $0x128] ss:$16 sps:$4 sm:$0xff]  }
 0x4e7   :  { %v5514_v54 = vmax.f32 %v5413_v63, 0.0  ;;  %v10517_v7 = vpack.c.bf16 %v5513_v1, %v5505_v5  ;;  %v9762_v1 = vld [vmem:[#allocation12 + $0x108] ss:$16 sps:$4 sm:$0xff]  }
 0x4e9   :  { %v10515_v44 = vpack.c.bf16 %v5514_v54, %v5506_v2  ;;  %7243 = vmatpush2.bf16.msra.mxu1 %v9759_v0  ;;  %v9770_v2 = vld [vmem:[#allocation12 + $0x4ec] ss:$16 sps:$4 sm:$0xff]  }
 0x4ea   :  { %7298 = vmatprep.subr.bf16.mxu1 %v9767_v37 }
 0x4eb   :  { %7201 = vmatprep.mubr.bf16.mxu0 %v10515_v44 }
 0x4ec   :  { %7202 = vmatmul.mubr.bf16.vlgmr.msra.gmra.mxu0 %v10517_v7 }
 0x4ed   :  { %7256 = vmatpush1.bf16.msra.mxu0 %v9672_v6  ;;  %7287 = vmatprep.mubr.bf16.mxu0 %v10489_v3  ;;  %v9708_v3 = vld [vmem:[#allocation12 + $0x28] ss:$16 sps:$4 sm:$0xff]  }
 0x4ee   :  { %7257 = vmatprep.subr.bf16.mxu0 %v9680_v12 }
 0x4f1   :  { %7258 = vmatpush1.bf16.msra.mxu0 %v9678_v15  ;;  %v9765_v15 = vld [vmem:[#allocation12 + $0x2e8] ss:$16 sps:$4 sm:$0xff]  }
 0x4f2   :  { %7259 = vmatprep.subr.bf16.mxu0 %v9686_v16  ;;  %v9768_v16 = vld [vmem:[#allocation12 + $0x4e8] ss:$16 sps:$4 sm:$0xff]  }
 0x4f5   :  { %7260 = vmatpush1.bf16.msra.mxu0 %v9684_v18 }
 0x4f6   :  { %7261 = vmatprep.subr.bf16.mxu0 %v9692_v20  ;;  %v9773_v20 = vld [vmem:[#allocation12 + $0x2cc] ss:$16 sps:$4 sm:$0xff]  }
 0x4f9   :  { %7262 = vmatpush1.bf16.msra.mxu0 %v9690_v21  ;;  %v9776_v21 = vld [vmem:[#allocation12 + $0x4cc] ss:$16 sps:$4 sm:$0xff]  }
 0x4fa   :  { %7263 = vmatprep.subr.bf16.mxu0 %v9698_v22  ;;  %v9771_v22 = vld [vmem:[#allocation12 + $0x2c8] ss:$16 sps:$4 sm:$0xff]  }
 0x4fd   :  { %7264 = vmatpush1.bf16.msra.mxu0 %v9696_v24  ;;  %v9774_v24 = vld [vmem:[#allocation12 + $0x4c8] ss:$16 sps:$4 sm:$0xff]  }
 0x4fe   :  { %7265 = vmatprep.subr.bf16.mxu0 %v9704_v23  ;;  %v9779_v23 = vld [vmem:[#allocation12 + $0x2ac] ss:$16 sps:$4 sm:$0xff]  }
 0x501   :  { %7266 = vmatpush1.bf16.msra.mxu0 %v9702_v26  ;;  %v9782_v26 = vld [vmem:[#allocation12 + $0x4ac] ss:$16 sps:$4 sm:$0xff]  }
 0x502   :  { %7267 = vmatprep.subr.bf16.mxu0 %v9710_v27  ;;  %v9777_v27 = vld [vmem:[#allocation12 + $0x2a8] ss:$16 sps:$4 sm:$0xff]  }
 0x505   :  { %7268 = vmatpush1.bf16.msra.mxu0 %v9708_v3  ;;  %v9780_v3 = vld [vmem:[#allocation12 + $0x4a8] ss:$16 sps:$4 sm:$0xff]  }
 0x506   :  { %7269 = vmatprep.subr.bf16.mxu0 %v9716_v28  ;;  %v9788_v28 = vld [vmem:[#allocation12 + $0x48c] ss:$16 sps:$4 sm:$0xff]  }
 0x509   :  { %7270 = vmatpush1.bf16.msra.mxu0 %v9714_v25  ;;  %v9783_v25 = vld [vmem:[#allocation12 + $0x288] ss:$16 sps:$4 sm:$0xff]  }
 0x50a   :  { %7271 = vmatprep.subr.bf16.mxu0 %v9722_v30  ;;  %v9786_v30 = vld [vmem:[#allocation12 + $0x488] ss:$16 sps:$4 sm:$0xff]  }
 0x50d   :  { %7272 = vmatpush2.bf16.msra.mxu0 %v9720_v32  ;;  %v9789_v32 = vld [vmem:[#allocation12 + $0x268] ss:$16 sps:$4 sm:$0xff]  }
 0x50e   :  { %7273 = vmatprep.subr.bf16.mxu0 %v9728_v29  ;;  %v9792_v29 = vld [vmem:[#allocation12 + $0x468] ss:$16 sps:$4 sm:$0xff]  }
 0x511   :  { %7274 = vmatpush2.bf16.msra.mxu0 %v9726_v8  ;;  %v9797_v8 = vld [vmem:[#allocation12 + $0x24c] ss:$16 sps:$4 sm:$0xff]  }
 0x512   :  { %7275 = vmatprep.subr.bf16.mxu0 %v9734_v9  ;;  %v9800_v9 = vld [vmem:[#allocation12 + $0x44c] ss:$16 sps:$4 sm:$0xff]  }
 0x515   :  { %7276 = vmatpush2.bf16.msra.mxu0 %v9732_v10  ;;  %v9795_v10 = vld [vmem:[#allocation12 + $0x248] ss:$16 sps:$4 sm:$0xff]  }
 0x516   :  { %7277 = vmatprep.subr.bf16.mxu0 %v9740_v11  ;;  %v9798_v11 = vld [vmem:[#allocation12 + $0x448] ss:$16 sps:$4 sm:$0xff]  }
 0x519   :  { %7278 = vmatpush2.bf16.msra.mxu0 %v9738_v13  ;;  %v9803_v13 = vld [vmem:[#allocation12 + $0x22c] ss:$16 sps:$4 sm:$0xff]  }
 0x51a   :  { %7279 = vmatprep.subr.bf16.mxu0 %v9746_v14  ;;  %v9806_v14 = vld [vmem:[#allocation12 + $0x42c] ss:$16 sps:$4 sm:$0xff]  }
 0x51c   :  { %v5449_v42 = vpop.f32.mrf.mxu0 }
 0x51d   :  { %v5492_v50 = vpop.f32.mrf.mxu1  ;;  %7280 = vmatpush2.bf16.msra.mxu0 %v9744_v43  ;;  %v5450_v52 = vadd.f32 %v5449_v42, %v3864_v49  ;;  %v9809_v43 = vld [vmem:[#allocation12 + $0x20c] ss:$16 sps:$4 sm:$0xff]  }
 0x51e   :  { %v5451_v47 = vpop.f32.mrf.mxu0  ;;  %7281 = vmatprep.subr.bf16.mxu0 %v9752_v41  ;;  %v9812_v41 = vld [vmem:[#allocation12 + $0x40c] ss:$16 sps:$4 sm:$0xff]  }
 0x51f   :  { %v5452_v48 = vadd.f32 %v5451_v47, %v3868_v34  ;;  %v5494_v53 = vpop.f32.mrf.mxu1  ;;  %v5493_v62 = vadd.f32 %v5492_v50, %v5450_v52  ;;  %v9815_v42 = vld [vmem:[#allocation12 + $0x3ec] ss:$16 sps:$4 sm:$0xff]   ;;  %v9816_v47 = vld [vmem:[#allocation12 + $0x5e8] ss:$16 sps:$4 sm:$0xff]  }
 0x520   :  { %v5453_v56 = vpop.f32.mrf.mxu0  ;;  %v9818_v50 = vld [vmem:[#allocation12 + $0x5ec] ss:$16 sps:$4 sm:$0xff]   ;;  %v9822_v52 = vld [vmem:[#allocation12 + $0x5c8] ss:$16 sps:$4 sm:$0xff]  }
 0x521   :  { %v5454_v35 = vadd.f32 %v5453_v56, %v3864_v49  ;;  %v5496_v57 = vpop.f32.mrf.mxu1  ;;  %7282 = vmatpush2.bf16.msra.mxu0 %v9750_v51  ;;  %v5495_v61 = vadd.f32 %v5494_v53, %v5452_v48  ;;  %v5507_v6 = vmax.f32 %v5493_v62, 0.0  ;;  %v9810_v49 = vld [vmem:[#allocation12 + $0x408] ss:$16 sps:$4 sm:$0xff]   ;;  %v9824_v48 = vld [vmem:[#allocation12 + $0x5cc] ss:$16 sps:$4 sm:$0xff]  }
 0x522   :  { %v5455_v59 = vpop.f32.mrf.mxu0  ;;  %7283 = vmatprep.subr.bf16.mxu0 %v9758_v55  ;;  %v9813_v51 = vld [vmem:[#allocation12 + $0x3e8] ss:$16 sps:$4 sm:$0xff]   ;;  %v9821_v55 = vld [vmem:[#allocation12 + $0x3cc] ss:$16 sps:$4 sm:$0xff]  }
 0x523   :  { %v5497_v33 = vadd.f32 %v5496_v57, %v5454_v35  ;;  %v5456_v46 = vadd.f32 %v5455_v59, %v3868_v34  ;;  %v5498_v63 = vpop.f32.mrf.mxu1  ;;  %v5508_v54 = vmax.f32 %v5495_v61, 0.0  ;;  %v9807_v34 = vld [vmem:[#allocation12 + $0x208] ss:$16 sps:$4 sm:$0xff]   ;;  %v9827_v56 = vld [vmem:[#allocation12 + $0x3ac] ss:$16 sps:$4 sm:$0xff]  }
 0x524   :  { %v9819_v53 = vld [vmem:[#allocation12 + $0x3c8] ss:$16 sps:$4 sm:$0xff]   ;;  %v9830_v35 = vld [vmem:[#allocation12 + $0x5ac] ss:$16 sps:$4 sm:$0xff]  }
 0x525   :  { %v5499_v0 = vadd.f32 %v5498_v63, %v5456_v46  ;;  %7284 = vmatpush2.bf16.msra.mxu0 %v9756_v58  ;;  %v5515_v37 = vmax.f32 %v5497_v33, 0.0  ;;  %v9825_v57 = vld [vmem:[#allocation12 + $0x3a8] ss:$16 sps:$4 sm:$0xff]   ;;  %v9833_v59 = vld [vmem:[#allocation12 + $0x38c] ss:$16 sps:$4 sm:$0xff]  }
 0x526   :  { %7285 = vmatprep.subr.bf16.mxu0 %v9764_v60  ;;  %v9828_v58 = vld [vmem:[#allocation12 + $0x5a8] ss:$16 sps:$4 sm:$0xff]   ;;  %v9836_v60 = vld [vmem:[#allocation12 + $0x58c] ss:$16 sps:$4 sm:$0xff]  }
 0x527   :  { %v5516_v5 = vmax.f32 %v5499_v0, 0.0  ;;  %v10528_v18 = vpack.c.bf16 %v5515_v37, %v5507_v6  ;;  %v9831_v61 = vld [vmem:[#allocation12 + $0x388] ss:$16 sps:$4 sm:$0xff]   ;;  %v9839_v46 = vld [vmem:[#allocation12 + $0x36c] ss:$16 sps:$4 sm:$0xff]  }
 0x528   :  { %v9834_v33 = vld [vmem:[#allocation12 + $0x588] ss:$16 sps:$4 sm:$0xff]   ;;  %v9842_v62 = vld [vmem:[#allocation12 + $0x56c] ss:$16 sps:$4 sm:$0xff]  }
 0x529   :  { %v10526_v12 = vpack.c.bf16 %v5516_v5, %v5508_v54  ;;  %7286 = vmatpush2.bf16.msra.mxu0 %v9762_v1  ;;  %v9837_v63 = vld [vmem:[#allocation12 + $0x368] ss:$16 sps:$4 sm:$0xff]   ;;  %v9845_v1 = vld [vmem:[#allocation12 + $0x34c] ss:$16 sps:$4 sm:$0xff]  }
 0x52a   :  { %7341 = vmatprep.subr.bf16.mxu0 %v9770_v2  ;;  %v9840_v0 = vld [vmem:[#allocation12 + $0x568] ss:$16 sps:$4 sm:$0xff]   ;;  %v9848_v37 = vld [vmem:[#allocation12 + $0x54c] ss:$16 sps:$4 sm:$0xff]  }
 0x52b   :  { %7244 = vmatprep.mubr.bf16.mxu1 %v10526_v12  ;;  %v9843_v2 = vld [vmem:[#allocation12 + $0x348] ss:$16 sps:$4 sm:$0xff]   ;;  %v9851_v5 = vld [vmem:[#allocation12 + $0x32c] ss:$16 sps:$4 sm:$0xff]  }
 0x52c   :  { %7288 = vmatmul.mubr.bf16.vlgmr.msra.gmra.mxu0 %v10498_v4  ;;  %7245 = vmatmul.mubr.bf16.vlgmr.msra.gmra.mxu1 %v10528_v18  ;;  %v9785_v4 = vld [vmem:[#allocation12 + $0x28c] ss:$16 sps:$4 sm:$0xff]   ;;  %v9846_v54 = vld [vmem:[#allocation12 + $0x548] ss:$16 sps:$4 sm:$0xff]  }
 0x52d   :  { %7299 = vmatpush1.bf16.msra.mxu1 %v9765_v15  ;;  %7342 = vmatpush1.bf16.msra.mxu0 %v9768_v16  ;;  %v9854_v6 = vld [vmem:[#allocation12 + $0x52c] ss:$16 sps:$4 sm:$0xff]   ;;  %v9849_v15 = vld [vmem:[#allocation12 + $0x328] ss:$16 sps:$4 sm:$0xff]  }
 0x52e   :  { %7373 = vmatprep.mubr.bf16.mxu0 %v10515_v44  ;;  %7330 = vmatprep.mubr.bf16.mxu1 %v10505_v31  ;;  %v9791_v44 = vld [vmem:[#allocation12 + $0x26c] ss:$16 sps:$4 sm:$0xff]   ;;  %v9852_v16 = vld [vmem:[#allocation12 + $0x528] ss:$16 sps:$4 sm:$0xff]  }
 0x52f   :  { %7300 = vmatprep.subr.bf16.mxu1 %v9773_v20  ;;  %7343 = vmatprep.subr.bf16.mxu0 %v9776_v21  ;;  %v9794_v31 = vld [vmem:[#allocation12 + $0x46c] ss:$16 sps:$4 sm:$0xff]  }
 0x530   :  { %v9857_v20 = vld [vmem:[#allocation12 + $0x30c] ss:$16 sps:$4 sm:$0xff]  }
 0x531   :  { %7301 = vmatpush1.bf16.msra.mxu1 %v9771_v22  ;;  %7344 = vmatpush1.bf16.msra.mxu0 %v9774_v24  ;;  %v9860_v21 = vld [vmem:[#allocation12 + $0x50c] ss:$16 sps:$4 sm:$0xff]   ;;  %v9855_v22 = vld [vmem:[#allocation12 + $0x308] ss:$16 sps:$4 sm:$0xff]  }
 0x532   :  { %7302 = vmatprep.subr.bf16.mxu1 %v9779_v23  ;;  %7345 = vmatprep.subr.bf16.mxu0 %v9782_v26  ;;  %v9858_v24 = vld [vmem:[#allocation12 + $0x508] ss:$16 sps:$4 sm:$0xff]   ;;  %v9863_v23 = vld [vmem:[#allocation12 + $0x6ec] ss:$16 sps:$4 sm:$0xff]  }
 0x533   :  { %v9909_v26 = vld [vmem:[#allocation15 + $0x78] sm:$0xff]  }
 0x535   :  { %7303 = vmatpush1.bf16.msra.mxu1 %v9777_v27  ;;  %7346 = vmatpush1.bf16.msra.mxu0 %v9780_v3  ;;  %v9861_v27 = vld [vmem:[#allocation12 + $0x6e8] ss:$16 sps:$4 sm:$0xff]   ;;  %v9866_v3 = vld [vmem:[#allocation12 + $0x6cc] ss:$16 sps:$4 sm:$0xff]  }
 0x536   :  { %7304 = vmatprep.subr.bf16.mxu1 %v9785_v4  ;;  %7347 = vmatprep.subr.bf16.mxu0 %v9788_v28  ;;  %v9910_v4 = vld [vmem:[#allocation15 + $0x38] sm:$0xff]   ;;  %v9911_v28 = vld [vmem:[#allocation15 + $0x70] sm:$0xff]  }
 0x539   :  { %7305 = vmatpush1.bf16.msra.mxu1 %v9783_v25  ;;  %7348 = vmatpush1.bf16.msra.mxu0 %v9786_v30  ;;  %v9864_v25 = vld [vmem:[#allocation12 + $0x6c8] ss:$16 sps:$4 sm:$0xff]   ;;  %v9869_v30 = vld [vmem:[#allocation12 + $0x6ac] ss:$16 sps:$4 sm:$0xff]  }
 0x53a   :  { %7306 = vmatprep.subr.bf16.mxu1 %v9791_v44  ;;  %7349 = vmatprep.subr.bf16.mxu0 %v9794_v31  ;;  %v9912_v44 = vld [vmem:[#allocation15 + $0x30] sm:$0xff]   ;;  %v9913_v31 = vld [vmem:[#allocation15 + $0x68] sm:$0xff]  }
 0x53d   :  { %7307 = vmatpush1.bf16.msra.mxu1 %v9789_v32  ;;  %7350 = vmatpush1.bf16.msra.mxu0 %v9792_v29  ;;  %v9867_v32 = vld [vmem:[#allocation12 + $0x6a8] ss:$16 sps:$4 sm:$0xff]   ;;  %v9872_v29 = vld [vmem:[#allocation12 + $0x68c] ss:$16 sps:$4 sm:$0xff]  }
 0x53e   :  { %7308 = vmatprep.subr.bf16.mxu1 %v9797_v8  ;;  %7351 = vmatprep.subr.bf16.mxu0 %v9800_v9  ;;  %v9914_v8 = vld [vmem:[#allocation15 + $0x28] sm:$0xff]  }
 0x53f   :  { %v9875_v9 = vld [vmem:[#allocation12 + $0x66c] ss:$16 sps:$4 sm:$0xff]  }
 0x541   :  { %7309 = vmatpush1.bf16.msra.mxu1 %v9795_v10  ;;  %7352 = vmatpush1.bf16.msra.mxu0 %v9798_v11  ;;  %v9917_v10 = vld [vmem:[#allocation15 + $0x58] sm:$0xff]   ;;  %v9873_v11 = vld [vmem:[#allocation12 + $0x668] ss:$16 sps:$4 sm:$0xff]  }
 0x542   :  { %7310 = vmatprep.subr.bf16.mxu1 %v9803_v13  ;;  %7353 = vmatprep.subr.bf16.mxu0 %v9806_v14  ;;  %v9878_v13 = vld [vmem:[#allocation12 + $0x64c] ss:$16 sps:$4 sm:$0xff]  }
 0x543   :  { %v9918_v14 = vld [vmem:[#allocation15 + $0x18] sm:$0xff]  }
 0x545   :  { %7311 = vmatpush1.bf16.msra.mxu1 %v9801_v36  ;;  %7354 = vmatpush1.bf16.msra.mxu0 %v9804_v39  ;;  %v9919_v36 = vld [vmem:[#allocation15 + $0x50] sm:$0xff]  }
 0x546   :  { %7312 = vmatprep.subr.bf16.mxu1 %v9809_v43  ;;  %7355 = vmatprep.subr.bf16.mxu0 %v9812_v41  ;;  %v9876_v39 = vld [vmem:[#allocation12 + $0x648] ss:$16 sps:$4 sm:$0xff]   ;;  %v9881_v43 = vld [vmem:[#allocation12 + $0x62c] ss:$16 sps:$4 sm:$0xff]  }
 0x547   :  { %v9920_v41 = vld [vmem:[#allocation15 + $0x10] sm:$0xff]  }
 0x549   :  { %7313 = vmatpush1.bf16.msra.mxu1 %v9807_v34  ;;  %7356 = vmatpush1.bf16.msra.mxu0 %v9810_v49  ;;  %v9921_v34 = vld [vmem:[#allocation15 + $0x48] sm:$0xff]   ;;  %v9879_v49 = vld [vmem:[#allocation12 + $0x628] ss:$16 sps:$4 sm:$0xff]  }
 0x54a   :  { %7314 = vmatprep.subr.bf16.mxu1 %v9815_v42  ;;  %7357 = vmatprep.subr.bf16.mxu0 %v9818_v50  ;;  %v9884_v42 = vld [vmem:[#allocation12 + $0x60c] ss:$16 sps:$4 sm:$0xff]  }
 0x54b   :  { %v9922_v50 = vld [vmem:[#allocation15 + $0x8] sm:$0xff]  }
 0x54d   :  { %7315 = vmatpush2.bf16.msra.mxu1 %v9813_v51  ;;  %7358 = vmatpush2.bf16.msra.mxu0 %v9816_v47  ;;  %v9923_v51 = vld [vmem:[#allocation15 + $0x40] sm:$0xff]  }
 0x54e   :  { %7316 = vmatprep.subr.bf16.mxu1 %v9821_v55  ;;  %7359 = vmatprep.subr.bf16.mxu0 %v9824_v48  ;;  %v9882_v47 = vld [vmem:[#allocation12 + $0x608] ss:$16 sps:$4 sm:$0xff]   ;;  %v9887_v55 = vld [vmem:[#allocation12 + $0x7ec] ss:$16 sps:$4 sm:$0xff]  }
 0x54f   :  { %v9924_v48 = vld [vmem:[#allocation15] sm:$0xff]  }
 0x551   :  { %7317 = vmatpush2.bf16.msra.mxu1 %v9819_v53  ;;  %7360 = vmatpush2.bf16.msra.mxu0 %v9822_v52  ;;  %v9885_v53 = vld [vmem:[#allocation12 + $0x7e8] ss:$16 sps:$4 sm:$0xff]   ;;  %v9890_v52 = vld [vmem:[#allocation12 + $0x7cc] ss:$16 sps:$4 sm:$0xff]  }
 0x552   :  { %7318 = vmatprep.subr.bf16.mxu1 %v9827_v56  ;;  %7361 = vmatprep.subr.bf16.mxu0 %v9830_v35  ;;  %v9888_v56 = vld [vmem:[#allocation12 + $0x7c8] ss:$16 sps:$4 sm:$0xff]   ;;  %v9893_v35 = vld [vmem:[#allocation12 + $0x7ac] ss:$16 sps:$4 sm:$0xff]  }
 0x555   :  { %7319 = vmatpush2.bf16.msra.mxu1 %v9825_v57  ;;  %7362 = vmatpush2.bf16.msra.mxu0 %v9828_v58  ;;  %v9891_v57 = vld [vmem:[#allocation12 + $0x7a8] ss:$16 sps:$4 sm:$0xff]   ;;  %v9896_v58 = vld [vmem:[#allocation12 + $0x78c] ss:$16 sps:$4 sm:$0xff]  }
 0x556   :  { %7320 = vmatprep.subr.bf16.mxu1 %v9833_v59  ;;  %7363 = vmatprep.subr.bf16.mxu0 %v9836_v60  ;;  %v9894_v59 = vld [vmem:[#allocation12 + $0x788] ss:$16 sps:$4 sm:$0xff]   ;;  %v9899_v60 = vld [vmem:[#allocation12 + $0x76c] ss:$16 sps:$4 sm:$0xff]  }
 0x559   :  { %7321 = vmatpush2.bf16.msra.mxu1 %v9831_v61  ;;  %7364 = vmatpush2.bf16.msra.mxu0 %v9834_v33  ;;  %v9897_v61 = vld [vmem:[#allocation12 + $0x768] ss:$16 sps:$4 sm:$0xff]   ;;  %v9902_v33 = vld [vmem:[#allocation12 + $0x74c] ss:$16 sps:$4 sm:$0xff]  }
 0x55a   :  { %7322 = vmatprep.subr.bf16.mxu1 %v9839_v46  ;;  %7365 = vmatprep.subr.bf16.mxu0 %v9842_v62  ;;  %v9900_v46 = vld [vmem:[#allocation12 + $0x748] ss:$16 sps:$4 sm:$0xff]   ;;  %v9905_v62 = vld [vmem:[#allocation12 + $0x72c] ss:$16 sps:$4 sm:$0xff]  }
 0x55d   :  { %7323 = vmatpush2.bf16.msra.mxu1 %v9837_v63  ;;  %7366 = vmatpush2.bf16.msra.mxu0 %v9840_v0  ;;  %v9903_v63 = vld [vmem:[#allocation12 + $0x728] ss:$16 sps:$4 sm:$0xff]   ;;  %v9908_v0 = vld [vmem:[#allocation12 + $0x70c] ss:$16 sps:$4 sm:$0xff]  }
 0x55e   :  { %7324 = vmatprep.subr.bf16.mxu1 %v9845_v1  ;;  %7367 = vmatprep.subr.bf16.mxu0 %v9848_v37  ;;  %v9906_v1 = vld [vmem:[#allocation12 + $0x708] ss:$16 sps:$4 sm:$0xff]   ;;  %v9925_v37 = vld [vmem:[#allocation15 + $0xf8] sm:$0xff]  }
 0x561   :  { %7325 = vmatpush2.bf16.msra.mxu1 %v9843_v2  ;;  %7368 = vmatpush2.bf16.msra.mxu0 %v9846_v54  ;;  %v9926_v2 = vld [vmem:[#allocation15 + $0xb8] sm:$0xff]   ;;  %v9927_v54 = vld [vmem:[#allocation15 + $0xf0] sm:$0xff]  }
 0x562   :  { %7326 = vmatprep.subr.bf16.mxu1 %v9851_v5  ;;  %7369 = vmatprep.subr.bf16.mxu0 %v9854_v6  ;;  %v9928_v5 = vld [vmem:[#allocation15 + $0xb0] sm:$0xff]   ;;  %v9929_v6 = vld [vmem:[#allocation15 + $0xe8] sm:$0xff]  }
 0x565   :  { %7327 = vmatpush2.bf16.msra.mxu1 %v9849_v15  ;;  %7370 = vmatpush2.bf16.msra.mxu0 %v9852_v16  ;;  %v9930_v15 = vld [vmem:[#allocation15 + $0xa8] sm:$0xff]   ;;  %v9931_v16 = vld [vmem:[#allocation15 + $0xe0] sm:$0xff]  }
 0x566   :  { %7328 = vmatprep.subr.bf16.mxu1 %v9857_v20  ;;  %7371 = vmatprep.subr.bf16.mxu0 %v9860_v21  ;;  %v9932_v20 = vld [vmem:[#allocation15 + $0xa0] sm:$0xff]   ;;  %v9933_v21 = vld [vmem:[#allocation15 + $0xd8] sm:$0xff]  }
 0x569   :  { %7329 = vmatpush2.bf16.msra.mxu1 %v9855_v22  ;;  %7372 = vmatpush2.bf16.msra.mxu0 %v9858_v24  ;;  %v9934_v22 = vld [vmem:[#allocation15 + $0x98] sm:$0xff]  }
 0x56a   :  { %7384 = vmatprep.subr.bf16.mxu1 %v9863_v23  ;;  %8791 = vmatprep.subr.bf16.mxu0 %v9909_v26 }
 0x56c   :  { %7331 = vmatmul.mubr.bf16.vlgmr.msra.gmra.mxu1 %v10507_v45  ;;  %7374 = vmatmul.mubr.bf16.vlgmr.msra.gmra.mxu0 %v10517_v7  ;;  %v9915_v45 = vld [vmem:[#allocation15 + $0x60] sm:$0xff]   ;;  %v7160_v26 = vpop.f32.mrf.mxu1 }
 0x56d   :  { %7385 = vmatpush1.bf16.msra.mxu1 %v9861_v27  ;;  %7416 = vmatprep.mubr.bf16.mxu1 %v10526_v12  ;;  %v9870_v7 = vld [vmem:[#allocation12 + $0x688] ss:$16 sps:$4 sm:$0xff]  }
 0x56e   :  { %7386 = vmatprep.subr.bf16.mxu1 %v9866_v3  ;;  %8792 = vmatpush3.bf16.msra.mxu0 %v9910_v4  ;;  %v9916_v12 = vld [vmem:[#allocation15 + $0x20] sm:$0xff]   ;;  %v7162_v3 = vpop.f32.mrf.mxu1 }
 0x56f   :  { %8793 = vmatprep.subr.bf16.mxu0 %v9911_v28  ;;  %v5781_v28 = vld [vmem:[#allocation13] sm:$0xf] }
 0x571   :  { %7387 = vmatpush1.bf16.msra.mxu1 %v9864_v25  ;;  %v7164_v25 = vpop.f32.mrf.mxu1 }
 0x572   :  { %7388 = vmatprep.subr.bf16.mxu1 %v9869_v30  ;;  %8794 = vmatpush3.bf16.msra.mxu0 %v9912_v44  ;;  %v5790_v44 = vrot.slane %v5781_v28, %v10430_v38 }
 0x573   :  { %8795 = vmatprep.subr.bf16.mxu0 %v9913_v31  ;;  %v5786_v31 = vrot.slane %v5781_v28, %v10433_v40 }
 0x575   :  { %7389 = vmatpush1.bf16.msra.mxu1 %v9867_v32  ;;  %v7166_v32 = vpop.f32.mrf.mxu1 }
 0x576   :  { %7390 = vmatprep.subr.bf16.mxu1 %v9872_v29  ;;  %8796 = vmatpush3.bf16.msra.mxu0 %v9914_v8 }
 0x577   :  { %8797 = vmatprep.subr.bf16.mxu0 %v9915_v45 }
 0x579   :  { %7391 = vmatpush1.bf16.msra.mxu1 %v9870_v7 }
 0x57a   :  { %7392 = vmatprep.subr.bf16.mxu1 %v9875_v9  ;;  %8798 = vmatpush3.bf16.msra.mxu0 %v9916_v12 }
 0x57b   :  { %8799 = vmatprep.subr.bf16.mxu0 %v9917_v10 }
 0x57d   :  { %7393 = vmatpush1.bf16.msra.mxu1 %v9873_v11 }
 0x57e   :  { %7394 = vmatprep.subr.bf16.mxu1 %v9878_v13  ;;  %8800 = vmatpush3.bf16.msra.mxu0 %v9918_v14  ;;  %v9935_v13 = vld [vmem:[#allocation15 + $0xd0] sm:$0xff]  }
 0x57f   :  { %8801 = vmatprep.subr.bf16.mxu0 %v9919_v36 }
 0x581   :  { %7395 = vmatpush1.bf16.msra.mxu1 %v9876_v39 }
 0x582   :  { %7396 = vmatprep.subr.bf16.mxu1 %v9881_v43  ;;  %8802 = vmatpush3.bf16.msra.mxu0 %v9920_v41  ;;  %v9936_v43 = vld [vmem:[#allocation15 + $0x90] sm:$0xff]  }
 0x583   :  { %8803 = vmatprep.subr.bf16.mxu0 %v9921_v34 }
 0x585   :  { %7397 = vmatpush1.bf16.msra.mxu1 %v9879_v49 }
 0x586   :  { %7398 = vmatprep.subr.bf16.mxu1 %v9884_v42  ;;  %8804 = vmatpush3.bf16.msra.mxu0 %v9922_v50 }
 0x587   :  { %8805 = vmatprep.subr.bf16.mxu0 %v9923_v51 }
 0x589   :  { %7399 = vmatpush1.bf16.msra.mxu1 %v9882_v47  ;;  %v9937_v47 = vld [vmem:[#allocation15 + $0xc8] sm:$0xff]  }
 0x58a   :  { %7400 = vmatprep.subr.bf16.mxu1 %v9887_v55  ;;  %8806 = vmatpush3.bf16.msra.mxu0 %v9924_v48 }
 0x58d   :  { %7401 = vmatpush2.bf16.msra.mxu1 %v9885_v53  ;;  %v9938_v53 = vld [vmem:[#allocation15 + $0x88] sm:$0xff]  }
 0x58e   :  { %7402 = vmatprep.subr.bf16.mxu1 %v9890_v52 }
 0x591   :  { %7403 = vmatpush2.bf16.msra.mxu1 %v9888_v56 }
 0x592   :  { %7404 = vmatprep.subr.bf16.mxu1 %v9893_v35 }
 0x595   :  { %7405 = vmatpush2.bf16.msra.mxu1 %v9891_v57 }
 0x596   :  { %7406 = vmatprep.subr.bf16.mxu1 %v9896_v58  ;;  %v9939_v58 = vld [vmem:[#allocation15 + $0xc0] sm:$0xff]  }
 0x599   :  { %7407 = vmatpush2.bf16.msra.mxu1 %v9894_v59 }
 0x59a   :  { %7408 = vmatprep.subr.bf16.mxu1 %v9899_v60  ;;  %v9940_v60 = vld [vmem:[#allocation15 + $0x80] sm:$0xff]  }
 0x59d   :  { %7409 = vmatpush2.bf16.msra.mxu1 %v9897_v61 }
 0x59e   :  { %7410 = vmatprep.subr.bf16.mxu1 %v9902_v33 }
 0x5a1   :  { %7411 = vmatpush2.bf16.msra.mxu1 %v9900_v46 }
 0x5a2   :  { %7412 = vmatprep.subr.bf16.mxu1 %v9905_v62 }
 0x5a5   :  { %7413 = vmatpush2.bf16.msra.mxu1 %v9903_v63 }
 0x5a6   :  { %7414 = vmatprep.subr.bf16.mxu1 %v9908_v0 }
 0x5a9   :  { %7415 = vmatpush2.bf16.msra.mxu1 %v9906_v1 }
 0x5aa   :  { %8813 = vmatprep.subr.bf16.mxu1 %v9925_v37 }
 0x5ac   :  { %7417 = vmatmul.mubr.bf16.vlgmr.msra.gmra.mxu1 %v10528_v18  ;;  %v7117_v18 = vpop.f32.mrf.mxu0 }
 0x5ad   :  { %8814 = vmatpush3.bf16.msra.mxu1 %v9926_v2  ;;  %v7118_v7 = vadd.f32 %v7117_v18, %v5786_v31 }
 0x5ae   :  { %8815 = vmatprep.subr.bf16.mxu1 %v9927_v54  ;;  %v7119_v24 = vpop.f32.mrf.mxu0  ;;  %v5798_v54 = vrot.slane %v5781_v28, %v10444_v17 }
 0x5af   :  { %v7120_v8 = vadd.f32 %v7119_v24, %v5790_v44  ;;  %v7161_v14 = vadd.f32 %v7160_v26, %v7118_v7 }
 0x5b0   :  { %v7121_v23 = vpop.f32.mrf.mxu0 }
 0x5b1   :  { %8816 = vmatpush3.bf16.msra.mxu1 %v9928_v5  ;;  %v7122_v45 = vadd.f32 %v7121_v23, %v5786_v31  ;;  %v7163_v10 = vadd.f32 %v7162_v3, %v7120_v8  ;;  %v5794_v5 = vrot.slane %v5781_v28, %v10447_v19 }
 0x5b2   :  { %8817 = vmatprep.subr.bf16.mxu1 %v9929_v6  ;;  %v7123_v27 = vpop.f32.mrf.mxu0 }
 0x5b3   :  { %v7124_v12 = vadd.f32 %v7123_v27, %v5790_v44  ;;  %v7165_v11 = vadd.f32 %v7164_v25, %v7122_v45 }
 0x5b4   :  { %v7203_v4 = vpop.f32.mrf.mxu0 }
 0x5b5   :  { %8818 = vmatpush3.bf16.msra.mxu1 %v9930_v15  ;;  %v7167_v41 = vadd.f32 %v7166_v32, %v7124_v12  ;;  %v7204_v38 = vadd.f32 %v7203_v4, %v7161_v14 }
 0x5b6   :  { %8819 = vmatprep.subr.bf16.mxu1 %v9931_v16  ;;  %v7205_v30 = vpop.f32.mrf.mxu0 }
 0x5b7   :  { %v7206_v34 = vadd.f32 %v7205_v30, %v7163_v10 }
 0x5b8   :  { %v7207_v29 = vpop.f32.mrf.mxu0 }
 0x5b9   :  { %8820 = vmatpush3.bf16.msra.mxu1 %v9932_v20  ;;  %v7208_v49 = vadd.f32 %v7207_v29, %v7165_v11 }
 0x5ba   :  { %8821 = vmatprep.subr.bf16.mxu1 %v9933_v21  ;;  %v7209_v36 = vpop.f32.mrf.mxu0 }
 0x5bb   :  { %v7210_v42 = vadd.f32 %v7209_v36, %v7167_v41 }
 0x5bd   :  { %8822 = vmatpush3.bf16.msra.mxu1 %v9934_v22 }
 0x5be   :  { %8823 = vmatprep.subr.bf16.mxu1 %v9935_v13 }
 0x5c1   :  { %8824 = vmatpush3.bf16.msra.mxu1 %v9936_v43 }
 0x5c2   :  { %8825 = vmatprep.subr.bf16.mxu1 %v9937_v47 }
 0x5c5   :  { %8826 = vmatpush3.bf16.msra.mxu1 %v9938_v53 }
 0x5c6   :  { %8827 = vmatprep.subr.bf16.mxu1 %v9939_v58 }
 0x5c9   :  { %8828 = vmatpush3.bf16.msra.mxu1 %v9940_v60 }
 0x5ec   :  { %v7246_v9 = vpop.f32.mrf.mxu1  ;;  %v7289_v46 = vpop.f32.mrf.mxu0 }
 0x5ed   :  { %v7247_v55 = vadd.f32 %v7246_v9, %v7204_v38  ;;  %v7290_v21 = vadd.f32 %v7289_v46, %v5794_v5 }
 0x5ee   :  { %v7248_v39 = vpop.f32.mrf.mxu1  ;;  %v7291_v62 = vpop.f32.mrf.mxu0 }
 0x5ef   :  { %v7249_v50 = vadd.f32 %v7248_v39, %v7206_v34  ;;  %v7427_v59 = vmax.f32 %v7247_v55, 0.0  ;;  %v7292_v16 = vadd.f32 %v7291_v62, %v5798_v54  ;;  %v8758_v34 = vld [vmem:[#allocation16] ss:$0 sm:$0xff] }
 0x5f0   :  { %v7250_v40 = vpop.f32.mrf.mxu1  ;;  %v7293_v63 = vpop.f32.mrf.mxu0 }
 0x5f1   :  { %v7251_v51 = vadd.f32 %v7250_v40, %v7208_v49  ;;  %v7428_v35 = vmax.f32 %v7249_v50, 0.0  ;;  %v7294_v20 = vadd.f32 %v7293_v63, %v5794_v5 }
 0x5f2   :  { %v7252_v48 = vpop.f32.mrf.mxu1  ;;  %v7295_v1 = vpop.f32.mrf.mxu0 }
 0x5f3   :  { %v7253_v52 = vadd.f32 %v7252_v48, %v7210_v42  ;;  %v7431_v56 = vmax.f32 %v7251_v51, 0.0  ;;  %v7296_v18 = vadd.f32 %v7295_v1, %v5798_v54 }
 0x5f5   :  { %v7432_v57 = vmax.f32 %v7253_v52, 0.0  ;;  %v7435_v33 = vpack.c.bf16 %v7431_v56, %v7427_v59 }
 0x5f7   :  { %v7436_v61 = vpack.c.bf16 %v7432_v57, %v7428_v35 }
 0x5f9   :  { %7734 = vmatprep.mubr.bf16.mxu0 %v7436_v61 }
 0x5fa   :  { %7735 = vmatmul.mubr.bf16.vlgmr.msra.gmra.mxu0 %v7435_v33 }
 0x62c   :  { %v7332_v0 = vpop.f32.mrf.mxu1  ;;  %v7375_v2 = vpop.f32.mrf.mxu0 }
 0x62d   :  { %v7333_v26 = vadd.f32 %v7332_v0, %v7290_v21 }
 0x62e   :  { %v7334_v37 = vpop.f32.mrf.mxu1  ;;  %v7377_v15 = vpop.f32.mrf.mxu0 }
 0x62f   :  { %v7335_v24 = vadd.f32 %v7334_v37, %v7292_v16  ;;  %v7376_v31 = vadd.f32 %v7375_v2, %v7333_v26 }
 0x630   :  { %v7336_v6 = vpop.f32.mrf.mxu1  ;;  %v7379_v27 = vpop.f32.mrf.mxu0 }
 0x631   :  { %v7337_v23 = vadd.f32 %v7336_v6, %v7294_v20  ;;  %v7378_v30 = vadd.f32 %v7377_v15, %v7335_v24 }
 0x632   :  { %v7338_v22 = vpop.f32.mrf.mxu1  ;;  %v7381_v17 = vpop.f32.mrf.mxu0 }
 0x633   :  { %v7339_v4 = vadd.f32 %v7338_v22, %v7296_v18  ;;  %v7380_v44 = vadd.f32 %v7379_v27, %v7337_v23 }
 0x635   :  { %v7382_v19 = vadd.f32 %v7381_v17, %v7339_v4 }
 0x66c   :  { %v7418_v3 = vpop.f32.mrf.mxu1 }
 0x66d   :  { %v7419_v8 = vadd.f32 %v7418_v3, %v7376_v31 }
 0x66e   :  { %v7420_v25 = vpop.f32.mrf.mxu1 }
 0x66f   :  { %v7421_v28 = vadd.f32 %v7420_v25, %v7378_v30  ;;  %v7429_v11 = vmax.f32 %v7419_v8, 0.0 }
 0x670   :  { %v7422_v32 = vpop.f32.mrf.mxu1 }
 0x671   :  { %v7423_v29 = vadd.f32 %v7422_v32, %v7380_v44  ;;  %v7430_v12 = vmax.f32 %v7421_v28, 0.0 }
 0x672   :  { %v7424_v45 = vpop.f32.mrf.mxu1 }
 0x673   :  { %v7425_v7 = vadd.f32 %v7424_v45, %v7382_v19  ;;  %v7433_v9 = vmax.f32 %v7423_v29, 0.0 }
 0x675   :  { %v7434_v10 = vmax.f32 %v7425_v7, 0.0  ;;  %v7437_v14 = vpack.c.bf16 %v7433_v9, %v7429_v11 }
 0x677   :  { %v7438_v13 = vpack.c.bf16 %v7434_v10, %v7430_v12 }
 0x679   :  { %7775 = vmatprep.mubr.bf16.mxu1 %v7438_v13 }
 0x67a   :  { %7776 = vmatmul.mubr.bf16.vlgmr.msra.gmra.mxu1 %v7437_v14 }
 0x6ba   :  { %v8807_v36 = vpop.f32.mrf.mxu0 }
 0x6bc   :  { %v8808_v39 = vpop.f32.mrf.mxu0 }
 0x6bd   :  { %v8809_v41 = vadd.f32 %v8808_v39, %v8807_v36 }
 0x6be   :  { %v8810_v43 = vpop.f32.mrf.mxu0 }
 0x6bf   :  { %v7737_v42 = vadd.f32 %v8809_v41, %v8758_v34 }
 0x6c0   :  { %v8811_v49 = vpop.f32.mrf.mxu0 }
 0x6c1   :  { %v8812_v50 = vadd.f32 %v8811_v49, %v8810_v43 }
 0x6c3   :  { %v7740_v53 = vadd.f32 %v8812_v50, %v8758_v34 }
 0x73a   :  { %v8829_v38 = vpop.f32.mrf.mxu1 }
 0x73c   :  { %v8830_v40 = vpop.f32.mrf.mxu1 }
 0x73d   :  { %v8831_v51 = vadd.f32 %v8830_v40, %v8829_v38 }
 0x73e   :  { %v8832_v47 = vpop.f32.mrf.mxu1 }
 0x73f   :  { %v7778_v55 = vadd.f32 %v8831_v51, %v7737_v42 }
 0x740   :  { %v8833_v48 = vpop.f32.mrf.mxu1 }
 0x741   :  { %v7784_v52 = vmax.f32 %v7778_v55, 0.0  ;;  %v8834_v56 = vadd.f32 %v8833_v48, %v8832_v47 }
 0x743   :  { %7786 = vst [vmem:[%s10560_s11] sm:$0xff] %v7784_v52  ;;  %v7781_v35 = vadd.f32 %v8834_v56, %v7740_v53 }
 0x745   :  { %v7785_v57 = vmax.f32 %v7781_v35, 0.0 }
 0x747   :  { %7787 = vst [vmem:[%s10560_s11 + $0x8] sm:$0xff] %v7785_v57 }
 0x748   :  { %7792 = vsyncpa [#allocation3], 1 }
 0x749   :  { %7793 = vsyncpa [#allocation5], 1 }
 0x74a   :  { %7794 = vsyncpa [#allocation8], 1 }
 0x74b   :  { %7795 = vsyncpa [#allocation11], 1 }
 0x74c   :  { %7796 = vsyncpa [#allocation14], 1 }
 0x74d   :  { %7797 = vsyncpa [#allocation17], 1 }

</bundles_post_ra>
